<compile_context>
chip_gen: v5e
topology: v5e:2x2
jax: 0.10.0
libtpu: 0.0.40
codegen_flags: <defaults>
</compile_context>

<pallas_src>
import functools

import jax
import jax.numpy as jnp
from jax import lax
from jax.experimental import pallas as pl
from jax.experimental.pallas import tpu as pltpu


def _round_up(x, m):
    return ((x + m - 1) // m) * m


# ----------------------------------------------------------------------------
# Fused kernel: conv (as shifted matmuls) + bottleneck + classifier + domain
# heads, single lane-dense packed output.
# ----------------------------------------------------------------------------
def _daan_fused_kernel(x_ref, a_ref, cb_ref, bnw_ref, bnb_ref,
                       fcw_ref, fcb_ref,
                       dw1_ref, db1_ref, dw2_ref, db2_ref, dw3_ref, db3_ref,
                       cw1_ref, cb1_ref, cw2_ref, cb2_ref, cw3_ref, cb3_ref,
                       out_ref, *, n_class, shifts, c_out, rows, spatial):
    f32 = jnp.float32
    bf16 = jnp.bfloat16

    # ---- sharedNet: 3x3 valid conv + ReLU, as 9 shifted NT matmuls ----------
    # x_ref: (spatial_padded, rows*Cin)   a_ref[s]: (c_out*rows, rows*Cin)
    nt_dims = (((1,), (1,)), ((), ()))          # contract the lane dim of both
    acc = jnp.zeros((c_out * rows, spatial), f32)
    for idx, d in enumerate(shifts):            # static 9-tap loop
        xs = x_ref[pl.ds(d, spatial), :]        # (spatial, rows*Cin)
        acc = acc + lax.dot_general(a_ref[idx], xs, dimension_numbers=nt_dims,
                                    preferred_element_type=f32)
    conv = jnp.maximum(acc + cb_ref[...], 0.0)  # (c_out*rows, spatial)

    # ---- bottleneck: Linear(flat, 128) + ReLU --------------------------------
    # NCHW-flatten permutation and invalid-window masking are folded into bnw.
    feat_dim = bnb_ref.shape[-1]
    acc_bn = jnp.zeros((rows, feat_dim), f32)
    for o in range(c_out):                      # static, 8-aligned row blocks
        co = conv[o * rows:(o + 1) * rows, :].astype(bf16)   # (rows, spatial)
        acc_bn = acc_bn + jnp.dot(co, bnw_ref[o], preferred_element_type=f32)
    feat = jnp.maximum(acc_bn + bnb_ref[...], 0.0)           # (rows, 128)

    # ---- source_fc + softmax (rows: [0,B)=source, [B,2B)=target) ------------
    logits = jnp.dot(feat, fcw_ref[...], preferred_element_type=f32) + fcb_ref[...]
    m = jnp.max(logits, axis=1, keepdims=True)
    e = jnp.exp(logits - m)
    p = e * pl.reciprocal(jnp.sum(e, axis=1, keepdims=True), approx=True)

    # ---- domain classifiers (ReverseLayerF is identity in the forward) ------
    # TODO(synk): nn.Dropout (training mode) treated as identity.
    def mlp(x_bf, w1, b1, w2, b2, w3, b3):
        h = jnp.maximum(jnp.dot(x_bf, w1, preferred_element_type=f32) + b1, 0.0)
        h = jnp.maximum(jnp.dot(h.astype(bf16), w2,
                                preferred_element_type=f32) + b2, 0.0)
        return jnp.dot(h.astype(bf16), w3, preferred_element_type=f32) + b3

    feat_bf = feat.astype(bf16)
    dom = mlp(feat_bf, dw1_ref[...], db1_ref[...], dw2_ref[...], db2_ref[...],
              dw3_ref[...], db3_ref[...])                     # (rows, 2)

    # ---- single lane-dense packed output -------------------------------------
    out_ref[...] = jnp.zeros_like(out_ref)
    out_ref[:, 0:n_class] = logits
    out_ref[:, 8:10] = dom
    for c in range(n_class):                    # static, n_class=3
        wf = (p[:, c:c + 1] * feat).astype(bf16)              # (rows, 128)
        oc = mlp(wf, cw1_ref[c], cb1_ref[c], cw2_ref[c], cb2_ref[c],
                 cw3_ref[c], cb3_ref[c])                      # (rows, 2)
        col = 16 + 8 * c
        out_ref[:, col:col + 2] = oc


# ----------------------------------------------------------------------------
# One-time host-side repack of canonical weights into the kernel layout.
# ----------------------------------------------------------------------------
def pack_params(params, *, batch_size, c_in=4, c_out=8, k=3, h=16, w=16):
    rows = _round_up(2 * batch_size, 8)
    ho, wo = h - k + 1, w - k + 1
    feat_dim = params["bn_w"].shape[1]
    bf = jnp.bfloat16

    # Block-diagonal conv weight: A[s, o*rows+n, n*c_in+c] = conv_w[o, c, di, dj]
    w_flat = params["conv_w"].reshape(c_out, c_in, k * k)
    eye = jnp.eye(rows, dtype=jnp.float32)
    a = jnp.einsum("ocs,nm->sonmc", w_flat, eye)
    a = a.reshape(k * k, c_out * rows, rows * c_in).astype(jnp.float32)

    cb = jnp.repeat(params["conv_b"], rows).reshape(c_out * rows, 1)
    cb = cb.astype(jnp.float32)

    # Bottleneck weight with the NCHW flatten folded in and invalid (edge)
    # conv positions zeroed: bn_full[o, hh*w + ww] = bn_w[o*ho*wo + hh*wo + ww]
    bn_w3 = params["bn_w"].reshape(c_out, ho, wo, feat_dim)
    bn_full = jnp.zeros((c_out, h, w, feat_dim), jnp.float32)
    bn_full = bn_full.at[:, :ho, :wo, :].set(bn_w3)
    bn_full = bn_full.reshape(c_out, h * w, feat_dim).astype(bf)

    return {
        "A": a, "cb": cb, "bn_w": bn_full,
        "bn_b": params["bn_b"].reshape(1, feat_dim),
        "fc_w": params["fc_w"], "fc_b": params["fc_b"].reshape(1, -1),
        "dom_w1": params["dom_w1"].astype(bf), "dom_b1": params["dom_b1"],
        "dom_w2": params["dom_w2"].astype(bf), "dom_b2": params["dom_b2"],
        "dom_w3": params["dom_w3"].astype(bf), "dom_b3": params["dom_b3"],
        "dci_w1": params["dci_w1"].astype(bf), "dci_b1": params["dci_b1"],
        "dci_w2": params["dci_w2"].astype(bf), "dci_b2": params["dci_b2"],
        "dci_w3": params["dci_w3"].astype(bf), "dci_b3": params["dci_b3"],
    }


# ----------------------------------------------------------------------------
# DAANNet forward (training branch)
# ----------------------------------------------------------------------------
@functools.partial(jax.jit, static_argnames=("training", "n_class", "batch_size"))
def daan_forward(packed, source, target, s_label=None, alpha=0.0, *,
                 training=True, n_class=3, batch_size=2):
    del s_label, alpha        # ReverseLayerF / labels only matter in backward
    _, c_in, hh, ww = source.shape
    rows = _round_up(2 * batch_size, 8)
    spatial = hh * ww
    k = int(round(packed["A"].shape[0] ** 0.5))
    c_out = packed["cb"].shape[0] // rows
    feat_dim = packed["bn_b"].shape[-1]
    shifts = tuple(di * ww + dj for di in range(k) for dj in range(k))
    spad = _round_up(spatial + shifts[-1], 8)
    assert n_class <= 8 and 16 + 8 * n_class <= feat_dim

    # Concatenate source/target, pad the sample axis to a full sublane tile and
    # present the conv input as (spatial, sample*channel) so the 3x3 taps
    # become static sublane slices inside the kernel (no host-side im2col).
    x = jnp.concatenate([source, target], axis=0)
    x = jnp.pad(x, ((0, rows - 2 * batch_size), (0, 0), (0, 0), (0, 0)))
    x = x.reshape(rows * c_in, spatial).T                   # (spatial, rows*c_in)
    x = jnp.pad(x, ((0, spad - spatial), (0, 0)))

    kernel = functools.partial(_daan_fused_kernel, n_class=n_class,
                               shifts=shifts, c_out=c_out, rows=rows,
                               spatial=spatial)
    # TODO(synk): if batch_size ever scales up, add a row-tiled grid with
    # dimension_semantics=("parallel",) so v7x's second TensorCore is used.
    packed_out = pl.pallas_call(
        kernel,
        out_shape=jax.ShapeDtypeStruct((rows, feat_dim), jnp.float32),
        in_specs=[pl.BlockSpec(memory_space=pltpu.MemorySpace.VMEM)] * 19,
        out_specs=pl.BlockSpec(memory_space=pltpu.MemorySpace.VMEM),
    )(x, packed["A"], packed["cb"], packed["bn_w"], packed["bn_b"],
      packed["fc_w"], packed["fc_b"],
      packed["dom_w1"], packed["dom_b1"], packed["dom_w2"], packed["dom_b2"],
      packed["dom_w3"], packed["dom_b3"],
      packed["dci_w1"], packed["dci_b1"], packed["dci_w2"], packed["dci_b2"],
      packed["dci_w3"], packed["dci_b3"])

    b = batch_size
    logits = packed_out[:b, 0:n_class]                 # source_fc(source_share)
    if not training:
        return logits, 0, 0, [0] * n_class, [0] * n_class
    s_dom = packed_out[:b, 8:10]
    t_dom = packed_out[b:2 * b, 8:10]
    s_out = [packed_out[:b, 16 + 8 * c:18 + 8 * c] for c in range(n_class)]
    t_out = [packed_out[b:2 * b, 16 + 8 * c:18 + 8 * c] for c in range(n_class)]
    return logits, s_dom, t_dom, s_out, t_out


# ----------------------------------------------------------------------------
# Deterministic parameter init (shapes implied by the module definition)
# ----------------------------------------------------------------------------
def init_params(key, n_class=3, c_in=4, c_out=8, k=3, h=16, w=16):
    ho, wo = h - k + 1, w - k + 1
    flat_dim = c_out * ho * wo
    keys = jax.random.split(key, 20)

    def dense(kk, fan_in, fan_out):
        scale = 1.0 / jnp.sqrt(fan_in)
        return jax.random.uniform(kk, (fan_in, fan_out), jnp.float32, -scale, scale)

    p = {}
    p["conv_w"] = jax.random.normal(keys[0], (c_out, c_in, k, k), jnp.float32) * 0.1
    p["conv_b"] = jnp.zeros((c_out,), jnp.float32)
    p["bn_w"] = dense(keys[1], flat_dim, 128)
    p["bn_b"] = jnp.zeros((128,), jnp.float32)
    # source_fc: Linear(128, n_class)
    p["fc_w"] = dense(keys[2], 128, n_class)
    p["fc_b"] = jnp.zeros((1, n_class), jnp.float32)
    # domain_classifier: 128 -> 256 -> 256 -> 2
    p["dom_w1"] = dense(keys[3], 128, 256)
    p["dom_b1"] = jnp.zeros((1, 256), jnp.float32)
    p["dom_w2"] = dense(keys[4], 256, 256)
    p["dom_b2"] = jnp.zeros((1, 256), jnp.float32)
    p["dom_w3"] = dense(keys[5], 256, 2)
    p["dom_b3"] = jnp.zeros((1, 2), jnp.float32)
    # dcis: n_class local domain classifiers, stacked
    p["dci_w1"] = jnp.stack([dense(keys[6 + i], 128, 256) for i in range(n_class)])
    p["dci_b1"] = jnp.zeros((n_class, 1, 256), jnp.float32)
    p["dci_w2"] = jnp.stack([dense(keys[10 + i], 256, 256) for i in range(n_class)])
    p["dci_b2"] = jnp.zeros((n_class, 1, 256), jnp.float32)
    p["dci_w3"] = jnp.stack([dense(keys[14 + i], 256, 2) for i in range(n_class)])
    p["dci_b3"] = jnp.zeros((n_class, 1, 2), jnp.float32)
    return p


if __name__ == "__main__":
    n_class = 3
    batch_size = 2

    key = jax.random.PRNGKey(0)
    k_param, k_src, k_tgt = jax.random.split(key, 3)

    params = init_params(k_param, n_class=n_class)
    packed = pack_params(params, batch_size=batch_size)

    source = jax.random.normal(k_src, (batch_size, 4, 16, 16), jnp.float32)
    target = jax.random.normal(k_tgt, (batch_size, 4, 16, 16), jnp.float32)
    s_label = jnp.zeros((batch_size,), jnp.int32)   # unused by the forward pass

    logits, s_dom, t_dom, s_out, t_out = daan_forward(
        packed, source, target, s_label, 0.5,
        training=True, n_class=n_class, batch_size=batch_size)

    jax.block_until_ready((logits, s_dom, t_dom, s_out, t_out))

    assert logits.shape == (batch_size, n_class)
    assert s_dom.shape == (batch_size, 2) and t_dom.shape == (batch_size, 2)
    assert len(s_out) == n_class and all(o.shape == (batch_size, 2) for o in s_out)
    assert len(t_out) == n_class and all(o.shape == (batch_size, 2) for o in t_out)
    assert all(bool(jnp.all(jnp.isfinite(o))) for o in
               [logits, s_dom, t_dom] + s_out + t_out)

    print("KERNEL_OK")
</pallas_src>

<mosaic_0001>
module attributes {stable_mosaic.version = 11 : i64} {
  func.func @_daan_fused_kernel(%arg0: memref<296x32xf32, #tpu.memory_space<vmem>>, %arg1: memref<9x64x32xf32, #tpu.memory_space<vmem>>, %arg2: memref<64x1xf32, #tpu.memory_space<vmem>>, %arg3: memref<8x256x128xbf16, #tpu.memory_space<vmem>>, %arg4: memref<1x128xf32, #tpu.memory_space<vmem>>, %arg5: memref<128x3xf32, #tpu.memory_space<vmem>>, %arg6: memref<1x3xf32, #tpu.memory_space<vmem>>, %arg7: memref<128x256xbf16, #tpu.memory_space<vmem>>, %arg8: memref<1x256xf32, #tpu.memory_space<vmem>>, %arg9: memref<256x256xbf16, #tpu.memory_space<vmem>>, %arg10: memref<1x256xf32, #tpu.memory_space<vmem>>, %arg11: memref<256x2xbf16, #tpu.memory_space<vmem>>, %arg12: memref<1x2xf32, #tpu.memory_space<vmem>>, %arg13: memref<3x128x256xbf16, #tpu.memory_space<vmem>>, %arg14: memref<3x1x256xf32, #tpu.memory_space<vmem>>, %arg15: memref<3x256x256xbf16, #tpu.memory_space<vmem>>, %arg16: memref<3x1x256xf32, #tpu.memory_space<vmem>>, %arg17: memref<3x256x2xbf16, #tpu.memory_space<vmem>>, %arg18: memref<3x1x2xf32, #tpu.memory_space<vmem>>, %arg19: memref<8x128xf32, #tpu.memory_space<vmem>>) attributes {dimension_semantics = [], scalar_prefetch = 0 : i64, scratch_operands = 0 : i64, tpu.core_type = #tpu.core_type<tc>} {
    %cst = arith.constant 0.000000e+00 : f32
    %0 = vector.broadcast %cst : f32 to vector<64x256xf32>
    %c0 = arith.constant 0 : index
    %c0_0 = arith.constant 0 : index
    %1 = vector.load %arg0[%c0, %c0_0] : memref<296x32xf32, #tpu.memory_space<vmem>>, vector<256x32xf32>
    %c0_1 = arith.constant 0 : index
    %c0_2 = arith.constant 0 : index
    %c0_3 = arith.constant 0 : index
    %2 = vector.load %arg1[%c0_1, %c0_2, %c0_3] : memref<9x64x32xf32, #tpu.memory_space<vmem>>, vector<1x64x32xf32>
    %3 = vector.shape_cast %2 : vector<1x64x32xf32> to vector<64x32xf32>
    %cst_4 = arith.constant dense<0.000000e+00> : vector<64x256xf32>
    %4 = tpu.matmul %3, %1, %cst_4 {dimension_numbers = #tpu.dot_dimension_numbers<[1], [1], [0], [0], [0, 0, 1, 0], [], []>} : vector<64x32xf32>, vector<256x32xf32>, vector<64x256xf32> -> vector<64x256xf32>
    %5 = arith.addf %0, %4 : vector<64x256xf32>
    %c1 = arith.constant 1 : index
    %c0_5 = arith.constant 0 : index
    %6 = vector.load %arg0[%c1, %c0_5] : memref<296x32xf32, #tpu.memory_space<vmem>>, vector<256x32xf32>
    %c1_6 = arith.constant 1 : index
    %c0_7 = arith.constant 0 : index
    %c0_8 = arith.constant 0 : index
    %7 = vector.load %arg1[%c1_6, %c0_7, %c0_8] : memref<9x64x32xf32, #tpu.memory_space<vmem>>, vector<1x64x32xf32>
    %8 = vector.shape_cast %7 : vector<1x64x32xf32> to vector<64x32xf32>
    %cst_9 = arith.constant dense<0.000000e+00> : vector<64x256xf32>
    %9 = tpu.matmul %8, %6, %cst_9 {dimension_numbers = #tpu.dot_dimension_numbers<[1], [1], [0], [0], [0, 0, 1, 0], [], []>} : vector<64x32xf32>, vector<256x32xf32>, vector<64x256xf32> -> vector<64x256xf32>
    %10 = arith.addf %5, %9 : vector<64x256xf32>
    %c2 = arith.constant 2 : index
    %c0_10 = arith.constant 0 : index
    %11 = vector.load %arg0[%c2, %c0_10] : memref<296x32xf32, #tpu.memory_space<vmem>>, vector<256x32xf32>
    %c2_11 = arith.constant 2 : index
    %c0_12 = arith.constant 0 : index
    %c0_13 = arith.constant 0 : index
    %12 = vector.load %arg1[%c2_11, %c0_12, %c0_13] : memref<9x64x32xf32, #tpu.memory_space<vmem>>, vector<1x64x32xf32>
    %13 = vector.shape_cast %12 : vector<1x64x32xf32> to vector<64x32xf32>
    %cst_14 = arith.constant dense<0.000000e+00> : vector<64x256xf32>
    %14 = tpu.matmul %13, %11, %cst_14 {dimension_numbers = #tpu.dot_dimension_numbers<[1], [1], [0], [0], [0, 0, 1, 0], [], []>} : vector<64x32xf32>, vector<256x32xf32>, vector<64x256xf32> -> vector<64x256xf32>
    %15 = arith.addf %10, %14 : vector<64x256xf32>
    %c16 = arith.constant 16 : index
    %c0_15 = arith.constant 0 : index
    %16 = vector.load %arg0[%c16, %c0_15] : memref<296x32xf32, #tpu.memory_space<vmem>>, vector<256x32xf32>
    %c3 = arith.constant 3 : index
    %c0_16 = arith.constant 0 : index
    %c0_17 = arith.constant 0 : index
    %17 = vector.load %arg1[%c3, %c0_16, %c0_17] : memref<9x64x32xf32, #tpu.memory_space<vmem>>, vector<1x64x32xf32>
    %18 = vector.shape_cast %17 : vector<1x64x32xf32> to vector<64x32xf32>
    %cst_18 = arith.constant dense<0.000000e+00> : vector<64x256xf32>
    %19 = tpu.matmul %18, %16, %cst_18 {dimension_numbers = #tpu.dot_dimension_numbers<[1], [1], [0], [0], [0, 0, 1, 0], [], []>} : vector<64x32xf32>, vector<256x32xf32>, vector<64x256xf32> -> vector<64x256xf32>
    %20 = arith.addf %15, %19 : vector<64x256xf32>
    %c17 = arith.constant 17 : index
    %c0_19 = arith.constant 0 : index
    %21 = vector.load %arg0[%c17, %c0_19] : memref<296x32xf32, #tpu.memory_space<vmem>>, vector<256x32xf32>
    %c4 = arith.constant 4 : index
    %c0_20 = arith.constant 0 : index
    %c0_21 = arith.constant 0 : index
    %22 = vector.load %arg1[%c4, %c0_20, %c0_21] : memref<9x64x32xf32, #tpu.memory_space<vmem>>, vector<1x64x32xf32>
    %23 = vector.shape_cast %22 : vector<1x64x32xf32> to vector<64x32xf32>
    %cst_22 = arith.constant dense<0.000000e+00> : vector<64x256xf32>
    %24 = tpu.matmul %23, %21, %cst_22 {dimension_numbers = #tpu.dot_dimension_numbers<[1], [1], [0], [0], [0, 0, 1, 0], [], []>} : vector<64x32xf32>, vector<256x32xf32>, vector<64x256xf32> -> vector<64x256xf32>
    %25 = arith.addf %20, %24 : vector<64x256xf32>
    %c18 = arith.constant 18 : index
    %c0_23 = arith.constant 0 : index
    %26 = vector.load %arg0[%c18, %c0_23] : memref<296x32xf32, #tpu.memory_space<vmem>>, vector<256x32xf32>
    %c5 = arith.constant 5 : index
    %c0_24 = arith.constant 0 : index
    %c0_25 = arith.constant 0 : index
    %27 = vector.load %arg1[%c5, %c0_24, %c0_25] : memref<9x64x32xf32, #tpu.memory_space<vmem>>, vector<1x64x32xf32>
    %28 = vector.shape_cast %27 : vector<1x64x32xf32> to vector<64x32xf32>
    %cst_26 = arith.constant dense<0.000000e+00> : vector<64x256xf32>
    %29 = tpu.matmul %28, %26, %cst_26 {dimension_numbers = #tpu.dot_dimension_numbers<[1], [1], [0], [0], [0, 0, 1, 0], [], []>} : vector<64x32xf32>, vector<256x32xf32>, vector<64x256xf32> -> vector<64x256xf32>
    %30 = arith.addf %25, %29 : vector<64x256xf32>
    %c32 = arith.constant 32 : index
    %c0_27 = arith.constant 0 : index
    %31 = vector.load %arg0[%c32, %c0_27] : memref<296x32xf32, #tpu.memory_space<vmem>>, vector<256x32xf32>
    %c6 = arith.constant 6 : index
    %c0_28 = arith.constant 0 : index
    %c0_29 = arith.constant 0 : index
    %32 = vector.load %arg1[%c6, %c0_28, %c0_29] : memref<9x64x32xf32, #tpu.memory_space<vmem>>, vector<1x64x32xf32>
    %33 = vector.shape_cast %32 : vector<1x64x32xf32> to vector<64x32xf32>
    %cst_30 = arith.constant dense<0.000000e+00> : vector<64x256xf32>
    %34 = tpu.matmul %33, %31, %cst_30 {dimension_numbers = #tpu.dot_dimension_numbers<[1], [1], [0], [0], [0, 0, 1, 0], [], []>} : vector<64x32xf32>, vector<256x32xf32>, vector<64x256xf32> -> vector<64x256xf32>
    %35 = arith.addf %30, %34 : vector<64x256xf32>
    %c33 = arith.constant 33 : index
    %c0_31 = arith.constant 0 : index
    %36 = vector.load %arg0[%c33, %c0_31] : memref<296x32xf32, #tpu.memory_space<vmem>>, vector<256x32xf32>
    %c7 = arith.constant 7 : index
    %c0_32 = arith.constant 0 : index
    %c0_33 = arith.constant 0 : index
    %37 = vector.load %arg1[%c7, %c0_32, %c0_33] : memref<9x64x32xf32, #tpu.memory_space<vmem>>, vector<1x64x32xf32>
    %38 = vector.shape_cast %37 : vector<1x64x32xf32> to vector<64x32xf32>
    %cst_34 = arith.constant dense<0.000000e+00> : vector<64x256xf32>
    %39 = tpu.matmul %38, %36, %cst_34 {dimension_numbers = #tpu.dot_dimension_numbers<[1], [1], [0], [0], [0, 0, 1, 0], [], []>} : vector<64x32xf32>, vector<256x32xf32>, vector<64x256xf32> -> vector<64x256xf32>
    %40 = arith.addf %35, %39 : vector<64x256xf32>
    %c34 = arith.constant 34 : index
    %c0_35 = arith.constant 0 : index
    %41 = vector.load %arg0[%c34, %c0_35] : memref<296x32xf32, #tpu.memory_space<vmem>>, vector<256x32xf32>
    %c8 = arith.constant 8 : index
    %c0_36 = arith.constant 0 : index
    %c0_37 = arith.constant 0 : index
    %42 = vector.load %arg1[%c8, %c0_36, %c0_37] : memref<9x64x32xf32, #tpu.memory_space<vmem>>, vector<1x64x32xf32>
    %43 = vector.shape_cast %42 : vector<1x64x32xf32> to vector<64x32xf32>
    %cst_38 = arith.constant dense<0.000000e+00> : vector<64x256xf32>
    %44 = tpu.matmul %43, %41, %cst_38 {dimension_numbers = #tpu.dot_dimension_numbers<[1], [1], [0], [0], [0, 0, 1, 0], [], []>} : vector<64x32xf32>, vector<256x32xf32>, vector<64x256xf32> -> vector<64x256xf32>
    %45 = arith.addf %40, %44 : vector<64x256xf32>
    %c0_39 = arith.constant 0 : index
    %c0_40 = arith.constant 0 : index
    %46 = vector.load %arg2[%c0_39, %c0_40] : memref<64x1xf32, #tpu.memory_space<vmem>>, vector<64x1xf32>
    %47 = vector.broadcast %46 : vector<64x1xf32> to vector<64x256xf32>
    %48 = arith.addf %45, %47 : vector<64x256xf32>
    %cst_41 = arith.constant 0.000000e+00 : f32
    %49 = vector.broadcast %cst_41 : f32 to vector<64x256xf32>
    %50 = arith.maximumf %48, %49 : vector<64x256xf32>
    %cst_42 = arith.constant 0.000000e+00 : f32
    %51 = vector.broadcast %cst_42 : f32 to vector<8x128xf32>
    %52 = vector.extract_strided_slice %50 {offsets = [0, 0], sizes = [8, 256], strides = [1, 1]} : vector<64x256xf32> to vector<8x256xf32>
    %53 = arith.truncf %52 : vector<8x256xf32> to vector<8x256xbf16>
    %c0_43 = arith.constant 0 : index
    %c0_44 = arith.constant 0 : index
    %c0_45 = arith.constant 0 : index
    %54 = vector.load %arg3[%c0_43, %c0_44, %c0_45] : memref<8x256x128xbf16, #tpu.memory_space<vmem>>, vector<1x256x128xbf16>
    %55 = vector.shape_cast %54 : vector<1x256x128xbf16> to vector<256x128xbf16>
    %cst_46 = arith.constant dense<0.000000e+00> : vector<8x128xf32>
    %56 = tpu.matmul %53, %55, %cst_46 {dimension_numbers = #tpu.dot_dimension_numbers<[1], [0], [0], [1], [0, 0, 1, 1], [], []>} : vector<8x256xbf16>, vector<256x128xbf16>, vector<8x128xf32> -> vector<8x128xf32>
    %57 = arith.addf %51, %56 : vector<8x128xf32>
    %58 = vector.extract_strided_slice %50 {offsets = [8, 0], sizes = [8, 256], strides = [1, 1]} : vector<64x256xf32> to vector<8x256xf32>
    %59 = arith.truncf %58 : vector<8x256xf32> to vector<8x256xbf16>
    %c1_47 = arith.constant 1 : index
    %c0_48 = arith.constant 0 : index
    %c0_49 = arith.constant 0 : index
    %60 = vector.load %arg3[%c1_47, %c0_48, %c0_49] : memref<8x256x128xbf16, #tpu.memory_space<vmem>>, vector<1x256x128xbf16>
    %61 = vector.shape_cast %60 : vector<1x256x128xbf16> to vector<256x128xbf16>
    %cst_50 = arith.constant dense<0.000000e+00> : vector<8x128xf32>
    %62 = tpu.matmul %59, %61, %cst_50 {dimension_numbers = #tpu.dot_dimension_numbers<[1], [0], [0], [1], [0, 0, 1, 1], [], []>} : vector<8x256xbf16>, vector<256x128xbf16>, vector<8x128xf32> -> vector<8x128xf32>
    %63 = arith.addf %57, %62 : vector<8x128xf32>
    %64 = vector.extract_strided_slice %50 {offsets = [16, 0], sizes = [8, 256], strides = [1, 1]} : vector<64x256xf32> to vector<8x256xf32>
    %65 = arith.truncf %64 : vector<8x256xf32> to vector<8x256xbf16>
    %c2_51 = arith.constant 2 : index
    %c0_52 = arith.constant 0 : index
    %c0_53 = arith.constant 0 : index
    %66 = vector.load %arg3[%c2_51, %c0_52, %c0_53] : memref<8x256x128xbf16, #tpu.memory_space<vmem>>, vector<1x256x128xbf16>
    %67 = vector.shape_cast %66 : vector<1x256x128xbf16> to vector<256x128xbf16>
    %cst_54 = arith.constant dense<0.000000e+00> : vector<8x128xf32>
    %68 = tpu.matmul %65, %67, %cst_54 {dimension_numbers = #tpu.dot_dimension_numbers<[1], [0], [0], [1], [0, 0, 1, 1], [], []>} : vector<8x256xbf16>, vector<256x128xbf16>, vector<8x128xf32> -> vector<8x128xf32>
    %69 = arith.addf %63, %68 : vector<8x128xf32>
    %70 = vector.extract_strided_slice %50 {offsets = [24, 0], sizes = [8, 256], strides = [1, 1]} : vector<64x256xf32> to vector<8x256xf32>
    %71 = arith.truncf %70 : vector<8x256xf32> to vector<8x256xbf16>
    %c3_55 = arith.constant 3 : index
    %c0_56 = arith.constant 0 : index
    %c0_57 = arith.constant 0 : index
    %72 = vector.load %arg3[%c3_55, %c0_56, %c0_57] : memref<8x256x128xbf16, #tpu.memory_space<vmem>>, vector<1x256x128xbf16>
    %73 = vector.shape_cast %72 : vector<1x256x128xbf16> to vector<256x128xbf16>
    %cst_58 = arith.constant dense<0.000000e+00> : vector<8x128xf32>
    %74 = tpu.matmul %71, %73, %cst_58 {dimension_numbers = #tpu.dot_dimension_numbers<[1], [0], [0], [1], [0, 0, 1, 1], [], []>} : vector<8x256xbf16>, vector<256x128xbf16>, vector<8x128xf32> -> vector<8x128xf32>
    %75 = arith.addf %69, %74 : vector<8x128xf32>
    %76 = vector.extract_strided_slice %50 {offsets = [32, 0], sizes = [8, 256], strides = [1, 1]} : vector<64x256xf32> to vector<8x256xf32>
    %77 = arith.truncf %76 : vector<8x256xf32> to vector<8x256xbf16>
    %c4_59 = arith.constant 4 : index
    %c0_60 = arith.constant 0 : index
    %c0_61 = arith.constant 0 : index
    %78 = vector.load %arg3[%c4_59, %c0_60, %c0_61] : memref<8x256x128xbf16, #tpu.memory_space<vmem>>, vector<1x256x128xbf16>
    %79 = vector.shape_cast %78 : vector<1x256x128xbf16> to vector<256x128xbf16>
    %cst_62 = arith.constant dense<0.000000e+00> : vector<8x128xf32>
    %80 = tpu.matmul %77, %79, %cst_62 {dimension_numbers = #tpu.dot_dimension_numbers<[1], [0], [0], [1], [0, 0, 1, 1], [], []>} : vector<8x256xbf16>, vector<256x128xbf16>, vector<8x128xf32> -> vector<8x128xf32>
    %81 = arith.addf %75, %80 : vector<8x128xf32>
    %82 = vector.extract_strided_slice %50 {offsets = [40, 0], sizes = [8, 256], strides = [1, 1]} : vector<64x256xf32> to vector<8x256xf32>
    %83 = arith.truncf %82 : vector<8x256xf32> to vector<8x256xbf16>
    %c5_63 = arith.constant 5 : index
    %c0_64 = arith.constant 0 : index
    %c0_65 = arith.constant 0 : index
    %84 = vector.load %arg3[%c5_63, %c0_64, %c0_65] : memref<8x256x128xbf16, #tpu.memory_space<vmem>>, vector<1x256x128xbf16>
    %85 = vector.shape_cast %84 : vector<1x256x128xbf16> to vector<256x128xbf16>
    %cst_66 = arith.constant dense<0.000000e+00> : vector<8x128xf32>
    %86 = tpu.matmul %83, %85, %cst_66 {dimension_numbers = #tpu.dot_dimension_numbers<[1], [0], [0], [1], [0, 0, 1, 1], [], []>} : vector<8x256xbf16>, vector<256x128xbf16>, vector<8x128xf32> -> vector<8x128xf32>
    %87 = arith.addf %81, %86 : vector<8x128xf32>
    %88 = vector.extract_strided_slice %50 {offsets = [48, 0], sizes = [8, 256], strides = [1, 1]} : vector<64x256xf32> to vector<8x256xf32>
    %89 = arith.truncf %88 : vector<8x256xf32> to vector<8x256xbf16>
    %c6_67 = arith.constant 6 : index
    %c0_68 = arith.constant 0 : index
    %c0_69 = arith.constant 0 : index
    %90 = vector.load %arg3[%c6_67, %c0_68, %c0_69] : memref<8x256x128xbf16, #tpu.memory_space<vmem>>, vector<1x256x128xbf16>
    %91 = vector.shape_cast %90 : vector<1x256x128xbf16> to vector<256x128xbf16>
    %cst_70 = arith.constant dense<0.000000e+00> : vector<8x128xf32>
    %92 = tpu.matmul %89, %91, %cst_70 {dimension_numbers = #tpu.dot_dimension_numbers<[1], [0], [0], [1], [0, 0, 1, 1], [], []>} : vector<8x256xbf16>, vector<256x128xbf16>, vector<8x128xf32> -> vector<8x128xf32>
    %93 = arith.addf %87, %92 : vector<8x128xf32>
    %94 = vector.extract_strided_slice %50 {offsets = [56, 0], sizes = [8, 256], strides = [1, 1]} : vector<64x256xf32> to vector<8x256xf32>
    %95 = arith.truncf %94 : vector<8x256xf32> to vector<8x256xbf16>
    %c7_71 = arith.constant 7 : index
    %c0_72 = arith.constant 0 : index
    %c0_73 = arith.constant 0 : index
    %96 = vector.load %arg3[%c7_71, %c0_72, %c0_73] : memref<8x256x128xbf16, #tpu.memory_space<vmem>>, vector<1x256x128xbf16>
    %97 = vector.shape_cast %96 : vector<1x256x128xbf16> to vector<256x128xbf16>
    %cst_74 = arith.constant dense<0.000000e+00> : vector<8x128xf32>
    %98 = tpu.matmul %95, %97, %cst_74 {dimension_numbers = #tpu.dot_dimension_numbers<[1], [0], [0], [1], [0, 0, 1, 1], [], []>} : vector<8x256xbf16>, vector<256x128xbf16>, vector<8x128xf32> -> vector<8x128xf32>
    %99 = arith.addf %93, %98 : vector<8x128xf32>
    %c0_75 = arith.constant 0 : index
    %c0_76 = arith.constant 0 : index
    %100 = vector.load %arg4[%c0_75, %c0_76] : memref<1x128xf32, #tpu.memory_space<vmem>>, vector<1x128xf32>
    %101 = vector.broadcast %100 : vector<1x128xf32> to vector<8x128xf32>
    %102 = arith.addf %99, %101 : vector<8x128xf32>
    %cst_77 = arith.constant 0.000000e+00 : f32
    %103 = vector.broadcast %cst_77 : f32 to vector<8x128xf32>
    %104 = arith.maximumf %102, %103 : vector<8x128xf32>
    %c0_78 = arith.constant 0 : index
    %c0_79 = arith.constant 0 : index
    %105 = vector.load %arg5[%c0_78, %c0_79] : memref<128x3xf32, #tpu.memory_space<vmem>>, vector<128x3xf32>
    %cst_80 = arith.constant dense<0.000000e+00> : vector<8x3xf32>
    %106 = tpu.matmul %104, %105, %cst_80 {dimension_numbers = #tpu.dot_dimension_numbers<[1], [0], [0], [1], [0, 0, 1, 1], [], []>} : vector<8x128xf32>, vector<128x3xf32>, vector<8x3xf32> -> vector<8x3xf32>
    %c0_81 = arith.constant 0 : index
    %c0_82 = arith.constant 0 : index
    %107 = vector.load %arg6[%c0_81, %c0_82] : memref<1x3xf32, #tpu.memory_space<vmem>>, vector<1x3xf32>
    %108 = vector.broadcast %107 : vector<1x3xf32> to vector<8x3xf32>
    %109 = arith.addf %106, %108 : vector<8x3xf32>
    %cst_83 = arith.constant dense<0xFF800000> : vector<8xf32>
    %110 = vector.multi_reduction <maximumf>, %109, %cst_83 [1] : vector<8x3xf32> to vector<8xf32>
    %111 = vector.shape_cast %110 : vector<8xf32> to vector<8x1xf32>
    %112 = vector.broadcast %111 : vector<8x1xf32> to vector<8x3xf32>
    %113 = arith.subf %109, %112 : vector<8x3xf32>
    %114 = math.exp %113 : vector<8x3xf32>
    %cst_84 = arith.constant dense<0.000000e+00> : vector<8xf32>
    %115 = vector.multi_reduction <add>, %114, %cst_84 [1] : vector<8x3xf32> to vector<8xf32>
    %116 = vector.shape_cast %115 : vector<8xf32> to vector<8x1xf32>
    %117 = tpu.reciprocal %116 {approx = true} : vector<8x1xf32> -> vector<8x1xf32>
    %118 = vector.broadcast %117 : vector<8x1xf32> to vector<8x3xf32>
    %119 = arith.mulf %114, %118 : vector<8x3xf32>
    %120 = arith.truncf %104 : vector<8x128xf32> to vector<8x128xbf16>
    %c0_85 = arith.constant 0 : index
    %c0_86 = arith.constant 0 : index
    %121 = vector.load %arg7[%c0_85, %c0_86] : memref<128x256xbf16, #tpu.memory_space<vmem>>, vector<128x256xbf16>
    %c0_87 = arith.constant 0 : index
    %c0_88 = arith.constant 0 : index
    %122 = vector.load %arg8[%c0_87, %c0_88] : memref<1x256xf32, #tpu.memory_space<vmem>>, vector<1x256xf32>
    %c0_89 = arith.constant 0 : index
    %c0_90 = arith.constant 0 : index
    %123 = vector.load %arg9[%c0_89, %c0_90] : memref<256x256xbf16, #tpu.memory_space<vmem>>, vector<256x256xbf16>
    %c0_91 = arith.constant 0 : index
    %c0_92 = arith.constant 0 : index
    %124 = vector.load %arg10[%c0_91, %c0_92] : memref<1x256xf32, #tpu.memory_space<vmem>>, vector<1x256xf32>
    %c0_93 = arith.constant 0 : index
    %c0_94 = arith.constant 0 : index
    %125 = vector.load %arg11[%c0_93, %c0_94] : memref<256x2xbf16, #tpu.memory_space<vmem>>, vector<256x2xbf16>
    %c0_95 = arith.constant 0 : index
    %c0_96 = arith.constant 0 : index
    %126 = vector.load %arg12[%c0_95, %c0_96] : memref<1x2xf32, #tpu.memory_space<vmem>>, vector<1x2xf32>
    %cst_97 = arith.constant dense<0.000000e+00> : vector<8x256xf32>
    %127 = tpu.matmul %120, %121, %cst_97 {dimension_numbers = #tpu.dot_dimension_numbers<[1], [0], [0], [1], [0, 0, 1, 1], [], []>} : vector<8x128xbf16>, vector<128x256xbf16>, vector<8x256xf32> -> vector<8x256xf32>
    %128 = vector.broadcast %122 : vector<1x256xf32> to vector<8x256xf32>
    %129 = arith.addf %127, %128 : vector<8x256xf32>
    %cst_98 = arith.constant 0.000000e+00 : f32
    %130 = vector.broadcast %cst_98 : f32 to vector<8x256xf32>
    %131 = arith.maximumf %129, %130 : vector<8x256xf32>
    %132 = arith.truncf %131 : vector<8x256xf32> to vector<8x256xbf16>
    %cst_99 = arith.constant dense<0.000000e+00> : vector<8x256xf32>
    %133 = tpu.matmul %132, %123, %cst_99 {dimension_numbers = #tpu.dot_dimension_numbers<[1], [0], [0], [1], [0, 0, 1, 1], [], []>} : vector<8x256xbf16>, vector<256x256xbf16>, vector<8x256xf32> -> vector<8x256xf32>
    %134 = vector.broadcast %124 : vector<1x256xf32> to vector<8x256xf32>
    %135 = arith.addf %133, %134 : vector<8x256xf32>
    %cst_100 = arith.constant 0.000000e+00 : f32
    %136 = vector.broadcast %cst_100 : f32 to vector<8x256xf32>
    %137 = arith.maximumf %135, %136 : vector<8x256xf32>
    %138 = arith.truncf %137 : vector<8x256xf32> to vector<8x256xbf16>
    %cst_101 = arith.constant dense<0.000000e+00> : vector<8x2xf32>
    %139 = tpu.matmul %138, %125, %cst_101 {dimension_numbers = #tpu.dot_dimension_numbers<[1], [0], [0], [1], [0, 0, 1, 1], [], []>} : vector<8x256xbf16>, vector<256x2xbf16>, vector<8x2xf32> -> vector<8x2xf32>
    %140 = vector.broadcast %126 : vector<1x2xf32> to vector<8x2xf32>
    %141 = arith.addf %139, %140 : vector<8x2xf32>
    %cst_102 = arith.constant 0.000000e+00 : f32
    %142 = vector.broadcast %cst_102 : f32 to vector<8x128xf32>
    %c0_103 = arith.constant 0 : index
    %c0_104 = arith.constant 0 : index
    %143 = vector.load %arg19[%c0_103, %c0_104] : memref<8x128xf32, #tpu.memory_space<vmem>>, vector<8x128xf32>
    tpu.vector_store %arg19[%c0_103, %c0_104], %142 {strides = array<i32>} : memref<8x128xf32, #tpu.memory_space<vmem>>, vector<8x128xf32>,
    %c0_105 = arith.constant 0 : index
    %c0_106 = arith.constant 0 : index
    %144 = vector.load %arg19[%c0_105, %c0_106] : memref<8x128xf32, #tpu.memory_space<vmem>>, vector<8x3xf32>
    tpu.vector_store %arg19[%c0_105, %c0_106], %109 {strides = array<i32>} : memref<8x128xf32, #tpu.memory_space<vmem>>, vector<8x3xf32>,
    %c0_107 = arith.constant 0 : index
    %c8_108 = arith.constant 8 : index
    %145 = vector.load %arg19[%c0_107, %c8_108] : memref<8x128xf32, #tpu.memory_space<vmem>>, vector<8x2xf32>
    tpu.vector_store %arg19[%c0_107, %c8_108], %141 {strides = array<i32>} : memref<8x128xf32, #tpu.memory_space<vmem>>, vector<8x2xf32>,
    %146 = vector.extract_strided_slice %119 {offsets = [0, 0], sizes = [8, 1], strides = [1, 1]} : vector<8x3xf32> to vector<8x1xf32>
    %147 = vector.broadcast %146 : vector<8x1xf32> to vector<8x128xf32>
    %148 = arith.mulf %147, %104 : vector<8x128xf32>
    %149 = arith.truncf %148 : vector<8x128xf32> to vector<8x128xbf16>
    %c0_109 = arith.constant 0 : index
    %c0_110 = arith.constant 0 : index
    %c0_111 = arith.constant 0 : index
    %150 = vector.load %arg13[%c0_109, %c0_110, %c0_111] : memref<3x128x256xbf16, #tpu.memory_space<vmem>>, vector<1x128x256xbf16>
    %151 = vector.shape_cast %150 : vector<1x128x256xbf16> to vector<128x256xbf16>
    %c0_112 = arith.constant 0 : index
    %c0_113 = arith.constant 0 : index
    %c0_114 = arith.constant 0 : index
    %152 = vector.load %arg14[%c0_112, %c0_113, %c0_114] : memref<3x1x256xf32, #tpu.memory_space<vmem>>, vector<1x1x256xf32>
    %153 = vector.shape_cast %152 : vector<1x1x256xf32> to vector<1x256xf32>
    %c0_115 = arith.constant 0 : index
    %c0_116 = arith.constant 0 : index
    %c0_117 = arith.constant 0 : index
    %154 = vector.load %arg15[%c0_115, %c0_116, %c0_117] : memref<3x256x256xbf16, #tpu.memory_space<vmem>>, vector<1x256x256xbf16>
    %155 = vector.shape_cast %154 : vector<1x256x256xbf16> to vector<256x256xbf16>
    %c0_118 = arith.constant 0 : index
    %c0_119 = arith.constant 0 : index
    %c0_120 = arith.constant 0 : index
    %156 = vector.load %arg16[%c0_118, %c0_119, %c0_120] : memref<3x1x256xf32, #tpu.memory_space<vmem>>, vector<1x1x256xf32>
    %157 = vector.shape_cast %156 : vector<1x1x256xf32> to vector<1x256xf32>
    %c0_121 = arith.constant 0 : index
    %c0_122 = arith.constant 0 : index
    %c0_123 = arith.constant 0 : index
    %158 = vector.load %arg17[%c0_121, %c0_122, %c0_123] : memref<3x256x2xbf16, #tpu.memory_space<vmem>>, vector<1x256x2xbf16>
    %159 = vector.shape_cast %158 : vector<1x256x2xbf16> to vector<256x2xbf16>
    %c0_124 = arith.constant 0 : index
    %c0_125 = arith.constant 0 : index
    %c0_126 = arith.constant 0 : index
    %160 = vector.load %arg18[%c0_124, %c0_125, %c0_126] : memref<3x1x2xf32, #tpu.memory_space<vmem>>, vector<1x1x2xf32>
    %161 = vector.shape_cast %160 : vector<1x1x2xf32> to vector<1x2xf32>
    %cst_127 = arith.constant dense<0.000000e+00> : vector<8x256xf32>
    %162 = tpu.matmul %149, %151, %cst_127 {dimension_numbers = #tpu.dot_dimension_numbers<[1], [0], [0], [1], [0, 0, 1, 1], [], []>} : vector<8x128xbf16>, vector<128x256xbf16>, vector<8x256xf32> -> vector<8x256xf32>
    %163 = vector.broadcast %153 : vector<1x256xf32> to vector<8x256xf32>
    %164 = arith.addf %162, %163 : vector<8x256xf32>
    %cst_128 = arith.constant 0.000000e+00 : f32
    %165 = vector.broadcast %cst_128 : f32 to vector<8x256xf32>
    %166 = arith.maximumf %164, %165 : vector<8x256xf32>
    %167 = arith.truncf %166 : vector<8x256xf32> to vector<8x256xbf16>
    %cst_129 = arith.constant dense<0.000000e+00> : vector<8x256xf32>
    %168 = tpu.matmul %167, %155, %cst_129 {dimension_numbers = #tpu.dot_dimension_numbers<[1], [0], [0], [1], [0, 0, 1, 1], [], []>} : vector<8x256xbf16>, vector<256x256xbf16>, vector<8x256xf32> -> vector<8x256xf32>
    %169 = vector.broadcast %157 : vector<1x256xf32> to vector<8x256xf32>
    %170 = arith.addf %168, %169 : vector<8x256xf32>
    %cst_130 = arith.constant 0.000000e+00 : f32
    %171 = vector.broadcast %cst_130 : f32 to vector<8x256xf32>
    %172 = arith.maximumf %170, %171 : vector<8x256xf32>
    %173 = arith.truncf %172 : vector<8x256xf32> to vector<8x256xbf16>
    %cst_131 = arith.constant dense<0.000000e+00> : vector<8x2xf32>
    %174 = tpu.matmul %173, %159, %cst_131 {dimension_numbers = #tpu.dot_dimension_numbers<[1], [0], [0], [1], [0, 0, 1, 1], [], []>} : vector<8x256xbf16>, vector<256x2xbf16>, vector<8x2xf32> -> vector<8x2xf32>
    %175 = vector.broadcast %161 : vector<1x2xf32> to vector<8x2xf32>
    %176 = arith.addf %174, %175 : vector<8x2xf32>
    %c0_132 = arith.constant 0 : index
    %c16_133 = arith.constant 16 : index
    %177 = vector.load %arg19[%c0_132, %c16_133] : memref<8x128xf32, #tpu.memory_space<vmem>>, vector<8x2xf32>
    tpu.vector_store %arg19[%c0_132, %c16_133], %176 {strides = array<i32>} : memref<8x128xf32, #tpu.memory_space<vmem>>, vector<8x2xf32>,
    %178 = vector.extract_strided_slice %119 {offsets = [0, 1], sizes = [8, 1], strides = [1, 1]} : vector<8x3xf32> to vector<8x1xf32>
    %179 = vector.broadcast %178 : vector<8x1xf32> to vector<8x128xf32>
    %180 = arith.mulf %179, %104 : vector<8x128xf32>
    %181 = arith.truncf %180 : vector<8x128xf32> to vector<8x128xbf16>
    %c1_134 = arith.constant 1 : index
    %c0_135 = arith.constant 0 : index
    %c0_136 = arith.constant 0 : index
    %182 = vector.load %arg13[%c1_134, %c0_135, %c0_136] : memref<3x128x256xbf16, #tpu.memory_space<vmem>>, vector<1x128x256xbf16>
    %183 = vector.shape_cast %182 : vector<1x128x256xbf16> to vector<128x256xbf16>
    %c1_137 = arith.constant 1 : index
    %c0_138 = arith.constant 0 : index
    %c0_139 = arith.constant 0 : index
    %184 = vector.load %arg14[%c1_137, %c0_138, %c0_139] : memref<3x1x256xf32, #tpu.memory_space<vmem>>, vector<1x1x256xf32>
    %185 = vector.shape_cast %184 : vector<1x1x256xf32> to vector<1x256xf32>
    %c1_140 = arith.constant 1 : index
    %c0_141 = arith.constant 0 : index
    %c0_142 = arith.constant 0 : index
    %186 = vector.load %arg15[%c1_140, %c0_141, %c0_142] : memref<3x256x256xbf16, #tpu.memory_space<vmem>>, vector<1x256x256xbf16>
    %187 = vector.shape_cast %186 : vector<1x256x256xbf16> to vector<256x256xbf16>
    %c1_143 = arith.constant 1 : index
    %c0_144 = arith.constant 0 : index
    %c0_145 = arith.constant 0 : index
    %188 = vector.load %arg16[%c1_143, %c0_144, %c0_145] : memref<3x1x256xf32, #tpu.memory_space<vmem>>, vector<1x1x256xf32>
    %189 = vector.shape_cast %188 : vector<1x1x256xf32> to vector<1x256xf32>
    %c1_146 = arith.constant 1 : index
    %c0_147 = arith.constant 0 : index
    %c0_148 = arith.constant 0 : index
    %190 = vector.load %arg17[%c1_146, %c0_147, %c0_148] : memref<3x256x2xbf16, #tpu.memory_space<vmem>>, vector<1x256x2xbf16>
    %191 = vector.shape_cast %190 : vector<1x256x2xbf16> to vector<256x2xbf16>
    %c1_149 = arith.constant 1 : index
    %c0_150 = arith.constant 0 : index
    %c0_151 = arith.constant 0 : index
    %192 = vector.load %arg18[%c1_149, %c0_150, %c0_151] : memref<3x1x2xf32, #tpu.memory_space<vmem>>, vector<1x1x2xf32>
    %193 = vector.shape_cast %192 : vector<1x1x2xf32> to vector<1x2xf32>
    %cst_152 = arith.constant dense<0.000000e+00> : vector<8x256xf32>
    %194 = tpu.matmul %181, %183, %cst_152 {dimension_numbers = #tpu.dot_dimension_numbers<[1], [0], [0], [1], [0, 0, 1, 1], [], []>} : vector<8x128xbf16>, vector<128x256xbf16>, vector<8x256xf32> -> vector<8x256xf32>
    %195 = vector.broadcast %185 : vector<1x256xf32> to vector<8x256xf32>
    %196 = arith.addf %194, %195 : vector<8x256xf32>
    %cst_153 = arith.constant 0.000000e+00 : f32
    %197 = vector.broadcast %cst_153 : f32 to vector<8x256xf32>
    %198 = arith.maximumf %196, %197 : vector<8x256xf32>
    %199 = arith.truncf %198 : vector<8x256xf32> to vector<8x256xbf16>
    %cst_154 = arith.constant dense<0.000000e+00> : vector<8x256xf32>
    %200 = tpu.matmul %199, %187, %cst_154 {dimension_numbers = #tpu.dot_dimension_numbers<[1], [0], [0], [1], [0, 0, 1, 1], [], []>} : vector<8x256xbf16>, vector<256x256xbf16>, vector<8x256xf32> -> vector<8x256xf32>
    %201 = vector.broadcast %189 : vector<1x256xf32> to vector<8x256xf32>
    %202 = arith.addf %200, %201 : vector<8x256xf32>
    %cst_155 = arith.constant 0.000000e+00 : f32
    %203 = vector.broadcast %cst_155 : f32 to vector<8x256xf32>
    %204 = arith.maximumf %202, %203 : vector<8x256xf32>
    %205 = arith.truncf %204 : vector<8x256xf32> to vector<8x256xbf16>
    %cst_156 = arith.constant dense<0.000000e+00> : vector<8x2xf32>
    %206 = tpu.matmul %205, %191, %cst_156 {dimension_numbers = #tpu.dot_dimension_numbers<[1], [0], [0], [1], [0, 0, 1, 1], [], []>} : vector<8x256xbf16>, vector<256x2xbf16>, vector<8x2xf32> -> vector<8x2xf32>
    %207 = vector.broadcast %193 : vector<1x2xf32> to vector<8x2xf32>
    %208 = arith.addf %206, %207 : vector<8x2xf32>
    %c0_157 = arith.constant 0 : index
    %c24 = arith.constant 24 : index
    %209 = vector.load %arg19[%c0_157, %c24] : memref<8x128xf32, #tpu.memory_space<vmem>>, vector<8x2xf32>
    tpu.vector_store %arg19[%c0_157, %c24], %208 {strides = array<i32>} : memref<8x128xf32, #tpu.memory_space<vmem>>, vector<8x2xf32>,
    %210 = vector.extract_strided_slice %119 {offsets = [0, 2], sizes = [8, 1], strides = [1, 1]} : vector<8x3xf32> to vector<8x1xf32>
    %211 = vector.broadcast %210 : vector<8x1xf32> to vector<8x128xf32>
    %212 = arith.mulf %211, %104 : vector<8x128xf32>
    %213 = arith.truncf %212 : vector<8x128xf32> to vector<8x128xbf16>
    %c2_158 = arith.constant 2 : index
    %c0_159 = arith.constant 0 : index
    %c0_160 = arith.constant 0 : index
    %214 = vector.load %arg13[%c2_158, %c0_159, %c0_160] : memref<3x128x256xbf16, #tpu.memory_space<vmem>>, vector<1x128x256xbf16>
    %215 = vector.shape_cast %214 : vector<1x128x256xbf16> to vector<128x256xbf16>
    %c2_161 = arith.constant 2 : index
    %c0_162 = arith.constant 0 : index
    %c0_163 = arith.constant 0 : index
    %216 = vector.load %arg14[%c2_161, %c0_162, %c0_163] : memref<3x1x256xf32, #tpu.memory_space<vmem>>, vector<1x1x256xf32>
    %217 = vector.shape_cast %216 : vector<1x1x256xf32> to vector<1x256xf32>
    %c2_164 = arith.constant 2 : index
    %c0_165 = arith.constant 0 : index
    %c0_166 = arith.constant 0 : index
    %218 = vector.load %arg15[%c2_164, %c0_165, %c0_166] : memref<3x256x256xbf16, #tpu.memory_space<vmem>>, vector<1x256x256xbf16>
    %219 = vector.shape_cast %218 : vector<1x256x256xbf16> to vector<256x256xbf16>
    %c2_167 = arith.constant 2 : index
    %c0_168 = arith.constant 0 : index
    %c0_169 = arith.constant 0 : index
    %220 = vector.load %arg16[%c2_167, %c0_168, %c0_169] : memref<3x1x256xf32, #tpu.memory_space<vmem>>, vector<1x1x256xf32>
    %221 = vector.shape_cast %220 : vector<1x1x256xf32> to vector<1x256xf32>
    %c2_170 = arith.constant 2 : index
    %c0_171 = arith.constant 0 : index
    %c0_172 = arith.constant 0 : index
    %222 = vector.load %arg17[%c2_170, %c0_171, %c0_172] : memref<3x256x2xbf16, #tpu.memory_space<vmem>>, vector<1x256x2xbf16>
    %223 = vector.shape_cast %222 : vector<1x256x2xbf16> to vector<256x2xbf16>
    %c2_173 = arith.constant 2 : index
    %c0_174 = arith.constant 0 : index
    %c0_175 = arith.constant 0 : index
    %224 = vector.load %arg18[%c2_173, %c0_174, %c0_175] : memref<3x1x2xf32, #tpu.memory_space<vmem>>, vector<1x1x2xf32>
    %225 = vector.shape_cast %224 : vector<1x1x2xf32> to vector<1x2xf32>
    %cst_176 = arith.constant dense<0.000000e+00> : vector<8x256xf32>
    %226 = tpu.matmul %213, %215, %cst_176 {dimension_numbers = #tpu.dot_dimension_numbers<[1], [0], [0], [1], [0, 0, 1, 1], [], []>} : vector<8x128xbf16>, vector<128x256xbf16>, vector<8x256xf32> -> vector<8x256xf32>
    %227 = vector.broadcast %217 : vector<1x256xf32> to vector<8x256xf32>
    %228 = arith.addf %226, %227 : vector<8x256xf32>
    %cst_177 = arith.constant 0.000000e+00 : f32
    %229 = vector.broadcast %cst_177 : f32 to vector<8x256xf32>
    %230 = arith.maximumf %228, %229 : vector<8x256xf32>
    %231 = arith.truncf %230 : vector<8x256xf32> to vector<8x256xbf16>
    %cst_178 = arith.constant dense<0.000000e+00> : vector<8x256xf32>
    %232 = tpu.matmul %231, %219, %cst_178 {dimension_numbers = #tpu.dot_dimension_numbers<[1], [0], [0], [1], [0, 0, 1, 1], [], []>} : vector<8x256xbf16>, vector<256x256xbf16>, vector<8x256xf32> -> vector<8x256xf32>
    %233 = vector.broadcast %221 : vector<1x256xf32> to vector<8x256xf32>
    %234 = arith.addf %232, %233 : vector<8x256xf32>
    %cst_179 = arith.constant 0.000000e+00 : f32
    %235 = vector.broadcast %cst_179 : f32 to vector<8x256xf32>
    %236 = arith.maximumf %234, %235 : vector<8x256xf32>
    %237 = arith.truncf %236 : vector<8x256xf32> to vector<8x256xbf16>
    %cst_180 = arith.constant dense<0.000000e+00> : vector<8x2xf32>
    %238 = tpu.matmul %237, %223, %cst_180 {dimension_numbers = #tpu.dot_dimension_numbers<[1], [0], [0], [1], [0, 0, 1, 1], [], []>} : vector<8x256xbf16>, vector<256x2xbf16>, vector<8x2xf32> -> vector<8x2xf32>
    %239 = vector.broadcast %225 : vector<1x2xf32> to vector<8x2xf32>
    %240 = arith.addf %238, %239 : vector<8x2xf32>
    %c0_181 = arith.constant 0 : index
    %c32_182 = arith.constant 32 : index
    %241 = vector.load %arg19[%c0_181, %c32_182] : memref<8x128xf32, #tpu.memory_space<vmem>>, vector<8x2xf32>
    tpu.vector_store %arg19[%c0_181, %c32_182], %240 {strides = array<i32>} : memref<8x128xf32, #tpu.memory_space<vmem>>, vector<8x2xf32>,
    return
  }
}

</mosaic_0001>

<bundles_post_ra>
// kernel: daan_forward.1
= control target key start
LH: loop header
LB: loop body
LE: loop exit
PB: predicated region body
PF: predicated region fallthrough
CT: control target
= control target key end

     0   :  { %vm143_vm0 = vcmask 261120   ;;  %vm3748_vm1 = vcmask 23552   ;;  %vm4311_vm2 = vcmask 80960   ;;  %s8833_s21 = smov 16   ;;  %vm4868_vm3 = vcmask 146560   ;;  %s12699_s0 = inlined_call_operand.vmem [shape: f32[296,32], index: 0, kind: input, shape index: {}]   ;;  %s12700_s1 = inlined_call_operand.vmem [shape: f32[9,64,32], index: 1, kind: input, shape index: {}]   ;;  %s12701_s2 = inlined_call_operand.vmem [shape: f32[64,1], index: 2, kind: input, shape index: {}]   ;;  %s12702_s3 = inlined_call_operand.vmem [shape: bf16[8,256,128], index: 3, kind: input, shape index: {}]   ;;  %s12703_s4 = inlined_call_operand.vmem [shape: f32[1,128], index: 4, kind: input, shape index: {}]   ;;  %s12704_s6 = inlined_call_operand.vmem [shape: f32[1,3], index: 6, kind: input, shape index: {}]   ;;  %s12705_s5 = inlined_call_operand.vmem [shape: f32[128,3], index: 5, kind: input, shape index: {}]   ;;  %s12706_s7 = inlined_call_operand.vmem [shape: bf16[128,256], index: 7, kind: input, shape index: {}]   ;;  %s12707_s9 = inlined_call_operand.vmem [shape: bf16[256,256], index: 9, kind: input, shape index: {}]   ;;  %s12708_s19 = inlined_call_operand.vmem [shape: f32[8,128], index: 19, kind: output, shape index: {}]   ;;  %s12709_s11 = inlined_call_operand.vmem [shape: bf16[256,2], index: 11, kind: input, shape index: {}]   ;;  %s12710_s8 = inlined_call_operand.vmem [shape: f32[1,256], index: 8, kind: input, shape index: {}]   ;;  %s12711_s10 = inlined_call_operand.vmem [shape: f32[1,256], index: 10, kind: input, shape index: {}]   ;;  %s12712_s12 = inlined_call_operand.vmem [shape: f32[1,2], index: 12, kind: input, shape index: {}]   ;;  %s12713_s13 = inlined_call_operand.vmem [shape: bf16[3,128,256], index: 13, kind: input, shape index: {}]   ;;  %s12714_s15 = inlined_call_operand.vmem [shape: bf16[3,256,256], index: 15, kind: input, shape index: {}]   ;;  %s12715_s14 = inlined_call_operand.vmem [shape: f32[3,1,256], index: 14, kind: input, shape index: {}]   ;;  %s12716_s17 = inlined_call_operand.vmem [shape: bf16[3,256,2], index: 17, kind: input, shape index: {}]   ;;  %s12717_s16 = inlined_call_operand.vmem [shape: f32[3,1,256], index: 16, kind: input, shape index: {}]   ;;  %s12718_s18 = inlined_call_operand.vmem [shape: f32[3,1,2], index: 18, kind: input, shape index: {}]  }
   0x1   :  { %12733 = sst [smem:[#allocation10_spill]] %s12699_s0  ;;  %vm5430_vm4 = vcmask 212160   ;;  %vm5992_vm5 = vcmask 277760  }
   0x2   :  { %12734 = sst [smem:[#allocation11_spill]] %s12700_s1 }
   0x3   :  { %12735 = sst [smem:[#allocation12_spill]] %s12701_s2 }
   0x4   :  { %12736 = sst [smem:[#allocation13_spill]] %s12702_s3 }
   0x5   :  { %s12737_s20 = sld [smem:[#allocation10_spill]] }
   0x6   :  { %s12744_s25 = sld [smem:[#allocation11_spill]] }
   0x7   :  { %s12756_s26 = sld [smem:[#allocation12_spill]] }
   0x8   :  { %s12759_s23 = sld [smem:[#allocation13_spill]] }
   0xb   :  { %v8939_v0 = vld [vmem:[%s12737_s20 + $0x79] sm:$0xff]  ;;  %v8967_v4 = vld [vmem:[%s12737_s20 + $0x71] sm:$0xff]  ;;  %v8995_v8 = vld [vmem:[%s12737_s20 + $0x69] sm:$0xff] }
   0xc   :  { %v8944_v1 = vld [vmem:[%s12737_s20 + $0xf9] sm:$0xff]  ;;  %6006 = vmatpush.xpose.msk.msra.mxu0 %vm143_vm0, %v8939_v0  ;;  %v8972_v5 = vld [vmem:[%s12737_s20 + $0xf1] sm:$0xff]  ;;  %v9000_v9 = vld [vmem:[%s12737_s20 + $0xe9] sm:$0xff] }
   0xd   :  { %v8949_v2 = vld [vmem:[%s12737_s20 + $0x78] sm:$0xff]  ;;  %6030 = vmatpush.xpose.msk.msra.mxu1 %vm143_vm0, %v8944_v1  ;;  %v8977_v6 = vld [vmem:[%s12737_s20 + $0x70] sm:$0xff]  ;;  %v9005_v10 = vld [vmem:[%s12737_s20 + $0x68] sm:$0xff] }
   0xe   :  { %v8958_v3 = vld [vmem:[%s12737_s20 + $0xf8] sm:$0xff]  ;;  %6054 = vmatpush.xpose.msk.msra.mxu2 %vm143_vm0, %v8949_v2  ;;  %v8982_v7 = vld [vmem:[%s12737_s20 + $0xf0] sm:$0xff]  ;;  %v9010_v11 = vld [vmem:[%s12737_s20 + $0xe8] sm:$0xff] }
   0xf   :  { %6078 = vmatpush.xpose.msk.msra.mxu3 %vm143_vm0, %v8958_v3  ;;  %v9023_v12 = vld [vmem:[%s12737_s20 + $0x61] sm:$0xff]  ;;  %v9051_v16 = vld [vmem:[%s12737_s20 + $0x59] sm:$0xff]  ;;  %v9079_v20 = vld [vmem:[%s12737_s20 + $0x51] sm:$0xff] }
  0x10   :  { %6007 = vmatpush.xpose.msk.msra.mxu0 %vm143_vm0, %v8967_v4  ;;  %v9028_v13 = vld [vmem:[%s12737_s20 + $0xe1] sm:$0xff]  ;;  %v9056_v17 = vld [vmem:[%s12737_s20 + $0xd9] sm:$0xff]  ;;  %v9084_v21 = vld [vmem:[%s12737_s20 + $0xd1] sm:$0xff] }
  0x11   :  { %6031 = vmatpush.xpose.msk.msra.mxu1 %vm143_vm0, %v8972_v5  ;;  %v9033_v14 = vld [vmem:[%s12737_s20 + $0x60] sm:$0xff]  ;;  %v9061_v18 = vld [vmem:[%s12737_s20 + $0x58] sm:$0xff]  ;;  %v9089_v22 = vld [vmem:[%s12737_s20 + $0x50] sm:$0xff] }
  0x12   :  { %6055 = vmatpush.xpose.msk.msra.mxu2 %vm143_vm0, %v8977_v6  ;;  %v9038_v15 = vld [vmem:[%s12737_s20 + $0xe0] sm:$0xff]  ;;  %v9066_v19 = vld [vmem:[%s12737_s20 + $0xd8] sm:$0xff]  ;;  %v9094_v23 = vld [vmem:[%s12737_s20 + $0xd0] sm:$0xff] }
  0x13   :  { %6079 = vmatpush.xpose.msk.msra.mxu3 %vm143_vm0, %v8982_v7  ;;  %v9107_v24 = vld [vmem:[%s12737_s20 + $0x49] sm:$0xff]  ;;  %v9135_v28 = vld [vmem:[%s12737_s20 + $0x41] sm:$0xff]  ;;  %v9163_v32 = vld [vmem:[%s12737_s20 + $0x39] sm:$0xff] }
  0x14   :  { %6008 = vmatpush.xpose.msk.msra.mxu0 %vm143_vm0, %v8995_v8  ;;  %v9112_v25 = vld [vmem:[%s12737_s20 + $0xc9] sm:$0xff]  ;;  %v9140_v29 = vld [vmem:[%s12737_s20 + $0xc1] sm:$0xff]  ;;  %v9168_v33 = vld [vmem:[%s12737_s20 + $0xb9] sm:$0xff] }
  0x15   :  { %6032 = vmatpush.xpose.msk.msra.mxu1 %vm143_vm0, %v9000_v9  ;;  %v9117_v26 = vld [vmem:[%s12737_s20 + $0x48] sm:$0xff]  ;;  %v9145_v30 = vld [vmem:[%s12737_s20 + $0x40] sm:$0xff]  ;;  %v9173_v34 = vld [vmem:[%s12737_s20 + $0x38] sm:$0xff] }
  0x16   :  { %6056 = vmatpush.xpose.msk.msra.mxu2 %vm143_vm0, %v9005_v10  ;;  %v9122_v27 = vld [vmem:[%s12737_s20 + $0xc8] sm:$0xff]  ;;  %v9150_v31 = vld [vmem:[%s12737_s20 + $0xc0] sm:$0xff]  ;;  %v9178_v35 = vld [vmem:[%s12737_s20 + $0xb8] sm:$0xff] }
  0x17   :  { %6080 = vmatpush.xpose.msk.msra.mxu3 %vm143_vm0, %v9010_v11  ;;  %v9191_v36 = vld [vmem:[%s12737_s20 + $0x31] sm:$0xff]  ;;  %v9219_v40 = vld [vmem:[%s12737_s20 + $0x29] sm:$0xff]  ;;  %v9247_v44 = vld [vmem:[%s12737_s20 + $0x21] sm:$0xff] }
  0x18   :  { %6009 = vmatpush.xpose.msk.msra.mxu0 %vm143_vm0, %v9023_v12  ;;  %v9196_v37 = vld [vmem:[%s12737_s20 + $0xb1] sm:$0xff]  ;;  %v9224_v41 = vld [vmem:[%s12737_s20 + $0xa9] sm:$0xff]  ;;  %v9252_v45 = vld [vmem:[%s12737_s20 + $0xa1] sm:$0xff] }
  0x19   :  { %6033 = vmatpush.xpose.msk.msra.mxu1 %vm143_vm0, %v9028_v13  ;;  %v9201_v38 = vld [vmem:[%s12737_s20 + $0x30] sm:$0xff]  ;;  %v9229_v42 = vld [vmem:[%s12737_s20 + $0x28] sm:$0xff]  ;;  %v9257_v46 = vld [vmem:[%s12737_s20 + $0x20] sm:$0xff] }
  0x1a   :  { %6057 = vmatpush.xpose.msk.msra.mxu2 %vm143_vm0, %v9033_v14  ;;  %v9206_v39 = vld [vmem:[%s12737_s20 + $0xb0] sm:$0xff]  ;;  %v9234_v43 = vld [vmem:[%s12737_s20 + $0xa8] sm:$0xff]  ;;  %v9262_v47 = vld [vmem:[%s12737_s20 + $0xa0] sm:$0xff] }
  0x1b   :  { %6081 = vmatpush.xpose.msk.msra.mxu3 %vm143_vm0, %v9038_v15  ;;  %v9275_v48 = vld [vmem:[%s12737_s20 + $0x19] sm:$0xff]  ;;  %v9303_v52 = vld [vmem:[%s12737_s20 + $0x11] sm:$0xff]  ;;  %v103_v56 = vld [vmem:[%s12737_s20 + $0x9] sm:$0xff] }
  0x1c   :  { %6010 = vmatpush.xpose.msk.msra.mxu0 %vm143_vm0, %v9051_v16  ;;  %12738 = vst [vmem:[#allocation2_spill] sm:$0xff] %v9275_v48  ;;  %v9280_v49 = vld [vmem:[%s12737_s20 + $0x99] sm:$0xff]  ;;  %v9308_v53 = vld [vmem:[%s12737_s20 + $0x91] sm:$0xff]  ;;  %v9334_v57 = vld [vmem:[%s12737_s20 + $0x89] sm:$0xff] }
  0x1d   :  { %6034 = vmatpush.xpose.msk.msra.mxu1 %vm143_vm0, %v9056_v17  ;;  %12739 = vst [vmem:[#allocation3_spill] sm:$0xff] %v9280_v49  ;;  %v9285_v50 = vld [vmem:[%s12737_s20 + $0x18] sm:$0xff]  ;;  %v9313_v54 = vld [vmem:[%s12737_s20 + $0x10] sm:$0xff]  ;;  %v63_v58 = vld [vmem:[%s12737_s20 + $0x8] sm:$0xff] }
  0x1e   :  { %6058 = vmatpush.xpose.msk.msra.mxu2 %vm143_vm0, %v9061_v18  ;;  %v9290_v51 = vld [vmem:[%s12737_s20 + $0x98] sm:$0xff]  ;;  %12740 = vst [vmem:[#allocation4_spill] sm:$0xff] %v9303_v52  ;;  %v9318_v55 = vld [vmem:[%s12737_s20 + $0x90] sm:$0xff]  ;;  %v9342_v59 = vld [vmem:[%s12737_s20 + $0x88] sm:$0xff] }
  0x1f   :  { %6082 = vmatpush.xpose.msk.msra.mxu3 %vm143_vm0, %v9066_v19  ;;  %12741 = vst [vmem:[#allocation5_spill] sm:$0xff] %v9308_v53  ;;  %v102_v60 = vld [vmem:[%s12737_s20 + $0x1] sm:$0xff] }
  0x20   :  { %6011 = vmatpush.xpose.msk.msra.mxu0 %vm143_vm0, %v9079_v20  ;;  %12742 = vst [vmem:[#allocation6_spill] sm:$0xff] %v9342_v59  ;;  %v9356_v61 = vld [vmem:[%s12737_s20 + $0x81] sm:$0xff] }
  0x21   :  { %6035 = vmatpush.xpose.msk.msra.mxu1 %vm143_vm0, %v9084_v21  ;;  %v62_v62 = vld [vmem:[%s12737_s20] sm:$0xff] }
  0x22   :  { %6059 = vmatpush.xpose.msk.msra.mxu2 %vm143_vm0, %v9089_v22  ;;  %v9364_v63 = vld [vmem:[%s12737_s20 + $0x80] sm:$0xff] }
  0x23   :  { %6083 = vmatpush.xpose.msk.msra.mxu3 %vm143_vm0, %v9094_v23  ;;  %12743 = vst [vmem:[#allocation7_spill] sm:$0xff] %v9364_v63 }
  0x24   :  { %6012 = vmatpush.xpose.msk.msra.mxu0 %vm143_vm0, %v9107_v24 }
  0x25   :  { %6036 = vmatpush.xpose.msk.msra.mxu1 %vm143_vm0, %v9112_v25 }
  0x26   :  { %6060 = vmatpush.xpose.msk.msra.mxu2 %vm143_vm0, %v9117_v26 }
  0x27   :  { %6084 = vmatpush.xpose.msk.msra.mxu3 %vm143_vm0, %v9122_v27 }
  0x28   :  { %6013 = vmatpush.xpose.msk.msra.mxu0 %vm143_vm0, %v9135_v28 }
  0x29   :  { %6037 = vmatpush.xpose.msk.msra.mxu1 %vm143_vm0, %v9140_v29 }
  0x2a   :  { %6061 = vmatpush.xpose.msk.msra.mxu2 %vm143_vm0, %v9145_v30 }
  0x2b   :  { %6085 = vmatpush.xpose.msk.msra.mxu3 %vm143_vm0, %v9150_v31 }
  0x2c   :  { %6014 = vmatpush.xpose.msk.msra.mxu0 %vm143_vm0, %v9163_v32 }
  0x2d   :  { %6038 = vmatpush.xpose.msk.msra.mxu1 %vm143_vm0, %v9168_v33 }
  0x2e   :  { %6062 = vmatpush.xpose.msk.msra.mxu2 %vm143_vm0, %v9173_v34 }
  0x2f   :  { %6086 = vmatpush.xpose.msk.msra.mxu3 %vm143_vm0, %v9178_v35 }
  0x30   :  { %6015 = vmatpush.xpose.msk.msra.mxu0 %vm143_vm0, %v9191_v36 }
  0x31   :  { %6039 = vmatpush.xpose.msk.msra.mxu1 %vm143_vm0, %v9196_v37 }
  0x32   :  { %6063 = vmatpush.xpose.msk.msra.mxu2 %vm143_vm0, %v9201_v38 }
  0x33   :  { %6087 = vmatpush.xpose.msk.msra.mxu3 %vm143_vm0, %v9206_v39 }
  0x34   :  { %6016 = vmatpush.xpose.msk.msra.mxu0 %vm143_vm0, %v9219_v40 }
  0x35   :  { %6040 = vmatpush.xpose.msk.msra.mxu1 %vm143_vm0, %v9224_v41 }
  0x36   :  { %6064 = vmatpush.xpose.msk.msra.mxu2 %vm143_vm0, %v9229_v42 }
  0x37   :  { %6088 = vmatpush.xpose.msk.msra.mxu3 %vm143_vm0, %v9234_v43 }
  0x38   :  { %6017 = vmatpush.xpose.msk.msra.mxu0 %vm143_vm0, %v9247_v44 }
  0x39   :  { %6041 = vmatpush.xpose.msk.msra.mxu1 %vm143_vm0, %v9252_v45 }
  0x3a   :  { %6065 = vmatpush.xpose.msk.msra.mxu2 %vm143_vm0, %v9257_v46 }
  0x3b   :  { %6089 = vmatpush.xpose.msk.msra.mxu3 %vm143_vm0, %v9262_v47 }
  0x3c   :  { %6018 = vmatpush.xpose.msk.msra.mxu0 %vm143_vm0, %v9275_v48  ;;  %v95_v48 = vld [vmem:[%s12744_s25 + $0x8] sm:$0xff] }
  0x3d   :  { %6042 = vmatpush.xpose.msk.msra.mxu1 %vm143_vm0, %v9280_v49  ;;  %v9407_v49 = vld [vmem:[%s12737_s20 + $0xf2] sm:$0xff] }
  0x3e   :  { %6066 = vmatpush.xpose.msk.msra.mxu2 %vm143_vm0, %v9285_v50 }
  0x3f   :  { %6090 = vmatpush.xpose.msk.msra.mxu3 %vm143_vm0, %v9290_v51 }
  0x40   :  { %6019 = vmatpush.xpose.msk.msra.mxu0 %vm143_vm0, %v9303_v52  ;;  %v94_v52 = vld [vmem:[%s12744_s25] sm:$0xff] }
  0x41   :  { %6043 = vmatpush.xpose.msk.msra.mxu1 %vm143_vm0, %v9308_v53  ;;  %v5998_v53 = vld [vmem:[%s12744_s25 + $0x40] sm:$0xff] }
  0x42   :  { %6067 = vmatpush.xpose.msk.msra.mxu2 %vm143_vm0, %v9313_v54 }
  0x43   :  { %6091 = vmatpush.xpose.msk.msra.mxu3 %vm143_vm0, %v9318_v55 }
  0x44   :  { %6020 = vmatpush.xpose.msk.msra.mxu0 %vm143_vm0, %v103_v56  ;;  %v9369_v56 = vld [vmem:[%s12737_s20 + $0x7a] sm:$0xff] }
  0x45   :  { %6044 = vmatpush.xpose.msk.msra.mxu1 %vm143_vm0, %v9334_v57 }
  0x46   :  { %6068 = vmatpush.xpose.msk.msra.mxu2 %vm143_vm0, %v63_v58  ;;  %v9374_v58 = vld [vmem:[%s12737_s20 + $0xfa] sm:$0xff] }
  0x47   :  { %6092 = vmatpush.xpose.msk.msra.mxu3 %vm143_vm0, %v9342_v59 }
  0x48   :  { %6021 = vmatpush.xpose.msk.msra.mxu0 %vm143_vm0, %v102_v60  ;;  %v9395_v60 = vld [vmem:[%s12737_s20 + $0x108] sm:$0xff] }
  0x49   :  { %6045 = vmatpush.xpose.msk.msra.mxu1 %vm143_vm0, %v9356_v61  ;;  %12745 = vst [vmem:[#allocation8_spill] sm:$0xff] %v9395_v60 }
  0x4a   :  { %6069 = vmatpush.xpose.msk.msra.mxu2 %vm143_vm0, %v62_v62  ;;  %v9402_v62 = vld [vmem:[%s12737_s20 + $0x72] sm:$0xff] }
  0x4b   :  { %6093 = vmatpush.xpose.msk.msra.mxu3 %vm143_vm0, %v9364_v63  ;;  %6022 = vmatmul.msk.f32.vlgmr.msra.gmra.mxu0 %vm143_vm0, %v5998_v53 }
  0x4c   :  { %6110 = vmatpush.xpose.msk.msrb.mxu0 %vm143_vm0, %v9369_v56  ;;  %6046 = vmatmul.msk.f32.vlgmr.msra.gmra.mxu1 %vm143_vm0, %v5998_v53  ;;  %v9422_v53 = vld [vmem:[%s12737_s20 + $0x100] sm:$0xff] }
  0x4d   :  { %6134 = vmatpush.xpose.msk.msrb.mxu1 %vm143_vm0, %v9374_v58  ;;  %6070 = vmatmul.msk.f32.vlgmr.msra.gmra.mxu2 %vm143_vm0, %v94_v52  ;;  %12746 = vst [vmem:[#allocation9_spill] sm:$0xff] %v9422_v53 }
  0x4e   :  { %6094 = vmatmul.msk.f32.vlgmr.msra.gmra.mxu3 %vm143_vm0, %v94_v52  ;;  %6166 = vmatpush.xpose.msk.msrb.mxu2 %vm143_vm0, %v9342_v59  ;;  %v9427_v52 = vld [vmem:[%s12737_s20 + $0x6a] sm:$0xff] }
  0x4f   :  { %6190 = vmatpush.xpose.msk.msrb.mxu3 %vm143_vm0, %v9395_v60  ;;  %v9432_v60 = vld [vmem:[%s12737_s20 + $0xea] sm:$0xff] }
  0x50   :  { %6111 = vmatpush.xpose.msk.msrb.mxu0 %vm143_vm0, %v9402_v62  ;;  %v5999_v59 = vld [vmem:[%s12744_s25 + $0x48] sm:$0xff] }
  0x51   :  { %6135 = vmatpush.xpose.msk.msrb.mxu1 %vm143_vm0, %v9407_v49 }
  0x52   :  { %6167 = vmatpush.xpose.msk.msrb.mxu2 %vm143_vm0, %v9364_v63  ;;  %v9453_v63 = vld [vmem:[%s12737_s20 + $0x62] sm:$0xff] }
  0x53   :  { %6191 = vmatpush.xpose.msk.msrb.mxu3 %vm143_vm0, %v9422_v53  ;;  %6023 = vmatmul.msk.f32.gmra.mxu0 %vm143_vm0, %v5999_v59  ;;  %v9458_v53 = vld [vmem:[%s12737_s20 + $0xe2] sm:$0xff] }
  0x54   :  { %6112 = vmatpush.xpose.msk.msrb.mxu0 %vm143_vm0, %v9427_v52  ;;  %6047 = vmatmul.msk.f32.gmra.mxu1 %vm143_vm0, %v5999_v59  ;;  %v9473_v59 = vld [vmem:[%s12737_s20 + $0x5a] sm:$0xff] }
  0x55   :  { %6136 = vmatpush.xpose.msk.msrb.mxu1 %vm143_vm0, %v9432_v60  ;;  %6071 = vmatmul.msk.f32.gmra.mxu2 %vm143_vm0, %v95_v48 }
  0x56   :  { %6095 = vmatmul.msk.f32.gmra.mxu3 %vm143_vm0, %v95_v48  ;;  %6168 = vmatpush.xpose.msk.msrb.mxu2 %vm143_vm0, %v8949_v2  ;;  %v9478_v48 = vld [vmem:[%s12737_s20 + $0xda] sm:$0xff]  ;;  %v6000_v2 = vld [vmem:[%s12744_s25 + $0x50] sm:$0xff] }
  0x57   :  { %6192 = vmatpush.xpose.msk.msrb.mxu3 %vm143_vm0, %v8958_v3  ;;  %v96_v3 = vld [vmem:[%s12744_s25 + $0x10] sm:$0xff] }
  0x58   :  { %6113 = vmatpush.xpose.msk.msrb.mxu0 %vm143_vm0, %v9453_v63 }
  0x59   :  { %6137 = vmatpush.xpose.msk.msrb.mxu1 %vm143_vm0, %v9458_v53 }
  0x5a   :  { %6169 = vmatpush.xpose.msk.msrb.mxu2 %vm143_vm0, %v8977_v6  ;;  %v9499_v6 = vld [vmem:[%s12737_s20 + $0x52] sm:$0xff] }
  0x5b   :  { %6193 = vmatpush.xpose.msk.msrb.mxu3 %vm143_vm0, %v8982_v7  ;;  %6024 = vmatmul.msk.f32.gmra.mxu0 %vm143_vm0, %v6000_v2  ;;  %v9504_v7 = vld [vmem:[%s12737_s20 + $0xd2] sm:$0xff] }
  0x5c   :  { %6114 = vmatpush.xpose.msk.msrb.mxu0 %vm143_vm0, %v9473_v59  ;;  %6048 = vmatmul.msk.f32.gmra.mxu1 %vm143_vm0, %v6000_v2  ;;  %v9519_v2 = vld [vmem:[%s12737_s20 + $0x4a] sm:$0xff] }
  0x5d   :  { %6138 = vmatpush.xpose.msk.msrb.mxu1 %vm143_vm0, %v9478_v48  ;;  %6072 = vmatmul.msk.f32.gmra.mxu2 %vm143_vm0, %v96_v3 }
  0x5e   :  { %6096 = vmatmul.msk.f32.gmra.mxu3 %vm143_vm0, %v96_v3  ;;  %6170 = vmatpush.xpose.msk.msrb.mxu2 %vm143_vm0, %v9005_v10  ;;  %v9524_v3 = vld [vmem:[%s12737_s20 + $0xca] sm:$0xff]  ;;  %v6001_v10 = vld [vmem:[%s12744_s25 + $0x58] sm:$0xff] }
  0x5f   :  { %6194 = vmatpush.xpose.msk.msrb.mxu3 %vm143_vm0, %v9010_v11  ;;  %v97_v11 = vld [vmem:[%s12744_s25 + $0x18] sm:$0xff] }
  0x60   :  { %6115 = vmatpush.xpose.msk.msrb.mxu0 %vm143_vm0, %v9499_v6 }
  0x61   :  { %6139 = vmatpush.xpose.msk.msrb.mxu1 %vm143_vm0, %v9504_v7 }
  0x62   :  { %6171 = vmatpush.xpose.msk.msrb.mxu2 %vm143_vm0, %v9033_v14  ;;  %v9545_v14 = vld [vmem:[%s12737_s20 + $0x42] sm:$0xff] }
  0x63   :  { %6195 = vmatpush.xpose.msk.msrb.mxu3 %vm143_vm0, %v9038_v15  ;;  %6025 = vmatmul.msk.f32.gmra.mxu0 %vm143_vm0, %v6001_v10  ;;  %v9550_v15 = vld [vmem:[%s12737_s20 + $0xc2] sm:$0xff] }
  0x64   :  { %6116 = vmatpush.xpose.msk.msrb.mxu0 %vm143_vm0, %v9519_v2  ;;  %6049 = vmatmul.msk.f32.gmra.mxu1 %vm143_vm0, %v6001_v10  ;;  %v9565_v10 = vld [vmem:[%s12737_s20 + $0x3a] sm:$0xff] }
  0x65   :  { %6140 = vmatpush.xpose.msk.msrb.mxu1 %vm143_vm0, %v9524_v3  ;;  %6073 = vmatmul.msk.f32.gmra.mxu2 %vm143_vm0, %v97_v11 }
  0x66   :  { %6097 = vmatmul.msk.f32.gmra.mxu3 %vm143_vm0, %v97_v11  ;;  %6172 = vmatpush.xpose.msk.msrb.mxu2 %vm143_vm0, %v9061_v18  ;;  %v9570_v11 = vld [vmem:[%s12737_s20 + $0xba] sm:$0xff] }
  0x67   :  { %6196 = vmatpush.xpose.msk.msrb.mxu3 %vm143_vm0, %v9066_v19  ;;  %v6002_v18 = vld [vmem:[%s12744_s25 + $0x60] sm:$0xff] }
  0x68   :  { %6117 = vmatpush.xpose.msk.msrb.mxu0 %vm143_vm0, %v9545_v14  ;;  %v98_v19 = vld [vmem:[%s12744_s25 + $0x20] sm:$0xff] }
  0x69   :  { %6141 = vmatpush.xpose.msk.msrb.mxu1 %vm143_vm0, %v9550_v15 }
  0x6a   :  { %6173 = vmatpush.xpose.msk.msrb.mxu2 %vm143_vm0, %v9089_v22  ;;  %v9591_v22 = vld [vmem:[%s12737_s20 + $0x32] sm:$0xff] }
  0x6b   :  { %6197 = vmatpush.xpose.msk.msrb.mxu3 %vm143_vm0, %v9094_v23  ;;  %6026 = vmatmul.msk.f32.gmra.mxu0 %vm143_vm0, %v6002_v18  ;;  %v9596_v23 = vld [vmem:[%s12737_s20 + $0xb2] sm:$0xff] }
  0x6c   :  { %6118 = vmatpush.xpose.msk.msrb.mxu0 %vm143_vm0, %v9565_v10  ;;  %6050 = vmatmul.msk.f32.gmra.mxu1 %vm143_vm0, %v6002_v18  ;;  %v9611_v18 = vld [vmem:[%s12737_s20 + $0x2a] sm:$0xff] }
  0x6d   :  { %6142 = vmatpush.xpose.msk.msrb.mxu1 %vm143_vm0, %v9570_v11  ;;  %6074 = vmatmul.msk.f32.gmra.mxu2 %vm143_vm0, %v98_v19 }
  0x6e   :  { %6098 = vmatmul.msk.f32.gmra.mxu3 %vm143_vm0, %v98_v19  ;;  %6174 = vmatpush.xpose.msk.msrb.mxu2 %vm143_vm0, %v9117_v26  ;;  %v9616_v19 = vld [vmem:[%s12737_s20 + $0xaa] sm:$0xff] }
  0x6f   :  { %6198 = vmatpush.xpose.msk.msrb.mxu3 %vm143_vm0, %v9122_v27  ;;  %v6003_v26 = vld [vmem:[%s12744_s25 + $0x68] sm:$0xff] }
  0x70   :  { %6119 = vmatpush.xpose.msk.msrb.mxu0 %vm143_vm0, %v9591_v22  ;;  %v99_v27 = vld [vmem:[%s12744_s25 + $0x28] sm:$0xff] }
  0x71   :  { %6143 = vmatpush.xpose.msk.msrb.mxu1 %vm143_vm0, %v9596_v23 }
  0x72   :  { %6175 = vmatpush.xpose.msk.msrb.mxu2 %vm143_vm0, %v9145_v30  ;;  %v9637_v30 = vld [vmem:[%s12737_s20 + $0x22] sm:$0xff] }
  0x73   :  { %6199 = vmatpush.xpose.msk.msrb.mxu3 %vm143_vm0, %v9150_v31  ;;  %6027 = vmatmul.msk.f32.gmra.mxu0 %vm143_vm0, %v6003_v26  ;;  %v9642_v31 = vld [vmem:[%s12737_s20 + $0xa2] sm:$0xff] }
  0x74   :  { %6120 = vmatpush.xpose.msk.msrb.mxu0 %vm143_vm0, %v9611_v18  ;;  %6051 = vmatmul.msk.f32.gmra.mxu1 %vm143_vm0, %v6003_v26  ;;  %v9657_v26 = vld [vmem:[%s12737_s20 + $0x1a] sm:$0xff] }
  0x75   :  { %6144 = vmatpush.xpose.msk.msrb.mxu1 %vm143_vm0, %v9616_v19  ;;  %6075 = vmatmul.msk.f32.gmra.mxu2 %vm143_vm0, %v99_v27 }
  0x76   :  { %6099 = vmatmul.msk.f32.gmra.mxu3 %vm143_vm0, %v99_v27  ;;  %6176 = vmatpush.xpose.msk.msrb.mxu2 %vm143_vm0, %v9173_v34  ;;  %v9662_v27 = vld [vmem:[%s12737_s20 + $0x9a] sm:$0xff]  ;;  %v6004_v34 = vld [vmem:[%s12744_s25 + $0x70] sm:$0xff] }
  0x77   :  { %6200 = vmatpush.xpose.msk.msrb.mxu3 %vm143_vm0, %v9178_v35  ;;  %v100_v35 = vld [vmem:[%s12744_s25 + $0x30] sm:$0xff] }
  0x78   :  { %6121 = vmatpush.xpose.msk.msrb.mxu0 %vm143_vm0, %v9637_v30 }
  0x79   :  { %6145 = vmatpush.xpose.msk.msrb.mxu1 %vm143_vm0, %v9642_v31 }
  0x7a   :  { %6177 = vmatpush.xpose.msk.msrb.mxu2 %vm143_vm0, %v9201_v38  ;;  %v9683_v38 = vld [vmem:[%s12737_s20 + $0x12] sm:$0xff] }
  0x7b   :  { %6201 = vmatpush.xpose.msk.msrb.mxu3 %vm143_vm0, %v9206_v39  ;;  %6028 = vmatmul.msk.f32.gmra.mxu0 %vm143_vm0, %v6004_v34  ;;  %v9688_v39 = vld [vmem:[%s12737_s20 + $0x92] sm:$0xff] }
  0x7c   :  { %6122 = vmatpush.xpose.msk.msrb.mxu0 %vm143_vm0, %v9657_v26  ;;  %6052 = vmatmul.msk.f32.gmra.mxu1 %vm143_vm0, %v6004_v34  ;;  %v549_v34 = vld [vmem:[%s12737_s20 + $0xa] sm:$0xff] }
  0x7d   :  { %6146 = vmatpush.xpose.msk.msrb.mxu1 %vm143_vm0, %v9662_v27  ;;  %6076 = vmatmul.msk.f32.gmra.mxu2 %vm143_vm0, %v100_v35 }
  0x7e   :  { %6100 = vmatmul.msk.f32.gmra.mxu3 %vm143_vm0, %v100_v35  ;;  %6178 = vmatpush.xpose.msk.msrb.mxu2 %vm143_vm0, %v9229_v42  ;;  %v9706_v35 = vld [vmem:[%s12737_s20 + $0x8a] sm:$0xff]  ;;  %v6005_v42 = vld [vmem:[%s12744_s25 + $0x78] sm:$0xff] }
  0x7f   :  { %6202 = vmatpush.xpose.msk.msrb.mxu3 %vm143_vm0, %v9234_v43  ;;  %v101_v43 = vld [vmem:[%s12744_s25 + $0x38] sm:$0xff] }
  0x80   :  { %6123 = vmatpush.xpose.msk.msrb.mxu0 %vm143_vm0, %v9683_v38 }
  0x81   :  { %6147 = vmatpush.xpose.msk.msrb.mxu1 %vm143_vm0, %v9688_v39 }
  0x82   :  { %6179 = vmatpush.xpose.msk.msrb.mxu2 %vm143_vm0, %v9257_v46  ;;  %v548_v46 = vld [vmem:[%s12737_s20 + $0x2] sm:$0xff] }
  0x83   :  { %6203 = vmatpush.xpose.msk.msrb.mxu3 %vm143_vm0, %v9262_v47  ;;  %6029 = vmatmul.msk.f32.gmra.mxu0 %vm143_vm0, %v6005_v42  ;;  %v9729_v47 = vld [vmem:[%s12737_s20 + $0x82] sm:$0xff] }
  0x84   :  { %6124 = vmatpush.xpose.msk.msrb.mxu0 %vm143_vm0, %v549_v34  ;;  %6053 = vmatmul.msk.f32.gmra.mxu1 %vm143_vm0, %v6005_v42  ;;  %v9736_v34 = vld [vmem:[%s12737_s20 + $0x109] sm:$0xff] }
  0x85   :  { %6148 = vmatpush.xpose.msk.msrb.mxu1 %vm143_vm0, %v9706_v35  ;;  %6077 = vmatmul.msk.f32.gmra.mxu2 %vm143_vm0, %v101_v43  ;;  %v9752_v42 = vld [vmem:[%s12737_s20 + $0x10a] sm:$0xff] }
  0x86   :  { %6101 = vmatmul.msk.f32.gmra.mxu3 %vm143_vm0, %v101_v43  ;;  %6180 = vmatpush.xpose.msk.msrb.mxu2 %vm143_vm0, %v9285_v50  ;;  %v6102_v50 = vld [vmem:[%s12744_s25 + $0x80] sm:$0xff] }
  0x87   :  { %6204 = vmatpush.xpose.msk.msrb.mxu3 %vm143_vm0, %v9290_v51  ;;  %v6158_v43 = vld [vmem:[%s12744_s25 + $0xc0] sm:$0xff] }
  0x88   :  { %6125 = vmatpush.xpose.msk.msrb.mxu0 %vm143_vm0, %v548_v46  ;;  %v9771_v46 = vld [vmem:[%s12737_s20 + $0x101] sm:$0xff] }
  0x89   :  { %6149 = vmatpush.xpose.msk.msrb.mxu1 %vm143_vm0, %v9729_v47 }
  0x8a   :  { %6181 = vmatpush.xpose.msk.msrb.mxu2 %vm143_vm0, %v9313_v54  ;;  %v9778_v54 = vld [vmem:[%s12737_s20 + $0x102] sm:$0xff] }
  0x8b   :  { %6205 = vmatpush.xpose.msk.msrb.mxu3 %vm143_vm0, %v9318_v55  ;;  %6126 = vmatmul.msk.f32.vlgmr.msrb.gmra.mxu0 %vm143_vm0, %v6102_v50 }
  0x8c   :  { %6222 = vmatpush.xpose.msk.msra.mxu0 %vm143_vm0, %v9334_v57  ;;  %6150 = vmatmul.msk.f32.vlgmr.msrb.gmra.mxu1 %vm143_vm0, %v6102_v50  ;;  %v6103_v50 = vld [vmem:[%s12744_s25 + $0x88] sm:$0xff] }
  0x8d   :  { %6246 = vmatpush.xpose.msk.msra.mxu1 %vm143_vm0, %v9736_v34  ;;  %6182 = vmatmul.msk.f32.vlgmr.msrb.gmra.mxu2 %vm143_vm0, %v6158_v43 }
  0x8e   :  { %6278 = vmatpush.xpose.msk.msra.mxu2 %vm143_vm0, %v9706_v35  ;;  %6206 = vmatmul.msk.f32.vlgmr.msrb.gmra.mxu3 %vm143_vm0, %v6158_v43  ;;  %v6159_v43 = vld [vmem:[%s12744_s25 + $0xc8] sm:$0xff] }
  0x8f   :  { %6302 = vmatpush.xpose.msk.msra.mxu3 %vm143_vm0, %v9752_v42 }
  0x90   :  { %6223 = vmatpush.xpose.msk.msra.mxu0 %vm143_vm0, %v9356_v61 }
  0x91   :  { %6247 = vmatpush.xpose.msk.msra.mxu1 %vm143_vm0, %v9771_v46 }
  0x92   :  { %6279 = vmatpush.xpose.msk.msra.mxu2 %vm143_vm0, %v9729_v47 }
  0x93   :  { %6303 = vmatpush.xpose.msk.msra.mxu3 %vm143_vm0, %v9778_v54  ;;  %6127 = vmatmul.msk.f32.gmra.mxu0 %vm143_vm0, %v6103_v50 }
  0x94   :  { %6224 = vmatpush.xpose.msk.msra.mxu0 %vm143_vm0, %v8939_v0  ;;  %6151 = vmatmul.msk.f32.gmra.mxu1 %vm143_vm0, %v6103_v50  ;;  %v6104_v0 = vld [vmem:[%s12744_s25 + $0x90] sm:$0xff] }
  0x95   :  { %6248 = vmatpush.xpose.msk.msra.mxu1 %vm143_vm0, %v8944_v1  ;;  %6183 = vmatmul.msk.f32.gmra.mxu2 %vm143_vm0, %v6159_v43  ;;  %v6160_v1 = vld [vmem:[%s12744_s25 + $0xd0] sm:$0xff] }
  0x96   :  { %6280 = vmatpush.xpose.msk.msra.mxu2 %vm143_vm0, %v9369_v56  ;;  %6207 = vmatmul.msk.f32.gmra.mxu3 %vm143_vm0, %v6159_v43  ;;  %v1852_v50 = vld [vmem:[%s12737_s20 + $0x69] sm:$0xff] }
  0x97   :  { %6304 = vmatpush.xpose.msk.msra.mxu3 %vm143_vm0, %v9374_v58  ;;  %v1868_v43 = vld [vmem:[%s12737_s20 + $0xe9] sm:$0xff] }
  0x98   :  { %6225 = vmatpush.xpose.msk.msra.mxu0 %vm143_vm0, %v8967_v4  ;;  %v6105_v4 = vld [vmem:[%s12744_s25 + $0x98] sm:$0xff] }
  0x99   :  { %6249 = vmatpush.xpose.msk.msra.mxu1 %vm143_vm0, %v8972_v5  ;;  %v6161_v5 = vld [vmem:[%s12744_s25 + $0xd8] sm:$0xff] }
  0x9a   :  { %6281 = vmatpush.xpose.msk.msra.mxu2 %vm143_vm0, %v9402_v62  ;;  %v6215_v62 = vld [vmem:[%s12744_s25 + $0x108] sm:$0xff] }
  0x9b   :  { %6305 = vmatpush.xpose.msk.msra.mxu3 %vm143_vm0, %v9407_v49  ;;  %6128 = vmatmul.msk.f32.gmra.mxu0 %vm143_vm0, %v6104_v0 }
  0x9c   :  { %6226 = vmatpush.xpose.msk.msra.mxu0 %vm143_vm0, %v8995_v8  ;;  %6152 = vmatmul.msk.f32.gmra.mxu1 %vm143_vm0, %v6104_v0  ;;  %v6106_v8 = vld [vmem:[%s12744_s25 + $0xa0] sm:$0xff] }
  0x9d   :  { %6250 = vmatpush.xpose.msk.msra.mxu1 %vm143_vm0, %v9000_v9  ;;  %6184 = vmatmul.msk.f32.gmra.mxu2 %vm143_vm0, %v6160_v1  ;;  %v6162_v9 = vld [vmem:[%s12744_s25 + $0xe0] sm:$0xff] }
  0x9e   :  { %6282 = vmatpush.xpose.msk.msra.mxu2 %vm143_vm0, %v9427_v52  ;;  %6208 = vmatmul.msk.f32.gmra.mxu3 %vm143_vm0, %v6160_v1  ;;  %v12752_v52 = vld [vmem:[#allocation8_spill] sm:$0xff] }
  0x9f   :  { %6306 = vmatpush.xpose.msk.msra.mxu3 %vm143_vm0, %v9432_v60 }
  0xa0   :  { %6227 = vmatpush.xpose.msk.msra.mxu0 %vm143_vm0, %v9023_v12  ;;  %v6107_v12 = vld [vmem:[%s12744_s25 + $0xa8] sm:$0xff] }
  0xa1   :  { %6251 = vmatpush.xpose.msk.msra.mxu1 %vm143_vm0, %v9028_v13  ;;  %v6163_v13 = vld [vmem:[%s12744_s25 + $0xe8] sm:$0xff] }
  0xa2   :  { %6283 = vmatpush.xpose.msk.msra.mxu2 %vm143_vm0, %v9453_v63 }
  0xa3   :  { %6307 = vmatpush.xpose.msk.msra.mxu3 %vm143_vm0, %v9458_v53  ;;  %6129 = vmatmul.msk.f32.gmra.mxu0 %vm143_vm0, %v6105_v4  ;;  %v12751_v53 = vld [vmem:[#allocation6_spill] sm:$0xff] }
  0xa4   :  { %6228 = vmatpush.xpose.msk.msra.mxu0 %vm143_vm0, %v9051_v16  ;;  %6153 = vmatmul.msk.f32.gmra.mxu1 %vm143_vm0, %v6105_v4  ;;  %v6108_v16 = vld [vmem:[%s12744_s25 + $0xb0] sm:$0xff] }
  0xa5   :  { %6252 = vmatpush.xpose.msk.msra.mxu1 %vm143_vm0, %v9056_v17  ;;  %6185 = vmatmul.msk.f32.gmra.mxu2 %vm143_vm0, %v6161_v5  ;;  %v6164_v17 = vld [vmem:[%s12744_s25 + $0xf0] sm:$0xff] }
  0xa6   :  { %6284 = vmatpush.xpose.msk.msra.mxu2 %vm143_vm0, %v9473_v59  ;;  %6209 = vmatmul.msk.f32.gmra.mxu3 %vm143_vm0, %v6161_v5  ;;  %v12753_v59 = vld [vmem:[#allocation7_spill] sm:$0xff] }
  0xa7   :  { %6308 = vmatpush.xpose.msk.msra.mxu3 %vm143_vm0, %v9478_v48  ;;  %v12754_v48 = vld [vmem:[#allocation9_spill] sm:$0xff] }
  0xa8   :  { %6229 = vmatpush.xpose.msk.msra.mxu0 %vm143_vm0, %v9079_v20  ;;  %v6109_v20 = vld [vmem:[%s12744_s25 + $0xb8] sm:$0xff] }
  0xa9   :  { %6253 = vmatpush.xpose.msk.msra.mxu1 %vm143_vm0, %v9084_v21  ;;  %v6165_v21 = vld [vmem:[%s12744_s25 + $0xf8] sm:$0xff] }
  0xaa   :  { %6285 = vmatpush.xpose.msk.msra.mxu2 %vm143_vm0, %v9499_v6  ;;  %v1611_v6 = vld [vmem:[%s12737_s20 + $0xf8] sm:$0xff] }
  0xab   :  { %6309 = vmatpush.xpose.msk.msra.mxu3 %vm143_vm0, %v9504_v7  ;;  %6130 = vmatmul.msk.f32.gmra.mxu0 %vm143_vm0, %v6106_v8 }
  0xac   :  { %6230 = vmatpush.xpose.msk.msra.mxu0 %vm143_vm0, %v9107_v24  ;;  %6154 = vmatmul.msk.f32.gmra.mxu1 %vm143_vm0, %v6106_v8  ;;  %v12747_v24 = vld [vmem:[#allocation2_spill] sm:$0xff]  ;;  %v6217_v8 = vld [vmem:[%s12744_s25 + $0x118] sm:$0xff] }
  0xad   :  { %6254 = vmatpush.xpose.msk.msra.mxu1 %vm143_vm0, %v9112_v25  ;;  %6186 = vmatmul.msk.f32.gmra.mxu2 %vm143_vm0, %v6162_v9  ;;  %v12748_v25 = vld [vmem:[#allocation3_spill] sm:$0xff] }
  0xae   :  { %6286 = vmatpush.xpose.msk.msra.mxu2 %vm143_vm0, %v9519_v2  ;;  %6210 = vmatmul.msk.f32.gmra.mxu3 %vm143_vm0, %v6162_v9  ;;  %v6273_v9 = vld [vmem:[%s12744_s25 + $0x158] sm:$0xff] }
  0xaf   :  { %6310 = vmatpush.xpose.msk.msra.mxu3 %vm143_vm0, %v9524_v3  ;;  %v1854_v3 = vld [vmem:[%s12737_s20 + $0x79] sm:$0xff] }
  0xb0   :  { %6231 = vmatpush.xpose.msk.msra.mxu0 %vm143_vm0, %v9135_v28  ;;  %v1615_v28 = vld [vmem:[%s12737_s20 + $0x118] sm:$0xff] }
  0xb1   :  { %6255 = vmatpush.xpose.msk.msra.mxu1 %vm143_vm0, %v9140_v29  ;;  %v12749_v29 = vld [vmem:[#allocation4_spill] sm:$0xff] }
  0xb2   :  { %6287 = vmatpush.xpose.msk.msra.mxu2 %vm143_vm0, %v9545_v14 }
  0xb3   :  { %6311 = vmatpush.xpose.msk.msra.mxu3 %vm143_vm0, %v9550_v15  ;;  %6131 = vmatmul.msk.f32.gmra.mxu0 %vm143_vm0, %v6107_v12 }
  0xb4   :  { %6232 = vmatpush.xpose.msk.msra.mxu0 %vm143_vm0, %v9163_v32  ;;  %6155 = vmatmul.msk.f32.gmra.mxu1 %vm143_vm0, %v6107_v12  ;;  %v12750_v32 = vld [vmem:[#allocation5_spill] sm:$0xff]  ;;  %v1592_v12 = vld [vmem:[%s12737_s20 + $0x60] sm:$0xff] }
  0xb5   :  { %6256 = vmatpush.xpose.msk.msra.mxu1 %vm143_vm0, %v9168_v33  ;;  %6187 = vmatmul.msk.f32.gmra.mxu2 %vm143_vm0, %v6163_v13  ;;  %v1874_v33 = vld [vmem:[%s12737_s20 + $0x119] sm:$0xff] }
  0xb6   :  { %6288 = vmatpush.xpose.msk.msra.mxu2 %vm143_vm0, %v9565_v10  ;;  %6211 = vmatmul.msk.f32.gmra.mxu3 %vm143_vm0, %v6163_v13  ;;  %v1608_v13 = vld [vmem:[%s12737_s20 + $0xe0] sm:$0xff] }
  0xb7   :  { %6312 = vmatpush.xpose.msk.msra.mxu3 %vm143_vm0, %v9570_v11 }
  0xb8   :  { %6233 = vmatpush.xpose.msk.msra.mxu0 %vm143_vm0, %v9191_v36 }
  0xb9   :  { %6257 = vmatpush.xpose.msk.msra.mxu1 %vm143_vm0, %v9196_v37 }
  0xba   :  { %6289 = vmatpush.xpose.msk.msra.mxu2 %vm143_vm0, %v9591_v22  ;;  %v6216_v22 = vld [vmem:[%s12744_s25 + $0x110] sm:$0xff] }
  0xbb   :  { %6313 = vmatpush.xpose.msk.msra.mxu3 %vm143_vm0, %v9596_v23  ;;  %6132 = vmatmul.msk.f32.gmra.mxu0 %vm143_vm0, %v6108_v16  ;;  %v6272_v23 = vld [vmem:[%s12744_s25 + $0x150] sm:$0xff] }
  0xbc   :  { %6234 = vmatpush.xpose.msk.msra.mxu0 %vm143_vm0, %v9219_v40  ;;  %6156 = vmatmul.msk.f32.gmra.mxu1 %vm143_vm0, %v6108_v16  ;;  %v6214_v40 = vld [vmem:[%s12744_s25 + $0x100] sm:$0xff] }
  0xbd   :  { %6258 = vmatpush.xpose.msk.msra.mxu1 %vm143_vm0, %v9224_v41  ;;  %6188 = vmatmul.msk.f32.gmra.mxu2 %vm143_vm0, %v6164_v17  ;;  %v6270_v41 = vld [vmem:[%s12744_s25 + $0x140] sm:$0xff] }
  0xbe   :  { %6290 = vmatpush.xpose.msk.msra.mxu2 %vm143_vm0, %v9611_v18  ;;  %6212 = vmatmul.msk.f32.gmra.mxu3 %vm143_vm0, %v6164_v17  ;;  %v1594_v18 = vld [vmem:[%s12737_s20 + $0x70] sm:$0xff]  ;;  %v1851_v16 = vld [vmem:[%s12737_s20 + $0x61] sm:$0xff] }
  0xbf   :  { %6314 = vmatpush.xpose.msk.msra.mxu3 %vm143_vm0, %v9616_v19  ;;  %v1610_v19 = vld [vmem:[%s12737_s20 + $0xf0] sm:$0xff]  ;;  %v1867_v17 = vld [vmem:[%s12737_s20 + $0xe1] sm:$0xff] }
  0xc0   :  { %6235 = vmatpush.xpose.msk.msra.mxu0 %vm143_vm0, %v9247_v44  ;;  %v1614_v44 = vld [vmem:[%s12737_s20 + $0x110] sm:$0xff] }
  0xc1   :  { %6259 = vmatpush.xpose.msk.msra.mxu1 %vm143_vm0, %v9252_v45  ;;  %v1873_v45 = vld [vmem:[%s12737_s20 + $0x111] sm:$0xff] }
  0xc2   :  { %6291 = vmatpush.xpose.msk.msra.mxu2 %vm143_vm0, %v9637_v30  ;;  %v1853_v30 = vld [vmem:[%s12737_s20 + $0x71] sm:$0xff] }
  0xc3   :  { %6315 = vmatpush.xpose.msk.msra.mxu3 %vm143_vm0, %v9642_v31  ;;  %6133 = vmatmul.msk.f32.gmra.mxu0 %vm143_vm0, %v6109_v20  ;;  %v1869_v31 = vld [vmem:[%s12737_s20 + $0xf1] sm:$0xff] }
  0xc4   :  { %6236 = vmatpush.xpose.msk.msra.mxu0 %vm143_vm0, %v12747_v24  ;;  %6157 = vmatmul.msk.f32.gmra.mxu1 %vm143_vm0, %v6109_v20  ;;  %v1591_v20 = vld [vmem:[%s12737_s20 + $0x58] sm:$0xff] }
  0xc5   :  { %6260 = vmatpush.xpose.msk.msra.mxu1 %vm143_vm0, %v12748_v25  ;;  %6189 = vmatmul.msk.f32.gmra.mxu2 %vm143_vm0, %v6165_v21 }
  0xc6   :  { %6292 = vmatpush.xpose.msk.msra.mxu2 %vm143_vm0, %v9657_v26  ;;  %6213 = vmatmul.msk.f32.gmra.mxu3 %vm143_vm0, %v6165_v21  ;;  %v1593_v26 = vld [vmem:[%s12737_s20 + $0x68] sm:$0xff]  ;;  %v1607_v21 = vld [vmem:[%s12737_s20 + $0xd8] sm:$0xff] }
  0xc7   :  { %6316 = vmatpush.xpose.msk.msra.mxu3 %vm143_vm0, %v9662_v27 }
  0xc8   :  { %6237 = vmatpush.xpose.msk.msra.mxu0 %vm143_vm0, %v12749_v29  ;;  %v281_v36 = vpop.f32.mrf.mxu0  ;;  %v1866_v29 = vld [vmem:[%s12737_s20 + $0xd9] sm:$0xff] }
  0xc9   :  { %6261 = vmatpush.xpose.msk.msra.mxu1 %vm143_vm0, %v12750_v32  ;;  %v322_v37 = vpop.f32.mrf.mxu1 }
  0xca   :  { %6293 = vmatpush.xpose.msk.msra.mxu2 %vm143_vm0, %v9683_v38  ;;  %v1609_v38 = vld [vmem:[%s12737_s20 + $0xe8] sm:$0xff] }
  0xcb   :  { %6317 = vmatpush.xpose.msk.msra.mxu3 %vm143_vm0, %v9688_v39  ;;  %6238 = vmatmul.msk.f32.vlgmr.msra.gmra.mxu0 %vm143_vm0, %v6214_v40 }
  0xcc   :  { %6334 = vmatpush.xpose.msk.msrb.mxu0 %vm143_vm0, %v9290_v51  ;;  %6262 = vmatmul.msk.f32.vlgmr.msra.gmra.mxu1 %vm143_vm0, %v6214_v40  ;;  %v6218_v40 = vld [vmem:[%s12744_s25 + $0x120] sm:$0xff] }
  0xcd   :  { %6358 = vmatpush.xpose.msk.msrb.mxu1 %vm143_vm0, %v1615_v28  ;;  %6294 = vmatmul.msk.f32.vlgmr.msra.gmra.mxu2 %vm143_vm0, %v6270_v41  ;;  %v1850_v28 = vld [vmem:[%s12737_s20 + $0x59] sm:$0xff] }
  0xce   :  { %6390 = vmatpush.xpose.msk.msrb.mxu2 %vm143_vm0, %v12748_v25  ;;  %6318 = vmatmul.msk.f32.vlgmr.msra.gmra.mxu3 %vm143_vm0, %v6270_v41  ;;  %v6274_v41 = vld [vmem:[%s12744_s25 + $0x160] sm:$0xff] }
  0xcf   :  { %6414 = vmatpush.xpose.msk.msrb.mxu3 %vm143_vm0, %v1874_v33 }
  0xd0   :  { %6335 = vmatpush.xpose.msk.msrb.mxu0 %vm143_vm0, %v9318_v55  ;;  %v483_v49 = vpop.f32.mrf.mxu2  ;;  %v284_v58 = vpop.f32.mrf.mxu0  ;;  %v6271_v55 = vld [vmem:[%s12744_s25 + $0x148] sm:$0xff] }
  0xd1   :  { %6359 = vmatpush.xpose.msk.msrb.mxu1 %vm143_vm0, %v1614_v44  ;;  %v524_v51 = vpop.f32.mrf.mxu3  ;;  %v10006_v63 = vadd.f32 %v483_v49, %v281_v36  ;;  %v325_v60 = vpop.f32.mrf.mxu1  ;;  %v1590_v44 = vld [vmem:[%s12737_s20 + $0x50] sm:$0xff] }
  0xd2   :  { %6391 = vmatpush.xpose.msk.msrb.mxu2 %vm143_vm0, %v12750_v32  ;;  %v10008_v56 = vadd.f32 %v524_v51, %v322_v37  ;;  %v1849_v49 = vld [vmem:[%s12737_s20 + $0x51] sm:$0xff] }
  0xd3   :  { %6415 = vmatpush.xpose.msk.msrb.mxu3 %vm143_vm0, %v1873_v45  ;;  %6239 = vmatmul.msk.f32.gmra.mxu0 %vm143_vm0, %v6215_v62  ;;  %v1606_v45 = vld [vmem:[%s12737_s20 + $0xd0] sm:$0xff] }
  0xd4   :  { %6336 = vmatpush.xpose.msk.msrb.mxu0 %vm143_vm0, %v12751_v53  ;;  %6263 = vmatmul.msk.f32.gmra.mxu1 %vm143_vm0, %v6215_v62  ;;  %v1865_v51 = vld [vmem:[%s12737_s20 + $0xd1] sm:$0xff]  ;;  %v1848_v53 = vld [vmem:[%s12737_s20 + $0x49] sm:$0xff] }
  0xd5   :  { %6360 = vmatpush.xpose.msk.msrb.mxu1 %vm143_vm0, %v12752_v52  ;;  %6295 = vmatmul.msk.f32.gmra.mxu2 %vm143_vm0, %v6271_v55  ;;  %v1864_v52 = vld [vmem:[%s12737_s20 + $0xc9] sm:$0xff] }
  0xd6   :  { %6392 = vmatpush.xpose.msk.msrb.mxu2 %vm143_vm0, %v9334_v57  ;;  %6319 = vmatmul.msk.f32.gmra.mxu3 %vm143_vm0, %v6271_v55  ;;  %v1595_v57 = vld [vmem:[%s12737_s20 + $0x78] sm:$0xff] }
  0xd7   :  { %6416 = vmatpush.xpose.msk.msrb.mxu3 %vm143_vm0, %v9736_v34 }
  0xd8   :  { %6337 = vmatpush.xpose.msk.msrb.mxu0 %vm143_vm0, %v12753_v59  ;;  %v486_v7 = vpop.f32.mrf.mxu2  ;;  %v287_v10 = vpop.f32.mrf.mxu0 }
  0xd9   :  { %6361 = vmatpush.xpose.msk.msrb.mxu1 %vm143_vm0, %v12754_v48  ;;  %v527_v2 = vpop.f32.mrf.mxu3  ;;  %v10048_v14 = vadd.f32 %v486_v7, %v284_v58  ;;  %v328_v11 = vpop.f32.mrf.mxu1  ;;  %v1589_v58 = vld [vmem:[%s12737_s20 + $0x48] sm:$0xff] }
  0xda   :  { %6393 = vmatpush.xpose.msk.msrb.mxu2 %vm143_vm0, %v9356_v61  ;;  %v1870_v61 = vld [vmem:[%s12737_s20 + $0xf9] sm:$0xff]  ;;  %v10050_v15 = vadd.f32 %v527_v2, %v325_v60  ;;  %v1605_v60 = vld [vmem:[%s12737_s20 + $0xc8] sm:$0xff] }
  0xdb   :  { %6417 = vmatpush.xpose.msk.msrb.mxu3 %vm143_vm0, %v9771_v46  ;;  %6240 = vmatmul.msk.f32.gmra.mxu0 %vm143_vm0, %v6216_v22  ;;  %v6219_v7 = vld [vmem:[%s12744_s25 + $0x128] sm:$0xff] }
  0xdc   :  { %6338 = vmatpush.xpose.msk.msrb.mxu0 %vm143_vm0, %v1595_v57  ;;  %6264 = vmatmul.msk.f32.gmra.mxu1 %vm143_vm0, %v6216_v22  ;;  %v6275_v2 = vld [vmem:[%s12744_s25 + $0x168] sm:$0xff]  ;;  %v1587_v22 = vld [vmem:[%s12737_s20 + $0x38] sm:$0xff] }
  0xdd   :  { %6362 = vmatpush.xpose.msk.msrb.mxu1 %vm143_vm0, %v1611_v6  ;;  %6296 = vmatmul.msk.f32.gmra.mxu2 %vm143_vm0, %v6272_v23 }
  0xde   :  { %6394 = vmatpush.xpose.msk.msrb.mxu2 %vm143_vm0, %v1854_v3  ;;  %6320 = vmatmul.msk.f32.gmra.mxu3 %vm143_vm0, %v6272_v23  ;;  %v1588_v3 = vld [vmem:[%s12737_s20 + $0x40] sm:$0xff]  ;;  %v1603_v23 = vld [vmem:[%s12737_s20 + $0xb8] sm:$0xff] }
  0xdf   :  { %6418 = vmatpush.xpose.msk.msrb.mxu3 %vm143_vm0, %v1870_v61  ;;  %v1604_v61 = vld [vmem:[%s12737_s20 + $0xc0] sm:$0xff] }
  0xe0   :  { %6339 = vmatpush.xpose.msk.msrb.mxu0 %vm143_vm0, %v1594_v18  ;;  %v489_v34 = vpop.f32.mrf.mxu2  ;;  %v290_v4 = vpop.f32.mrf.mxu0 }
  0xe1   :  { %6363 = vmatpush.xpose.msk.msrb.mxu1 %vm143_vm0, %v1610_v19  ;;  %v530_v46 = vpop.f32.mrf.mxu3  ;;  %v10094_v0 = vadd.f32 %v489_v34, %v287_v10  ;;  %v331_v5 = vpop.f32.mrf.mxu1  ;;  %v1847_v10 = vld [vmem:[%s12737_s20 + $0x41] sm:$0xff] }
  0xe2   :  { %6395 = vmatpush.xpose.msk.msrb.mxu2 %vm143_vm0, %v1853_v30  ;;  %v10096_v1 = vadd.f32 %v530_v46, %v328_v11  ;;  %v1863_v11 = vld [vmem:[%s12737_s20 + $0xc1] sm:$0xff]  ;;  %v1846_v30 = vld [vmem:[%s12737_s20 + $0x39] sm:$0xff] }
  0xe3   :  { %6419 = vmatpush.xpose.msk.msrb.mxu3 %vm143_vm0, %v1869_v31  ;;  %6241 = vmatmul.msk.f32.gmra.mxu0 %vm143_vm0, %v6217_v8  ;;  %v1862_v31 = vld [vmem:[%s12737_s20 + $0xb9] sm:$0xff] }
  0xe4   :  { %6340 = vmatpush.xpose.msk.msrb.mxu0 %vm143_vm0, %v1593_v26  ;;  %6265 = vmatmul.msk.f32.gmra.mxu1 %vm143_vm0, %v6217_v8  ;;  %v1845_v8 = vld [vmem:[%s12737_s20 + $0x31] sm:$0xff] }
  0xe5   :  { %6364 = vmatpush.xpose.msk.msrb.mxu1 %vm143_vm0, %v1609_v38  ;;  %6297 = vmatmul.msk.f32.gmra.mxu2 %vm143_vm0, %v6273_v9 }
  0xe6   :  { %6396 = vmatpush.xpose.msk.msrb.mxu2 %vm143_vm0, %v1852_v50  ;;  %6321 = vmatmul.msk.f32.gmra.mxu3 %vm143_vm0, %v6273_v9  ;;  %v6220_v50 = vld [vmem:[%s12744_s25 + $0x130] sm:$0xff] }
  0xe7   :  { %6420 = vmatpush.xpose.msk.msrb.mxu3 %vm143_vm0, %v1868_v43  ;;  %v6276_v43 = vld [vmem:[%s12744_s25 + $0x170] sm:$0xff] }
  0xe8   :  { %6341 = vmatpush.xpose.msk.msrb.mxu0 %vm143_vm0, %v1592_v12  ;;  %v492_v24 = vpop.f32.mrf.mxu2  ;;  %v293_v36 = vpop.f32.mrf.mxu0  ;;  %v1861_v9 = vld [vmem:[%s12737_s20 + $0xb1] sm:$0xff]  ;;  %v1585_v12 = vld [vmem:[%s12737_s20 + $0x28] sm:$0xff] }
  0xe9   :  { %6365 = vmatpush.xpose.msk.msrb.mxu1 %vm143_vm0, %v1608_v13  ;;  %v533_v25 = vpop.f32.mrf.mxu3  ;;  %v10140_v32 = vadd.f32 %v492_v24, %v290_v4  ;;  %v334_v37 = vpop.f32.mrf.mxu1  ;;  %v1586_v4 = vld [vmem:[%s12737_s20 + $0x30] sm:$0xff]  ;;  %v1601_v13 = vld [vmem:[%s12737_s20 + $0xa8] sm:$0xff] }
  0xea   :  { %6397 = vmatpush.xpose.msk.msrb.mxu2 %vm143_vm0, %v1851_v16  ;;  %v10142_v33 = vadd.f32 %v533_v25, %v331_v5  ;;  %v1602_v5 = vld [vmem:[%s12737_s20 + $0xb0] sm:$0xff] }
  0xeb   :  { %6421 = vmatpush.xpose.msk.msrb.mxu3 %vm143_vm0, %v1867_v17  ;;  %6242 = vmatmul.msk.f32.gmra.mxu0 %vm143_vm0, %v6218_v40 }
  0xec   :  { %6342 = vmatpush.xpose.msk.msrb.mxu0 %vm143_vm0, %v1591_v20  ;;  %6266 = vmatmul.msk.f32.gmra.mxu1 %vm143_vm0, %v6218_v40  ;;  %v1844_v20 = vld [vmem:[%s12737_s20 + $0x29] sm:$0xff]  ;;  %v1584_v40 = vld [vmem:[%s12737_s20 + $0x20] sm:$0xff] }
  0xed   :  { %6366 = vmatpush.xpose.msk.msrb.mxu1 %vm143_vm0, %v1607_v21  ;;  %6298 = vmatmul.msk.f32.gmra.mxu2 %vm143_vm0, %v6274_v41  ;;  %v1860_v21 = vld [vmem:[%s12737_s20 + $0xa9] sm:$0xff] }
  0xee   :  { %6398 = vmatpush.xpose.msk.msrb.mxu2 %vm143_vm0, %v1850_v28  ;;  %6322 = vmatmul.msk.f32.gmra.mxu3 %vm143_vm0, %v6274_v41  ;;  %v1600_v41 = vld [vmem:[%s12737_s20 + $0xa0] sm:$0xff] }
  0xef   :  { %6422 = vmatpush.xpose.msk.msrb.mxu3 %vm143_vm0, %v1866_v29 }
  0xf0   :  { %6343 = vmatpush.xpose.msk.msrb.mxu0 %vm143_vm0, %v1590_v44  ;;  %v495_v62 = vpop.f32.mrf.mxu2  ;;  %v296_v57 = vpop.f32.mrf.mxu0  ;;  %v1843_v44 = vld [vmem:[%s12737_s20 + $0x21] sm:$0xff] }
  0xf1   :  { %6367 = vmatpush.xpose.msk.msrb.mxu1 %vm143_vm0, %v1606_v45  ;;  %v536_v55 = vpop.f32.mrf.mxu3  ;;  %v10186_v59 = vadd.f32 %v495_v62, %v293_v36  ;;  %v337_v6 = vpop.f32.mrf.mxu1  ;;  %v6221_v36 = vld [vmem:[%s12744_s25 + $0x138] sm:$0xff]  ;;  %v1859_v45 = vld [vmem:[%s12737_s20 + $0xa1] sm:$0xff] }
  0xf2   :  { %6399 = vmatpush.xpose.msk.msrb.mxu2 %vm143_vm0, %v1849_v49  ;;  %v10188_v48 = vadd.f32 %v536_v55, %v334_v37  ;;  %v6277_v37 = vld [vmem:[%s12744_s25 + $0x178] sm:$0xff] }
  0xf3   :  { %6423 = vmatpush.xpose.msk.msrb.mxu3 %vm143_vm0, %v1865_v51  ;;  %6243 = vmatmul.msk.f32.gmra.mxu0 %vm143_vm0, %v6219_v7  ;;  %v2133_v49 = vld [vmem:[%s12737_s20 + $0x11a] sm:$0xff] }
  0xf4   :  { %6344 = vmatpush.xpose.msk.msrb.mxu0 %vm143_vm0, %v1589_v58  ;;  %6267 = vmatmul.msk.f32.gmra.mxu1 %vm143_vm0, %v6219_v7 }
  0xf5   :  { %6368 = vmatpush.xpose.msk.msrb.mxu1 %vm143_vm0, %v1605_v60  ;;  %6299 = vmatmul.msk.f32.gmra.mxu2 %vm143_vm0, %v6275_v2 }
  0xf6   :  { %6400 = vmatpush.xpose.msk.msrb.mxu2 %vm143_vm0, %v1848_v53  ;;  %6323 = vmatmul.msk.f32.gmra.mxu3 %vm143_vm0, %v6275_v2 }
  0xf7   :  { %6424 = vmatpush.xpose.msk.msrb.mxu3 %vm143_vm0, %v1864_v52  ;;  %v6326_v52 = vld [vmem:[%s12744_s25 + $0x180] sm:$0xff] }
  0xf8   :  { %6345 = vmatpush.xpose.msk.msrb.mxu0 %vm143_vm0, %v1588_v3  ;;  %v498_v18 = vpop.f32.mrf.mxu2  ;;  %v299_v34 = vpop.f32.mrf.mxu0 }
  0xf9   :  { %6369 = vmatpush.xpose.msk.msrb.mxu1 %vm143_vm0, %v1604_v61  ;;  %v539_v19 = vpop.f32.mrf.mxu3  ;;  %v10232_v26 = vadd.f32 %v498_v18, %v296_v57  ;;  %v340_v46 = vpop.f32.mrf.mxu1  ;;  %v6382_v57 = vld [vmem:[%s12744_s25 + $0x1c0] sm:$0xff] }
  0xfa   :  { %6401 = vmatpush.xpose.msk.msrb.mxu2 %vm143_vm0, %v1847_v10  ;;  %v10234_v38 = vadd.f32 %v539_v19, %v337_v6 }
  0xfb   :  { %6425 = vmatpush.xpose.msk.msrb.mxu3 %vm143_vm0, %v1863_v11  ;;  %6244 = vmatmul.msk.f32.gmra.mxu0 %vm143_vm0, %v6220_v50 }
  0xfc   :  { %6346 = vmatpush.xpose.msk.msrb.mxu0 %vm143_vm0, %v1587_v22  ;;  %6268 = vmatmul.msk.f32.gmra.mxu1 %vm143_vm0, %v6220_v50  ;;  %v2111_v50 = vld [vmem:[%s12737_s20 + $0x6a] sm:$0xff] }
  0xfd   :  { %6370 = vmatpush.xpose.msk.msrb.mxu1 %vm143_vm0, %v1603_v23  ;;  %6300 = vmatmul.msk.f32.gmra.mxu2 %vm143_vm0, %v6276_v43 }
  0xfe   :  { %6402 = vmatpush.xpose.msk.msrb.mxu2 %vm143_vm0, %v1846_v30  ;;  %6324 = vmatmul.msk.f32.gmra.mxu3 %vm143_vm0, %v6276_v43  ;;  %v2112_v30 = vld [vmem:[%s12737_s20 + $0x72] sm:$0xff]  ;;  %v2127_v43 = vld [vmem:[%s12737_s20 + $0xea] sm:$0xff] }
  0xff   :  { %6426 = vmatpush.xpose.msk.msrb.mxu3 %vm143_vm0, %v1862_v31  ;;  %v2128_v31 = vld [vmem:[%s12737_s20 + $0xf2] sm:$0xff] }
 0x100   :  { %6347 = vmatpush.xpose.msk.msrb.mxu0 %vm143_vm0, %v1586_v4  ;;  %v501_v16 = vpop.f32.mrf.mxu2  ;;  %v302_v28 = vpop.f32.mrf.mxu0 }
 0x101   :  { %6371 = vmatpush.xpose.msk.msrb.mxu1 %vm143_vm0, %v1602_v5  ;;  %v542_v17 = vpop.f32.mrf.mxu3  ;;  %v10278_v24 = vadd.f32 %v501_v16, %v299_v34  ;;  %v343_v29 = vpop.f32.mrf.mxu1  ;;  %v2110_v16 = vld [vmem:[%s12737_s20 + $0x62] sm:$0xff] }
 0x102   :  { %6403 = vmatpush.xpose.msk.msrb.mxu2 %vm143_vm0, %v1845_v8  ;;  %v10280_v25 = vadd.f32 %v542_v17, %v340_v46  ;;  %v2126_v17 = vld [vmem:[%s12737_s20 + $0xe2] sm:$0xff] }
 0x103   :  { %6427 = vmatpush.xpose.msk.msrb.mxu3 %vm143_vm0, %v1861_v9  ;;  %6245 = vmatmul.msk.f32.gmra.mxu0 %vm143_vm0, %v6221_v36 }
 0x104   :  { %6348 = vmatpush.xpose.msk.msrb.mxu0 %vm143_vm0, %v1585_v12  ;;  %6269 = vmatmul.msk.f32.gmra.mxu1 %vm143_vm0, %v6221_v36 }
 0x105   :  { %6372 = vmatpush.xpose.msk.msrb.mxu1 %vm143_vm0, %v1601_v13  ;;  %6301 = vmatmul.msk.f32.gmra.mxu2 %vm143_vm0, %v6277_v37 }
 0x106   :  { %6404 = vmatpush.xpose.msk.msrb.mxu2 %vm143_vm0, %v1844_v20  ;;  %6325 = vmatmul.msk.f32.gmra.mxu3 %vm143_vm0, %v6277_v37  ;;  %v2109_v20 = vld [vmem:[%s12737_s20 + $0x5a] sm:$0xff] }
 0x107   :  { %6428 = vmatpush.xpose.msk.msrb.mxu3 %vm143_vm0, %v1860_v21  ;;  %v2125_v21 = vld [vmem:[%s12737_s20 + $0xda] sm:$0xff] }
 0x108   :  { %6349 = vmatpush.xpose.msk.msrb.mxu0 %vm143_vm0, %v1584_v40  ;;  %v504_v51 = vpop.f32.mrf.mxu2  ;;  %v726_v55 = vpop.f32.mrf.mxu0  ;;  %v6330_v40 = vld [vmem:[%s12744_s25 + $0x1a0] sm:$0xff] }
 0x109   :  { %6373 = vmatpush.xpose.msk.msrb.mxu1 %vm143_vm0, %v1600_v41  ;;  %v545_v58 = vpop.f32.mrf.mxu3  ;;  %v10318_v60 = vadd.f32 %v504_v51, %v302_v28  ;;  %v767_v53 = vpop.f32.mrf.mxu1  ;;  %v791_v6 = vadd.f32 %v726_v55, %v10006_v63  ;;  %v6383_v63 = vld [vmem:[%s12744_s25 + $0x1c8] sm:$0xff]  ;;  %v6386_v41 = vld [vmem:[%s12744_s25 + $0x1e0] sm:$0xff] }
 0x10a   :  { %6405 = vmatpush.xpose.msk.msrb.mxu2 %vm143_vm0, %v1843_v44  ;;  %v10320_v62 = vadd.f32 %v545_v58, %v343_v29  ;;  %v792_v7 = vadd.f32 %v767_v53, %v10008_v56  ;;  %v2108_v44 = vld [vmem:[%s12737_s20 + $0x52] sm:$0xff]  ;;  %v2107_v58 = vld [vmem:[%s12737_s20 + $0x4a] sm:$0xff] }
 0x10b   :  { %6429 = vmatpush.xpose.msk.msrb.mxu3 %vm143_vm0, %v1859_v45  ;;  %6350 = vmatmul.msk.f32.vlgmr.msrb.gmra.mxu0 %vm143_vm0, %v6326_v52  ;;  %v2124_v45 = vld [vmem:[%s12737_s20 + $0xd2] sm:$0xff]  ;;  %v2123_v55 = vld [vmem:[%s12737_s20 + $0xca] sm:$0xff] }
 0x10c   :  { %6446 = vmatpush.xpose.msk.msra.mxu0 %vm143_vm0, %v9662_v27  ;;  %12755 = vst [vmem:[#allocation2_spill] sm:$0xff] %v10320_v62  ;;  %v2132_v27 = vld [vmem:[%s12737_s20 + $0x112] sm:$0xff]  ;;  %6374 = vmatmul.msk.f32.vlgmr.msrb.gmra.mxu1 %vm143_vm0, %v6326_v52 }
 0x10d   :  { %6470 = vmatpush.xpose.msk.msra.mxu1 %vm143_vm0, %v2133_v49  ;;  %6406 = vmatmul.msk.f32.vlgmr.msrb.gmra.mxu2 %vm143_vm0, %v6382_v57 }
 0x10e   :  { %6430 = vmatmul.msk.f32.vlgmr.msrb.gmra.mxu3 %vm143_vm0, %v6382_v57 }
 0x110   :  { %6447 = vmatpush.xpose.msk.msra.mxu0 %vm143_vm0, %v9688_v39  ;;  %v985_v2 = vpop.f32.mrf.mxu2  ;;  %v10344_v11 = vpop.f32.mrf.mxu0  ;;  %v6327_v39 = vld [vmem:[%s12744_s25 + $0x188] sm:$0xff] }
 0x111   :  { %6471 = vmatpush.xpose.msk.msra.mxu1 %vm143_vm0, %v2132_v27  ;;  %v1026_v3 = vpop.f32.mrf.mxu3  ;;  %v10340_v61 = vadd.f32 %v985_v2, %v791_v6  ;;  %v10346_v22 = vpop.f32.mrf.mxu1  ;;  %v2362_v2 = vld [vmem:[%s12756_s26 + $0x8] sm:$0xff] }
 0x112   :  { %v10342_v10 = vadd.f32 %v1026_v3, %v792_v7  ;;  %v6387_v3 = vld [vmem:[%s12744_s25 + $0x1e8] sm:$0xff] }
 0x113   :  { %6351 = vmatmul.msk.f32.gmra.mxu0 %vm143_vm0, %v6327_v39 }
 0x114   :  { %6448 = vmatpush.xpose.msk.msra.mxu0 %vm143_vm0, %v9706_v35  ;;  %6375 = vmatmul.msk.f32.gmra.mxu1 %vm143_vm0, %v6327_v39  ;;  %v2113_v35 = vld [vmem:[%s12737_s20 + $0x7a] sm:$0xff]  ;;  %v2106_v39 = vld [vmem:[%s12737_s20 + $0x42] sm:$0xff] }
 0x115   :  { %6472 = vmatpush.xpose.msk.msra.mxu1 %vm143_vm0, %v9752_v42  ;;  %6407 = vmatmul.msk.f32.gmra.mxu2 %vm143_vm0, %v6383_v63  ;;  %v2129_v42 = vld [vmem:[%s12737_s20 + $0xfa] sm:$0xff] }
 0x116   :  { %6431 = vmatmul.msk.f32.gmra.mxu3 %vm143_vm0, %v6383_v63  ;;  %v2122_v63 = vld [vmem:[%s12737_s20 + $0xc2] sm:$0xff] }
 0x118   :  { %6449 = vmatpush.xpose.msk.msra.mxu0 %vm143_vm0, %v9729_v47  ;;  %v10372_v56 = vpop.f32.mrf.mxu2  ;;  %v732_v18 = vpop.f32.mrf.mxu0  ;;  %v6328_v47 = vld [vmem:[%s12744_s25 + $0x190] sm:$0xff] }
 0x119   :  { %6473 = vmatpush.xpose.msk.msra.mxu1 %vm143_vm0, %v9778_v54  ;;  %v10374_v23 = vpop.f32.mrf.mxu3  ;;  %v773_v19 = vpop.f32.mrf.mxu1  ;;  %v6384_v54 = vld [vmem:[%s12744_s25 + $0x1d0] sm:$0xff]  ;;  %v795_v34 = vadd.f32 %v732_v18, %v10094_v0  ;;  %v6329_v0 = vld [vmem:[%s12744_s25 + $0x198] sm:$0xff] }
 0x11a   :  { %v796_v46 = vadd.f32 %v773_v19, %v10096_v1  ;;  %v6385_v1 = vld [vmem:[%s12744_s25 + $0x1d8] sm:$0xff] }
 0x11b   :  { %6352 = vmatmul.msk.f32.gmra.mxu0 %vm143_vm0, %v6328_v47 }
 0x11c   :  { %6450 = vmatpush.xpose.msk.msra.mxu0 %vm143_vm0, %v2113_v35  ;;  %6376 = vmatmul.msk.f32.gmra.mxu1 %vm143_vm0, %v6328_v47  ;;  %v2105_v35 = vld [vmem:[%s12737_s20 + $0x3a] sm:$0xff] }
 0x11d   :  { %6474 = vmatpush.xpose.msk.msra.mxu1 %vm143_vm0, %v2129_v42  ;;  %6408 = vmatmul.msk.f32.gmra.mxu2 %vm143_vm0, %v6384_v54  ;;  %v2121_v42 = vld [vmem:[%s12737_s20 + $0xba] sm:$0xff] }
 0x11e   :  { %6432 = vmatmul.msk.f32.gmra.mxu3 %vm143_vm0, %v6384_v54 }
 0x120   :  { %6451 = vmatpush.xpose.msk.msra.mxu0 %vm143_vm0, %v2112_v30  ;;  %v991_v4 = vpop.f32.mrf.mxu2  ;;  %v10408_v12 = vpop.f32.mrf.mxu0  ;;  %v6332_v30 = vld [vmem:[%s12744_s25 + $0x1b0] sm:$0xff] }
 0x121   :  { %6475 = vmatpush.xpose.msk.msra.mxu1 %vm143_vm0, %v2128_v31  ;;  %v1032_v5 = vpop.f32.mrf.mxu3  ;;  %v10404_v8 = vadd.f32 %v991_v4, %v795_v34  ;;  %v10410_v13 = vpop.f32.mrf.mxu1  ;;  %v2361_v31 = vld [vmem:[%s12756_s26] sm:$0xff]  ;;  %v6388_v34 = vld [vmem:[%s12744_s25 + $0x1f0] sm:$0xff] }
 0x122   :  { %v10406_v9 = vadd.f32 %v1032_v5, %v796_v46  ;;  %v2104_v46 = vld [vmem:[%s12737_s20 + $0x32] sm:$0xff]  ;;  %v2103_v5 = vld [vmem:[%s12737_s20 + $0x2a] sm:$0xff] }
 0x123   :  { %6353 = vmatmul.msk.f32.gmra.mxu0 %vm143_vm0, %v6329_v0 }
 0x124   :  { %6452 = vmatpush.xpose.msk.msra.mxu0 %vm143_vm0, %v2111_v50  ;;  %6377 = vmatmul.msk.f32.gmra.mxu1 %vm143_vm0, %v6329_v0  ;;  %v2120_v50 = vld [vmem:[%s12737_s20 + $0xb2] sm:$0xff]  ;;  %v2119_v0 = vld [vmem:[%s12737_s20 + $0xaa] sm:$0xff] }
 0x125   :  { %6476 = vmatpush.xpose.msk.msra.mxu1 %vm143_vm0, %v2127_v43  ;;  %6409 = vmatmul.msk.f32.gmra.mxu2 %vm143_vm0, %v6385_v1 }
 0x126   :  { %6433 = vmatmul.msk.f32.gmra.mxu3 %vm143_vm0, %v6385_v1 }
 0x128   :  { %6453 = vmatpush.xpose.msk.msra.mxu0 %vm143_vm0, %v2110_v16  ;;  %v10438_v28 = vpop.f32.mrf.mxu2  ;;  %v738_v36 = vpop.f32.mrf.mxu0 }
 0x129   :  { %6477 = vmatpush.xpose.msk.msra.mxu1 %vm143_vm0, %v2126_v17  ;;  %v10440_v29 = vpop.f32.mrf.mxu3  ;;  %v779_v37 = vpop.f32.mrf.mxu1  ;;  %v799_v49 = vadd.f32 %v738_v36, %v10186_v59  ;;  %v6331_v59 = vld [vmem:[%s12744_s25 + $0x1a8] sm:$0xff] }
 0x12a   :  { %v800_v51 = vadd.f32 %v779_v37, %v10188_v48  ;;  %v8828_v48 = vmov 0   ;;  %v2368_v37 = vld [vmem:[%s12756_s26 + $0x38] sm:$0xff] }
 0x12b   :  { %6354 = vmatmul.msk.f32.gmra.mxu0 %vm143_vm0, %v6330_v40  ;;  %8812 = vset.pattern.permute.xlu0 %v8828_v48 }
 0x12c   :  { %6454 = vmatpush.xpose.msk.msra.mxu0 %vm143_vm0, %v2109_v20  ;;  %6378 = vmatmul.msk.f32.gmra.mxu1 %vm143_vm0, %v6330_v40  ;;  %v6389_v40 = vld [vmem:[%s12744_s25 + $0x1f8] sm:$0xff] }
 0x12d   :  { %6478 = vmatpush.xpose.msk.msra.mxu1 %vm143_vm0, %v2125_v21  ;;  %6410 = vmatmul.msk.f32.gmra.mxu2 %vm143_vm0, %v6386_v41 }
 0x12e   :  { %6434 = vmatmul.msk.f32.gmra.mxu3 %vm143_vm0, %v6386_v41  ;;  %8813 = vset.pattern.permute.xlu1 %v8828_v48  ;;  %v2102_v41 = vld [vmem:[%s12737_s20 + $0x22] sm:$0xff] }
 0x12f   :  { %2376 = vperm.xlu0 %8812, %v2362_v2   ;;  %8814 = vset.pattern.permute.xlu2 %v8828_v48 }
 0x130   :  { %6455 = vmatpush.xpose.msk.msra.mxu0 %vm143_vm0, %v2108_v44  ;;  %v997_v53 = vpop.f32.mrf.mxu2  ;;  %v10474_v6 = vpop.f32.mrf.mxu0  ;;  %v2118_v44 = vld [vmem:[%s12737_s20 + $0xa2] sm:$0xff] }
 0x131   :  { %6479 = vmatpush.xpose.msk.msra.mxu1 %vm143_vm0, %v2124_v45  ;;  %v1038_v52 = vpop.f32.mrf.mxu3  ;;  %v10470_v57 = vadd.f32 %v997_v53, %v799_v49  ;;  %v10476_v7 = vpop.f32.mrf.mxu1  ;;  %v2363_v53 = vld [vmem:[%s12756_s26 + $0x10] sm:$0xff] }
 0x132   :  { %v10472_v27 = vadd.f32 %v1038_v52, %v800_v51 }
 0x133   :  { %6355 = vmatmul.msk.f32.gmra.mxu0 %vm143_vm0, %v6331_v59 }
 0x134   :  { %6456 = vmatpush.xpose.msk.msra.mxu0 %vm143_vm0, %v2107_v58  ;;  %6379 = vmatmul.msk.f32.gmra.mxu1 %vm143_vm0, %v6331_v59 }
 0x135   :  { %6480 = vmatpush.xpose.msk.msra.mxu1 %vm143_vm0, %v2123_v55  ;;  %6411 = vmatmul.msk.f32.gmra.mxu2 %vm143_vm0, %v6387_v3  ;;  %v6438_v55 = vld [vmem:[%s12744_s25 + $0x200] sm:$0xff] }
 0x136   :  { %6435 = vmatmul.msk.f32.gmra.mxu3 %vm143_vm0, %v6387_v3 }
 0x137   :  { %2371 = vperm.xlu0 %8812, %v2361_v31  }
 0x138   :  { %6457 = vmatpush.xpose.msk.msra.mxu0 %vm143_vm0, %v2106_v39  ;;  %v10507_v18 = vpop.f32.mrf.mxu2  ;;  %v744_v47 = vpop.f32.mrf.mxu0 }
 0x139   :  { %6481 = vmatpush.xpose.msk.msra.mxu1 %vm143_vm0, %v2122_v63  ;;  %v10509_v19 = vpop.f32.mrf.mxu3  ;;  %v785_v54 = vpop.f32.mrf.mxu1  ;;  %v803_v43 = vadd.f32 %v744_v47, %v10278_v24  ;;  %v6333_v24 = vld [vmem:[%s12744_s25 + $0x1b8] sm:$0xff]  ;;  %v6440_v47 = vld [vmem:[%s12744_s25 + $0x210] sm:$0xff] }
 0x13a   :  { %v804_v4 = vadd.f32 %v785_v54, %v10280_v25  ;;  %v2364_v25 = vld [vmem:[%s12756_s26 + $0x18] sm:$0xff] }
 0x13b   :  { %6356 = vmatmul.msk.f32.gmra.mxu0 %vm143_vm0, %v6332_v30  ;;  %2386 = vperm.xlu1 %8813, %v2364_v25  }
 0x13c   :  { %6458 = vmatpush.xpose.msk.msra.mxu0 %vm143_vm0, %v2105_v35  ;;  %6380 = vmatmul.msk.f32.gmra.mxu1 %vm143_vm0, %v6332_v30 }
 0x13d   :  { %6482 = vmatpush.xpose.msk.msra.mxu1 %vm143_vm0, %v2121_v42  ;;  %6412 = vmatmul.msk.f32.gmra.mxu2 %vm143_vm0, %v6388_v34 }
 0x13e   :  { %6436 = vmatmul.msk.f32.gmra.mxu3 %vm143_vm0, %v6388_v34 }
 0x13f   :  { %2406 = vperm.xlu0 %8812, %v2368_v37  }
 0x140   :  { %6459 = vmatpush.xpose.msk.msra.mxu0 %vm143_vm0, %v2104_v46  ;;  %v1003_v1 = vpop.f32.mrf.mxu2  ;;  %v10546_v21 = vpop.f32.mrf.mxu0  ;;  %v6441_v46 = vld [vmem:[%s12744_s25 + $0x218] sm:$0xff] }
 0x141   :  { %6483 = vmatpush.xpose.msk.msra.mxu1 %vm143_vm0, %v2120_v50  ;;  %v1044_v16 = vpop.f32.mrf.mxu3  ;;  %v10542_v17 = vadd.f32 %v1003_v1, %v803_v43  ;;  %v10548_v36 = vpop.f32.mrf.mxu1  ;;  %v2366_v43 = vld [vmem:[%s12756_s26 + $0x28] sm:$0xff] }
 0x142   :  { %v10544_v20 = vadd.f32 %v1044_v16, %v804_v4  ;;  %12757 = vst [vmem:[#allocation3_spill] sm:$0xff] %v10548_v36  ;;  %v2367_v4 = vld [vmem:[%s12756_s26 + $0x30] sm:$0xff]  ;;  %2396 = vperm.xlu2 %8814, %v2366_v43  }
 0x143   :  { %6357 = vmatmul.msk.f32.gmra.mxu0 %vm143_vm0, %v6333_v24  ;;  %2381 = vperm.xlu1 %8813, %v2363_v53   ;;  %v8443_v53 = vld [vmem:[%s12759_s23 + $0xb8] sm:$0xff] }
 0x144   :  { %6460 = vmatpush.xpose.msk.msra.mxu0 %vm143_vm0, %v2103_v5  ;;  %6381 = vmatmul.msk.f32.gmra.mxu1 %vm143_vm0, %v6333_v24  ;;  %v6443_v24 = vld [vmem:[%s12744_s25 + $0x228] sm:$0xff] }
 0x145   :  { %6484 = vmatpush.xpose.msk.msra.mxu1 %vm143_vm0, %v2119_v0  ;;  %6413 = vmatmul.msk.f32.gmra.mxu2 %vm143_vm0, %v6389_v40 }
 0x146   :  { %6437 = vmatmul.msk.f32.gmra.mxu3 %vm143_vm0, %v6389_v40  ;;  %2606 = vmatpush.bf16.msra.mxu2 %v8443_v53 }
 0x148   :  { %6461 = vmatpush.xpose.msk.msra.mxu0 %vm143_vm0, %v2102_v41  ;;  %v10576_v45 = vpop.f32.mrf.mxu2  ;;  %v1244_v51 = vpop.f32.mrf.mxu0  ;;  %v6444_v41 = vld [vmem:[%s12744_s25 + $0x230] sm:$0xff] }
 0x149   :  { %6485 = vmatpush.xpose.msk.msra.mxu1 %vm143_vm0, %v2118_v44  ;;  %v10578_v49 = vpop.f32.mrf.mxu3  ;;  %v1285_v58 = vpop.f32.mrf.mxu1  ;;  %v1309_v52 = vadd.f32 %v1244_v51, %v10340_v61  ;;  %v6439_v61 = vld [vmem:[%s12744_s25 + $0x208] sm:$0xff] }
 0x14a   :  { %12758 = vst [vmem:[#allocation4_spill] sm:$0xff] %v10578_v49  ;;  %v1310_v59 = vadd.f32 %v1285_v58, %v10342_v10  ;;  %v8492_v49 = vld [vmem:[%s12759_s23 + $0x240] sm:$0xff] }
 0x14b   :  { %6462 = vmatmul.msk.f32.vlgmr.msra.gmra.mxu0 %vm143_vm0, %v6438_v55  ;;  %2401 = vperm.xlu1 %8813, %v2367_v4   ;;  %v8440_v4 = vld [vmem:[%s12759_s23 + $0xa0] sm:$0xff] }
 0x14c   :  { %6486 = vmatmul.msk.f32.vlgmr.msra.gmra.mxu1 %vm143_vm0, %v6438_v55  ;;  %v805_v55 = vadd.f32 %v10546_v21, %v10318_v60  ;;  %v8442_v21 = vld [vmem:[%s12759_s23 + $0xb0] sm:$0xff] }
 0x14d   :  { %2607 = vmatpush.bf16.msra.mxu2 %v8442_v21  ;;  %v8438_v21 = vld [vmem:[%s12759_s23 + $0x90] sm:$0xff] }
 0x150   :  { %v1503_v48 = vpop.f32.mrf.mxu2  ;;  %v10594_v63 = vpop.f32.mrf.mxu0 }
 0x151   :  { %v1544_v2 = vpop.f32.mrf.mxu3  ;;  %v10590_v3 = vadd.f32 %v1503_v48, %v1309_v52  ;;  %v10596_v35 = vpop.f32.mrf.mxu1  ;;  %v1064_v52 = vadd.f32 %v10576_v45, %v805_v55 }
 0x152   :  { %v10592_v39 = vadd.f32 %v1544_v2, %v1310_v59  ;;  %v6445_v2 = vld [vmem:[%s12744_s25 + $0x238] sm:$0xff] }
 0x153   :  { %6463 = vmatmul.msk.f32.gmra.mxu0 %vm143_vm0, %v6439_v61 }
 0x154   :  { %6487 = vmatmul.msk.f32.gmra.mxu1 %vm143_vm0, %v6439_v61  ;;  %v8450_v61 = vld [vmem:[%s12759_s23 + $0xf0] sm:$0xff] }
 0x158   :  { %v1250_v10 = vpop.f32.mrf.mxu0 }
 0x159   :  { %v1291_v42 = vpop.f32.mrf.mxu1  ;;  %v10607_v54 = vadd.f32 %v1250_v10, %v10404_v8  ;;  %v10652_v25 = vpop.f32.mrf.mxu3 }
 0x15a   :  { %v10610_v30 = vadd.f32 %v1291_v42, %v10406_v9  ;;  %v6442_v9 = vld [vmem:[%s12744_s25 + $0x220] sm:$0xff]  ;;  %v8441_v42 = vld [vmem:[%s12759_s23 + $0xa8] sm:$0xff] }
 0x15b   :  { %6464 = vmatmul.msk.f32.gmra.mxu0 %vm143_vm0, %v6440_v47  ;;  %2608 = vmatpush.bf16.msra.mxu2 %v8441_v42  ;;  %v8456_v42 = vld [vmem:[%s12759_s23 + $0x120] sm:$0xff] }
 0x15c   :  { %6488 = vmatmul.msk.f32.gmra.mxu1 %vm143_vm0, %v6440_v47  ;;  %v8449_v47 = vld [vmem:[%s12759_s23 + $0xe8] sm:$0xff] }
 0x15f   :  { %2609 = vmatpush.bf16.msra.mxu2 %v8440_v4  ;;  %v8463_v4 = vld [vmem:[%s12759_s23 + $0x158] sm:$0xff] }
 0x160   :  { %v10614_v31 = vpop.f32.mrf.mxu0 }
 0x161   :  { %v10616_v34 = vpop.f32.mrf.mxu1  ;;  %v10666_v58 = vpop.f32.mrf.mxu3 }
 0x163   :  { %6465 = vmatmul.msk.f32.gmra.mxu0 %vm143_vm0, %v6441_v46 }
 0x164   :  { %6489 = vmatmul.msk.f32.gmra.mxu1 %vm143_vm0, %v6441_v46  ;;  %v8459_v46 = vld [vmem:[%s12759_s23 + $0x138] sm:$0xff] }
 0x165   :  { %2885 = vmatpush.bf16.msrb.mxu0 %v8459_v46  ;;  %v8437_v46 = vld [vmem:[%s12759_s23 + $0x88] sm:$0xff] }
 0x168   :  { %v1256_v8 = vpop.f32.mrf.mxu0 }
 0x169   :  { %v1297_v50 = vpop.f32.mrf.mxu1  ;;  %v10633_v5 = vadd.f32 %v1256_v8, %v10470_v57  ;;  %v2365_v57 = vld [vmem:[%s12756_s26 + $0x20] sm:$0xff]  ;;  %v10696_v10 = vpop.f32.mrf.mxu3  ;;  %v8467_v8 = vld [vmem:[%s12759_s23 + $0x178] sm:$0xff] }
 0x16a   :  { %v10636_v0 = vadd.f32 %v1297_v50, %v10472_v27  ;;  %v10650_v27 = vpop.f32.mrf.mxu2  ;;  %2391 = vperm.xlu2 %8814, %v2365_v57   ;;  %2898 = vmatpush.bf16.msrb.mxu1 %v8467_v8  ;;  %v8458_v57 = vld [vmem:[%s12759_s23 + $0x130] sm:$0xff]  ;;  %v8445_v8 = vld [vmem:[%s12759_s23 + $0xc8] sm:$0xff] }
 0x16b   :  { %6466 = vmatmul.msk.f32.gmra.mxu0 %vm143_vm0, %v6442_v9 }
 0x16c   :  { %6490 = vmatmul.msk.f32.gmra.mxu1 %vm143_vm0, %v6442_v9  ;;  %2886 = vmatpush.bf16.msrb.mxu0 %v8458_v57 }
 0x170   :  { %v10640_v1 = vpop.f32.mrf.mxu0 }
 0x171   :  { %v10642_v16 = vpop.f32.mrf.mxu1  ;;  %v10735_v53 = vpop.f32.mrf.mxu3 }
 0x172   :  { %v10664_v51 = vpop.f32.mrf.mxu2 }
 0x173   :  { %6467 = vmatmul.msk.f32.gmra.mxu0 %vm143_vm0, %v6443_v24 }
 0x174   :  { %6491 = vmatmul.msk.f32.gmra.mxu1 %vm143_vm0, %v6443_v24  ;;  %v8448_v24 = vld [vmem:[%s12759_s23 + $0xe0] sm:$0xff] }
 0x178   :  { %v10656_v37 = vpop.f32.mrf.mxu0 }
 0x179   :  { %v1303_v40 = vpop.f32.mrf.mxu1 }
 0x17a   :  { %v10662_v44 = vadd.f32 %v1303_v40, %v10544_v20  ;;  %v8451_v20 = vld [vmem:[%s12759_s23 + $0xf8] sm:$0xff]  ;;  %v10694_v45 = vpop.f32.mrf.mxu2  ;;  %v8466_v40 = vld [vmem:[%s12759_s23 + $0x170] sm:$0xff] }
 0x17b   :  { %6468 = vmatmul.msk.f32.gmra.mxu0 %vm143_vm0, %v6444_v41  ;;  %2619 = vmatpush.bf16.msra.mxu3 %v8451_v20  ;;  %v8457_v20 = vld [vmem:[%s12759_s23 + $0x128] sm:$0xff] }
 0x17c   :  { %6492 = vmatmul.msk.f32.gmra.mxu1 %vm143_vm0, %v6444_v41  ;;  %v8447_v41 = vld [vmem:[%s12759_s23 + $0xd8] sm:$0xff]  ;;  %2887 = vmatpush.bf16.msrb.mxu0 %v8457_v20  ;;  %v8436_v20 = vld [vmem:[%s12759_s23 + $0x80] sm:$0xff] }
 0x17d   :  { %2899 = vmatpush.bf16.msrb.mxu1 %v8466_v40  ;;  %v797_v40 = vadd.f32 %v10408_v12, %v10140_v32  ;;  %v8435_v32 = vld [vmem:[%s12759_s23 + $0x78] sm:$0xff]  ;;  %v8454_v12 = vld [vmem:[%s12759_s23 + $0x110] sm:$0xff] }
 0x17f   :  { %2620 = vmatpush.bf16.msra.mxu3 %v8450_v61  ;;  %v8446_v61 = vld [vmem:[%s12759_s23 + $0xd0] sm:$0xff] }
 0x180   :  { %v1265_v59 = vpop.f32.mrf.mxu0  ;;  %2888 = vmatpush.bf16.msrb.mxu0 %v8456_v42  ;;  %v1056_v42 = vadd.f32 %v10438_v28, %v797_v40  ;;  %v8453_v28 = vld [vmem:[%s12759_s23 + $0x108] sm:$0xff] }
 0x181   :  { %v10679_v48 = vpop.f32.mrf.mxu1  ;;  %v10684_v60 = vadd.f32 %v1265_v59, %v1064_v52  ;;  %v8465_v52 = vld [vmem:[%s12759_s23 + $0x168] sm:$0xff] }
 0x182   :  { %12760 = vst [vmem:[#allocation5_spill] sm:$0xff] %v10679_v48  ;;  %v10733_v55 = vpop.f32.mrf.mxu2  ;;  %2900 = vmatpush.bf16.msrb.mxu1 %v8465_v52  ;;  %v8444_v52 = vld [vmem:[%s12759_s23 + $0xc0] sm:$0xff]  ;;  %v8461_v40 = vld [vmem:[%s12759_s23 + $0x148] sm:$0xff] }
 0x183   :  { %6469 = vmatmul.msk.f32.gmra.mxu0 %vm143_vm0, %v6445_v2  ;;  %2621 = vmatpush.bf16.msra.mxu3 %v8449_v47  ;;  %v8464_v47 = vld [vmem:[%s12759_s23 + $0x160] sm:$0xff] }
 0x184   :  { %6493 = vmatmul.msk.f32.gmra.mxu1 %vm143_vm0, %v6445_v2 }
 0x186   :  { %2901 = vmatpush.bf16.msrb.mxu1 %v8464_v47  ;;  %v1315_v47 = vadd.f32 %v10614_v31, %v1056_v42  ;;  %v8491_v42 = vld [vmem:[%s12759_s23 + $0x238] sm:$0xff] }
 0x187   :  { %2622 = vmatpush.bf16.msra.mxu3 %v8448_v24 }
 0x188   :  { %v10710_v50 = vpop.f32.mrf.mxu0 }
 0x189   :  { %v1803_v9 = vpop.f32.mrf.mxu1 }
 0x18a   :  { %v10713_v43 = vadd.f32 %v1803_v9, %v10592_v39  ;;  %v8439_v39 = vld [vmem:[%s12759_s23 + $0x98] sm:$0xff]  ;;  %2902 = vmatpush.bf16.msrb.mxu1 %v8463_v4 }
 0x18b   :  { %2610 = vmatpush.bf16.msra.mxu2 %v8439_v39  ;;  %2623 = vmatpush.bf16.msra.mxu3 %v8447_v41  ;;  %v8455_v9 = vld [vmem:[%s12759_s23 + $0x118] sm:$0xff]  ;;  %v10777_v39 = vpop.f32.mrf.mxu2  ;;  %v10779_v41 = vpop.f32.mrf.mxu3 }
 0x18c   :  { %2889 = vmatpush.bf16.msrb.mxu0 %v8455_v9  ;;  %v8434_v9 = vld [vmem:[%s12759_s23 + $0x70] sm:$0xff] }
 0x18f   :  { %2611 = vmatpush.bf16.msra.mxu2 %v8438_v21  ;;  %2624 = vmatpush.bf16.msra.mxu3 %v8446_v61  ;;  %v8427_v21 = vld [vmem:[%s12759_s23 + $0x38] sm:$0xff]  ;;  %v8462_v61 = vld [vmem:[%s12759_s23 + $0x150] sm:$0xff] }
 0x190   :  { %v10743_v59 = vpop.f32.mrf.mxu0  ;;  %2890 = vmatpush.bf16.msrb.mxu0 %v8454_v12  ;;  %2903 = vmatpush.bf16.msrb.mxu1 %v8462_v61 }
 0x191   :  { %v10745_v2 = vpop.f32.mrf.mxu1 }
 0x193   :  { %2612 = vmatpush.bf16.msra.mxu2 %v8437_v46  ;;  %2625 = vmatpush.bf16.msra.mxu3 %v8445_v8  ;;  %v1574_v46 = vadd.f32 %v10694_v45, %v1315_v47  ;;  %v8426_v8 = vld [vmem:[%s12759_s23 + $0x30] sm:$0xff]  ;;  %v10830_v12 = vpop.f32.mrf.mxu2  ;;  %v10832_v61 = vpop.f32.mrf.mxu3  ;;  %v8499_v47 = vld [vmem:[%s12759_s23 + $0x278] sm:$0xff] }
 0x194   :  { %2891 = vmatpush.bf16.msrb.mxu0 %v8453_v28  ;;  %2904 = vmatpush.bf16.msrb.mxu1 %v8461_v40  ;;  %v8498_v40 = vld [vmem:[%s12759_s23 + $0x270] sm:$0xff] }
 0x197   :  { %2613 = vmatpush.bf16.msra.mxu2 %v8436_v20  ;;  %2626 = vmatpush.bf16.msra.mxu3 %v8444_v52  ;;  %v8425_v20 = vld [vmem:[%s12759_s23 + $0x28] sm:$0xff] }
 0x198   :  { %v10771_v24 = vpop.f32.mrf.mxu0  ;;  %v8433_v52 = vld [vmem:[%s12759_s23 + $0x68] sm:$0xff] }
 0x199   :  { %v10773_v57 = vpop.f32.mrf.mxu1 }
 0x19b   :  { %2728 = vmatpush.bf16.msrb.mxu2 %v8427_v21  ;;  %2741 = vmatpush.bf16.msrb.mxu3 %v8435_v32  ;;  %v8452_v21 = vld [vmem:[%s12759_s23 + $0x100] sm:$0xff] }
 0x19c   :  { %v8460_v32 = vld [vmem:[%s12759_s23 + $0x140] sm:$0xff]  ;;  %2892 = vmatpush.bf16.msrb.mxu0 %v8452_v21  ;;  %v8423_v21 = vld [vmem:[%s12759_s23 + $0x18] sm:$0xff] }
 0x19d   :  { %2905 = vmatpush.bf16.msrb.mxu1 %v8460_v32  ;;  %v8431_v32 = vld [vmem:[%s12759_s23 + $0x58] sm:$0xff] }
 0x19f   :  { %2729 = vmatpush.bf16.msrb.mxu2 %v8426_v8  ;;  %2742 = vmatpush.bf16.msrb.mxu3 %v8434_v9  ;;  %v8432_v8 = vld [vmem:[%s12759_s23 + $0x60] sm:$0xff] }
 0x1a0   :  { %v1771_v4 = vpop.f32.mrf.mxu0  ;;  %3201 = vmatpush.bf16.msra.mxu0 %v8491_v42  ;;  %v8489_v42 = vld [vmem:[%s12759_s23 + $0x228] sm:$0xff] }
 0x1a1   :  { %v10811_v31 = vpop.f32.mrf.mxu1  ;;  %v10816_v45 = vadd.f32 %v1771_v4, %v1574_v46  ;;  %3214 = vmatpush.bf16.msra.mxu1 %v8499_v47  ;;  %v8424_v46 = vld [vmem:[%s12759_s23 + $0x20] sm:$0xff]  ;;  %v8490_v4 = vld [vmem:[%s12759_s23 + $0x230] sm:$0xff]  ;;  %v10872_v47 = vpop.f32.mrf.mxu3 }
 0x1a2   :  { %12761 = vst [vmem:[#allocation6_spill] sm:$0xff] %v10872_v47 }
 0x1a3   :  { %2730 = vmatpush.bf16.msrb.mxu2 %v8425_v20  ;;  %2743 = vmatpush.bf16.msrb.mxu3 %v8433_v52  ;;  %v801_v20 = vadd.f32 %v10474_v6, %v10232_v26  ;;  %v8497_v26 = vld [vmem:[%s12759_s23 + $0x268] sm:$0xff] }
 0x1a4   :  { %3202 = vmatpush.bf16.msra.mxu0 %v8490_v4  ;;  %v8430_v4 = vld [vmem:[%s12759_s23 + $0x50] sm:$0xff] }
 0x1a5   :  { %v1060_v52 = vadd.f32 %v10507_v18, %v801_v20  ;;  %3215 = vmatpush.bf16.msra.mxu1 %v8498_v40  ;;  %v1524_v18 = vpop.f32.mrf.mxu2 }
 0x1a7   :  { %2731 = vmatpush.bf16.msrb.mxu2 %v8424_v46  ;;  %2744 = vmatpush.bf16.msrb.mxu3 %v8432_v8  ;;  %v1319_v6 = vadd.f32 %v10640_v1, %v1060_v52  ;;  %v8422_v8 = vld [vmem:[%s12759_s23 + $0x10] sm:$0xff]  ;;  %v8488_v1 = vld [vmem:[%s12759_s23 + $0x220] sm:$0xff] }
 0x1a8   :  { %v10846_v9 = vpop.f32.mrf.mxu0  ;;  %3203 = vmatpush.bf16.msra.mxu0 %v8489_v42  ;;  %v8487_v42 = vld [vmem:[%s12759_s23 + $0x218] sm:$0xff] }
 0x1a9   :  { %v10848_v28 = vpop.f32.mrf.mxu1  ;;  %v1578_v46 = vadd.f32 %v10777_v39, %v1319_v6  ;;  %3216 = vmatpush.bf16.msra.mxu1 %v8497_v26  ;;  %v8496_v39 = vld [vmem:[%s12759_s23 + $0x260] sm:$0xff]  ;;  %v8495_v26 = vld [vmem:[%s12759_s23 + $0x258] sm:$0xff] }
 0x1ab   :  { %2732 = vmatpush.bf16.msrb.mxu2 %v8423_v21  ;;  %2745 = vmatpush.bf16.msrb.mxu3 %v8431_v32  ;;  %v8421_v21 = vld [vmem:[%s12759_s23 + $0x8] sm:$0xff] }
 0x1ac   :  { %3204 = vmatpush.bf16.msra.mxu0 %v8488_v1  ;;  %v8429_v32 = vld [vmem:[%s12759_s23 + $0x48] sm:$0xff] }
 0x1ad   :  { %3217 = vmatpush.bf16.msra.mxu1 %v8496_v39  ;;  %v10903_v6 = vpop.f32.mrf.mxu2  ;;  %v8486_v39 = vld [vmem:[%s12759_s23 + $0x210] sm:$0xff] }
 0x1af   :  { %2733 = vmatpush.bf16.msrb.mxu2 %v8422_v8  ;;  %2746 = vmatpush.bf16.msrb.mxu3 %v8430_v4  ;;  %v8420_v8 = vld [vmem:[%s12759_s23] sm:$0xff] }
 0x1b0   :  { %v1777_v40 = vpop.f32.mrf.mxu0  ;;  %3205 = vmatpush.bf16.msra.mxu0 %v8487_v42  ;;  %v8428_v4 = vld [vmem:[%s12759_s23 + $0x40] sm:$0xff]  ;;  %v8493_v42 = vld [vmem:[%s12759_s23 + $0x248] sm:$0xff] }
 0x1b1   :  { %v10881_v20 = vpop.f32.mrf.mxu1  ;;  %v10889_v52 = vadd.f32 %v1777_v40, %v1578_v46  ;;  %v10905_v46 = vpop.f32.mrf.mxu3  ;;  %3218 = vmatpush.bf16.msra.mxu1 %v8495_v26  ;;  %v1582_v26 = vadd.f32 %v1524_v18, %v10684_v60  ;;  %v793_v60 = vadd.f32 %v10344_v11, %v10048_v14  ;;  %v794_v18 = vadd.f32 %v10346_v22, %v10050_v15 }
 0x1b2   :  { %v10952_v11 = vpop.permute.xlu1 %2386 }
 0x1b3   :  { %2734 = vmatpush.bf16.msrb.mxu2 %v8421_v21  ;;  %2747 = vmatpush.bf16.msrb.mxu3 %v8429_v32  ;;  %v8494_v21 = vld [vmem:[%s12759_s23 + $0x250] sm:$0xff]  ;;  %v8485_v32 = vld [vmem:[%s12759_s23 + $0x208] sm:$0xff] }
 0x1b4   :  { %3206 = vmatpush.bf16.msra.mxu0 %v8486_v39  ;;  %v8484_v39 = vld [vmem:[%s12759_s23 + $0x200] sm:$0xff] }
 0x1b5   :  { %3219 = vmatpush.bf16.msra.mxu1 %v8494_v21  ;;  %v2024_v21 = vpop.f32.mrf.mxu2 }
 0x1b7   :  { %2735 = vmatpush.bf16.msrb.mxu2 %v8420_v8  ;;  %2748 = vmatpush.bf16.msrb.mxu3 %v8428_v4 }
 0x1b8   :  { %v10913_v40 = vpop.f32.mrf.mxu0  ;;  %3207 = vmatpush.bf16.msra.mxu0 %v8485_v32  ;;  %v1052_v32 = vadd.f32 %v10372_v56, %v793_v60 }
 0x1b9   :  { %v10915_v1 = vpop.f32.mrf.mxu1  ;;  %3220 = vmatpush.bf16.msra.mxu1 %v8493_v42  ;;  %v2065_v47 = vpop.f32.mrf.mxu3  ;;  %v1053_v42 = vadd.f32 %v10374_v23, %v794_v18 }
 0x1bc   :  { %3208 = vmatpush.bf16.msra.mxu0 %v8484_v39 }
 0x1bd   :  { %3221 = vmatpush.bf16.msra.mxu1 %v8492_v49  ;;  %v2027_v39 = vpop.f32.mrf.mxu2 }
 0x1c0   :  { %v1783_v8 = vpop.f32.mrf.mxu0 }
 0x1c1   :  { %v10930_v4 = vpop.f32.mrf.mxu1  ;;  %v10935_v48 = vadd.f32 %v1783_v8, %v1582_v26  ;;  %v1311_v26 = vadd.f32 %v10594_v63, %v1052_v32  ;;  %v1312_v8 = vadd.f32 %v10596_v35, %v1053_v42  ;;  %v2068_v62 = vpop.f32.mrf.mxu3  ;;  %v1572_v35 = vadd.f32 %v10664_v51, %v10607_v54  ;;  %v8475_v54 = vld [vmem:[%s12759_s23 + $0x1b8] sm:$0xff] }
 0x1c2   :  { %12762 = vst [vmem:[#allocation8_spill] sm:$0xff] %v10930_v4  ;;  %v2377_v32 = vpop.permute.xlu0 %2376 }
 0x1c3   :  { %12763 = vst [vmem:[#allocation7_spill] sm:$0xff] %v10935_v48  ;;  %v1570_v48 = vadd.f32 %v10650_v27, %v1311_v26  ;;  %v1571_v49 = vadd.f32 %v10652_v25, %v1312_v8  ;;  %v1573_v27 = vadd.f32 %v10666_v58, %v10610_v30  ;;  %v1827_v8 = vadd.f32 %v10710_v50, %v10590_v3  ;;  %v8483_v30 = vld [vmem:[%s12759_s23 + $0x1f8] sm:$0xff] }
 0x1c4   :  { %v2087_v3 = vadd.f32 %v10905_v46, %v10713_v43 }
 0x1c5   :  { %v1829_v14 = vadd.f32 %v10743_v59, %v1570_v48  ;;  %v1830_v15 = vadd.f32 %v10745_v2, %v1571_v49  ;;  %v1831_v48 = vadd.f32 %v10771_v24, %v1572_v35  ;;  %v1832_v59 = vadd.f32 %v10773_v57, %v1573_v27  ;;  %v10960_v2 = vpop.f32.mrf.mxu2  ;;  %v2382_v49 = vpop.permute.xlu1 %2381  ;;  %v8473_v27 = vld [vmem:[%s12759_s23 + $0x1a8] sm:$0xff] }
 0x1c6   :  { %v798_v35 = vadd.f32 %v10410_v13, %v10142_v33  ;;  %v8523_v33 = vld [vmem:[%s12759_s23 + $0x338] sm:$0xff] }
 0x1c7   :  { %v2088_v22 = vadd.f32 %v2024_v21, %v1829_v14  ;;  %v2089_v56 = vadd.f32 %v2065_v47, %v1830_v15  ;;  %v2090_v51 = vadd.f32 %v2027_v39, %v1831_v48  ;;  %v2091_v58 = vadd.f32 %v2068_v62, %v1832_v59  ;;  %v8474_v62 = vld [vmem:[%s12759_s23 + $0x1b0] sm:$0xff]  ;;  %v8531_v13 = vld [vmem:[%s12759_s23 + $0x378] sm:$0xff] }
 0x1c8   :  { %v2280_v4 = vpop.f32.mrf.mxu0  ;;  %v2086_v14 = vadd.f32 %v10903_v6, %v1827_v8  ;;  %v8482_v39 = vld [vmem:[%s12759_s23 + $0x1f0] sm:$0xff] }
 0x1c9   :  { %v2321_v36 = vpop.f32.mrf.mxu1  ;;  %v10962_v47 = vpop.f32.mrf.mxu3 }
 0x1ca   :  { %v2345_v6 = vadd.f32 %v2280_v4, %v2086_v14 }
 0x1cd   :  { %v2033_v4 = vpop.f32.mrf.mxu2 }
 0x1d0   :  { %v2283_v23 = vpop.f32.mrf.mxu0 }
 0x1d1   :  { %v2324_v60 = vpop.f32.mrf.mxu1  ;;  %v2347_v18 = vadd.f32 %v2283_v23, %v2088_v22  ;;  %v2346_v23 = vadd.f32 %v2321_v36, %v2087_v3  ;;  %v8481_v36 = vld [vmem:[%s12759_s23 + $0x1e8] sm:$0xff]  ;;  %v8479_v3 = vld [vmem:[%s12759_s23 + $0x1d8] sm:$0xff] }
 0x1d2   :  { %v2348_v63 = vadd.f32 %v2324_v60, %v2089_v56 }
 0x1d3   :  { %v2411_v25 = vadd.f32 %v2377_v32, %v2347_v18 }
 0x1d4   :  { %v2412_v42 = vadd.f32 %v2377_v32, %v2348_v63  ;;  %v2372_v63 = vpop.permute.xlu0 %2371  ;;  %v10981_v32 = vpop.permute.xlu2 %2396 }
 0x1d5   :  { %v2427_v21 = vmax.f32 %v2411_v25, 0.0  ;;  %v2074_v25 = vpop.f32.mrf.mxu3  ;;  %v2410_v48 = vadd.f32 %v2372_v63, %v2346_v23 }
 0x1d6   :  { %v2428_v26 = vmax.f32 %v2412_v42, 0.0  ;;  %v2409_v42 = vadd.f32 %v2372_v63, %v2345_v6 }
 0x1d7   :  { %v2475_v24 = vpack.c.bf16 %v2427_v21, %v2427_v21 }
 0x1d8   :  { %v2476_v57 = vpack.c.bf16 %v2428_v26, %v2428_v26  ;;  %v2286_v15 = vpop.f32.mrf.mxu0  ;;  %v1057_v26 = vadd.f32 %v10440_v29, %v798_v35  ;;  %v1577_v29 = vadd.f32 %v10735_v53, %v10636_v0  ;;  %v8470_v35 = vld [vmem:[%s12759_s23 + $0x190] sm:$0xff] }
 0x1d9   :  { %v2327_v22 = vpop.f32.mrf.mxu1  ;;  %v2349_v50 = vadd.f32 %v2286_v15, %v2090_v51  ;;  %2614 = vmatmul.bf16.vlgmr.msra.gmra.mxu2 %v2475_v24  ;;  %v1576_v51 = vadd.f32 %v10733_v55, %v10633_v5  ;;  %v8480_v24 = vld [vmem:[%s12759_s23 + $0x1e0] sm:$0xff]  ;;  %v8530_v5 = vld [vmem:[%s12759_s23 + $0x370] sm:$0xff] }
 0x1da   :  { %v2350_v56 = vadd.f32 %v2327_v22, %v2091_v58  ;;  %2627 = vmatmul.bf16.vlgmr.msra.gmra.mxu3 %v2476_v57  ;;  %3043 = vmatpush.bf16.msra.mxu2 %v8475_v54  ;;  %v8472_v58 = vld [vmem:[%s12759_s23 + $0x1a0] sm:$0xff]  ;;  %v2425_v57 = vmax.f32 %v2409_v42, 0.0  ;;  %v1836_v15 = vadd.f32 %v10848_v28, %v1577_v29  ;;  %v8471_v22 = vld [vmem:[%s12759_s23 + $0x198] sm:$0xff]  ;;  %v8529_v28 = vld [vmem:[%s12759_s23 + $0x368] sm:$0xff] }
 0x1db   :  { %3056 = vmatpush.bf16.msra.mxu3 %v8483_v30  ;;  %v2413_v60 = vadd.f32 %v2382_v49, %v2349_v50  ;;  %v1316_v30 = vadd.f32 %v10616_v34, %v1057_v26  ;;  %v8522_v34 = vld [vmem:[%s12759_s23 + $0x330] sm:$0xff]  ;;  %v1835_v14 = vadd.f32 %v10846_v9, %v1576_v51  ;;  %v8476_v29 = vld [vmem:[%s12759_s23 + $0x1c0] sm:$0xff] }
 0x1dc   :  { %v2414_v18 = vadd.f32 %v2382_v49, %v2350_v56  ;;  %v2426_v49 = vmax.f32 %v2410_v48, 0.0  ;;  %v2095_v50 = vadd.f32 %v2074_v25, %v1836_v15  ;;  %v2441_v56 = vpack.c.bf16 %v2425_v57, %v2425_v57  ;;  %v2392_v9 = vpop.permute.xlu2 %2391 }
 0x1dd   :  { %v2429_v43 = vmax.f32 %v2413_v60, 0.0  ;;  %v1575_v55 = vadd.f32 %v10696_v10, %v1316_v30  ;;  %v2094_v53 = vadd.f32 %v2033_v4, %v1835_v14  ;;  %v11034_v60 = vpop.f32.mrf.mxu2  ;;  %v8528_v4 = vld [vmem:[%s12759_s23 + $0x360] sm:$0xff]  ;;  %v1321_v30 = vadd.f32 %v10656_v37, %v10542_v17 }
 0x1de   :  { %v2430_v46 = vmax.f32 %v2414_v18, 0.0  ;;  %3044 = vmatpush.bf16.msra.mxu2 %v8474_v62  ;;  %v2442_v10 = vpack.c.bf16 %v2426_v49, %v2426_v49  ;;  %v2092_v62 = vadd.f32 %v10960_v2, %v10816_v45  ;;  %v8478_v45 = vld [vmem:[%s12759_s23 + $0x1d0] sm:$0xff]  ;;  %v1581_v17 = vadd.f32 %v10832_v61, %v10662_v44 }
 0x1df   :  { %3057 = vmatpush.bf16.msra.mxu3 %v8482_v39  ;;  %v2754_v59 = vpack.c.bf16 %v2429_v43, %v2429_v43  ;;  %v1834_v0 = vadd.f32 %v10811_v31, %v1575_v55  ;;  %v8521_v31 = vld [vmem:[%s12759_s23 + $0x328] sm:$0xff]  ;;  %v11036_v43 = vpop.f32.mrf.mxu3  ;;  %v8518_v44 = vld [vmem:[%s12759_s23 + $0x310] sm:$0xff] }
 0x1e0   :  { %v2755_v21 = vpack.c.bf16 %v2430_v46, %v2430_v46  ;;  %v2289_v8 = vpop.f32.mrf.mxu0  ;;  %v8526_v61 = vld [vmem:[%s12759_s23 + $0x350] sm:$0xff]  ;;  %v1840_v14 = vadd.f32 %v10915_v1, %v1581_v17  ;;  %v8545_v17 = vld [vmem:[%s12759_s23 + $0x3e8] sm:$0xff] }
 0x1e1   :  { %v2330_v54 = vpop.f32.mrf.mxu1  ;;  %2893 = vmatmul.bf16.vlgmr.msrb.gmra.mxu0 %v2754_v59  ;;  %v2093_v23 = vadd.f32 %v10962_v47, %v1834_v0  ;;  %v2351_v46 = vadd.f32 %v2289_v8, %v2092_v62  ;;  %v8469_v59 = vld [vmem:[%s12759_s23 + $0x188] sm:$0xff]  ;;  %v8519_v8 = vld [vmem:[%s12759_s23 + $0x318] sm:$0xff] }
 0x1e2   :  { %2906 = vmatmul.bf16.vlgmr.msrb.gmra.mxu1 %v2755_v21  ;;  %3045 = vmatpush.bf16.msra.mxu2 %v8473_v27  ;;  %v8477_v21 = vld [vmem:[%s12759_s23 + $0x1c8] sm:$0xff] }
 0x1e3   :  { %3058 = vmatpush.bf16.msra.mxu3 %v8481_v36  ;;  %3517 = vmatpush.bf16.msrb.mxu0 %v8523_v33  ;;  %v2352_v2 = vadd.f32 %v2330_v54, %v2093_v23  ;;  %v8520_v36 = vld [vmem:[%s12759_s23 + $0x320] sm:$0xff]  ;;  %v2415_v48 = vadd.f32 %v10952_v11, %v2351_v46  ;;  %v8527_v54 = vld [vmem:[%s12759_s23 + $0x358] sm:$0xff]  ;;  %v8513_v23 = vld [vmem:[%s12759_s23 + $0x2e8] sm:$0xff]  ;;  %v802_v46 = vadd.f32 %v10476_v7, %v10234_v38 }
 0x1e4   :  { %3530 = vmatpush.bf16.msrb.mxu1 %v8531_v13 }
 0x1e5   :  { %v2416_v33 = vadd.f32 %v10952_v11, %v2352_v2  ;;  %v1580_v11 = vadd.f32 %v10830_v12, %v1321_v30  ;;  %v2039_v37 = vpop.f32.mrf.mxu2  ;;  %v2431_v57 = vmax.f32 %v2415_v48, 0.0  ;;  %v8507_v12 = vld [vmem:[%s12759_s23 + $0x2b8] sm:$0xff]  ;;  %v1061_v2 = vadd.f32 %v10509_v19, %v802_v46 }
 0x1e6   :  { %3046 = vmatpush.bf16.msra.mxu2 %v8472_v58  ;;  %v8503_v19 = vld [vmem:[%s12759_s23 + $0x298] sm:$0xff]  ;;  %v2096_v48 = vadd.f32 %v11034_v60, %v10889_v52  ;;  %v8509_v52 = vld [vmem:[%s12759_s23 + $0x2c8] sm:$0xff] }
 0x1e7   :  { %3059 = vmatpush.bf16.msra.mxu3 %v8480_v24  ;;  %3518 = vmatpush.bf16.msrb.mxu0 %v8522_v34  ;;  %v8468_v24 = vld [vmem:[%s12759_s23 + $0x180] sm:$0xff]  ;;  %v2432_v49 = vmax.f32 %v2416_v33, 0.0  ;;  %v8515_v34 = vld [vmem:[%s12759_s23 + $0x2f8] sm:$0xff]  ;;  %v2080_v55 = vpop.f32.mrf.mxu3  ;;  %v1320_v38 = vadd.f32 %v10642_v16, %v1061_v2 }
 0x1e8   :  { %3531 = vmatpush.bf16.msrb.mxu1 %v8530_v5  ;;  %v2292_v39 = vpop.f32.mrf.mxu0  ;;  %v1839_v5 = vadd.f32 %v10913_v40, %v1580_v11  ;;  %v2099_v0 = vadd.f32 %v2080_v55, %v1840_v14  ;;  %v2402_v40 = vpop.permute.xlu1 %2401  ;;  %v8539_v30 = vld [vmem:[%s12759_s23 + $0x3b8] sm:$0xff]  ;;  %v8538_v11 = vld [vmem:[%s12759_s23 + $0x3b0] sm:$0xff]  ;;  %v8544_v55 = vld [vmem:[%s12759_s23 + $0x3e0] sm:$0xff] }
 0x1e9   :  { %v2333_v6 = vpop.f32.mrf.mxu1  ;;  %v2353_v18 = vadd.f32 %v2292_v39, %v2094_v53  ;;  %2736 = vmatmul.bf16.vlgmr.msrb.gmra.mxu2 %v2441_v56  ;;  %v2912_v53 = vpack.c.bf16 %v2431_v57, %v2431_v57  ;;  %v1579_v7 = vadd.f32 %v10779_v41, %v1320_v38  ;;  %v8502_v41 = vld [vmem:[%s12759_s23 + $0x290] sm:$0xff]  ;;  %v12765_v57 = vld [vmem:[#allocation3_spill] sm:$0xff]  ;;  %v12768_v14 = vld [vmem:[#allocation6_spill] sm:$0xff] }
 0x1ea   :  { %v2354_v63 = vadd.f32 %v2333_v6, %v2095_v50  ;;  %2749 = vmatmul.bf16.vlgmr.msrb.gmra.mxu3 %v2442_v10  ;;  %3047 = vmatpush.bf16.msra.mxu2 %v8471_v22  ;;  %v2098_v15 = vadd.f32 %v2039_v37, %v1839_v5  ;;  %v2913_v22 = vpack.c.bf16 %v2432_v49, %v2432_v49  ;;  %v8514_v50 = vld [vmem:[%s12759_s23 + $0x2f0] sm:$0xff]  ;;  %v8517_v10 = vld [vmem:[%s12759_s23 + $0x308] sm:$0xff]  ;;  %v12764_v37 = vld [vmem:[#allocation2_spill] sm:$0xff] }
 0x1eb   :  { %3060 = vmatpush.bf16.msra.mxu3 %v8479_v3  ;;  %v2417_v47 = vadd.f32 %v2392_v9, %v2353_v18  ;;  %3519 = vmatpush.bf16.msrb.mxu0 %v8521_v31  ;;  %v8506_v3 = vld [vmem:[%s12759_s23 + $0x2b0] sm:$0xff]  ;;  %v8505_v6 = vld [vmem:[%s12759_s23 + $0x2a8] sm:$0xff]  ;;  %v8516_v18 = vld [vmem:[%s12759_s23 + $0x300] sm:$0xff]  ;;  %v806_v49 = vadd.f32 %v12765_v57, %v12764_v37 }
 0x1ec   :  { %v2418_v27 = vadd.f32 %v2392_v9, %v2354_v63  ;;  %3532 = vmatpush.bf16.msrb.mxu1 %v8529_v28  ;;  %v8525_v9 = vld [vmem:[%s12759_s23 + $0x348] sm:$0xff]  ;;  %v8524_v63 = vld [vmem:[%s12759_s23 + $0x340] sm:$0xff] }
 0x1ed   :  { %v2433_v25 = vmax.f32 %v2417_v47, 0.0  ;;  %v8536_v5 = vld [vmem:[%s12759_s23 + $0x3a0] sm:$0xff] }
 0x1ee   :  { %v2434_v42 = vmax.f32 %v2418_v27, 0.0  ;;  %3048 = vmatpush.bf16.msra.mxu2 %v8470_v35  ;;  %v8540_v2 = vld [vmem:[%s12759_s23 + $0x3c0] sm:$0xff] }
 0x1ef   :  { %3061 = vmatpush.bf16.msra.mxu3 %v8478_v45  ;;  %v3070_v13 = vpack.c.bf16 %v2433_v25, %v2433_v25  ;;  %3520 = vmatpush.bf16.msrb.mxu0 %v8520_v36  ;;  %v8504_v36 = vld [vmem:[%s12759_s23 + $0x2a0] sm:$0xff]  ;;  %v8511_v25 = vld [vmem:[%s12759_s23 + $0x2d8] sm:$0xff] }
 0x1f0   :  { %v3071_v26 = vpack.c.bf16 %v2434_v42, %v2434_v42  ;;  %3533 = vmatpush.bf16.msrb.mxu1 %v8528_v4  ;;  %v11066_v51 = vpop.f32.mrf.mxu0  ;;  %v8512_v4 = vld [vmem:[%s12759_s23 + $0x2e0] sm:$0xff]  ;;  %v1838_v42 = vadd.f32 %v10881_v20, %v1579_v7  ;;  %v8501_v20 = vld [vmem:[%s12759_s23 + $0x288] sm:$0xff] }
 0x1f1   :  { %v11068_v58 = vpop.f32.mrf.mxu1  ;;  %3209 = vmatmul.bf16.vlgmr.msra.gmra.mxu0 %v3070_v13  ;;  %v8500_v13 = vld [vmem:[%s12759_s23 + $0x280] sm:$0xff] }
 0x1f2   :  { %3222 = vmatmul.bf16.vlgmr.msra.gmra.mxu1 %v3071_v26  ;;  %3049 = vmatpush.bf16.msra.mxu2 %v8469_v59  ;;  %v2097_v16 = vadd.f32 %v11036_v43, %v1838_v42  ;;  %v8510_v59 = vld [vmem:[%s12759_s23 + $0x2d0] sm:$0xff]  ;;  %v8508_v26 = vld [vmem:[%s12759_s23 + $0x2c0] sm:$0xff] }
 0x1f3   :  { %3062 = vmatpush.bf16.msra.mxu3 %v8477_v21  ;;  %3521 = vmatpush.bf16.msrb.mxu0 %v8519_v8  ;;  %v2355_v21 = vadd.f32 %v11066_v51, %v2096_v48 }
 0x1f4   :  { %3534 = vmatpush.bf16.msrb.mxu1 %v8527_v54  ;;  %v2356_v33 = vadd.f32 %v11068_v58, %v2097_v16 }
 0x1f5   :  { %v2419_v60 = vadd.f32 %v10981_v32, %v2355_v21 }
 0x1f6   :  { %3050 = vmatpush.bf16.msra.mxu2 %v8468_v24  ;;  %v2420_v43 = vadd.f32 %v10981_v32, %v2356_v33  ;;  %v8547_v32 = vld [vmem:[%s12759_s23 + $0x3f8] sm:$0xff]  ;;  %v8546_v24 = vld [vmem:[%s12759_s23 + $0x3f0] sm:$0xff] }
 0x1f7   :  { %3063 = vmatpush.bf16.msra.mxu3 %v8476_v29  ;;  %3522 = vmatpush.bf16.msrb.mxu0 %v8518_v44  ;;  %v2435_v8 = vmax.f32 %v2419_v60, 0.0  ;;  %v8537_v29 = vld [vmem:[%s12759_s23 + $0x3a8] sm:$0xff]  ;;  %v12767_v44 = vld [vmem:[#allocation5_spill] sm:$0xff] }
 0x1f8   :  { %3535 = vmatpush.bf16.msrb.mxu1 %v8526_v61  ;;  %v2298_v1 = vpop.f32.mrf.mxu0  ;;  %v2436_v54 = vmax.f32 %v2420_v43, 0.0 }
 0x1f9   :  { %v2339_v56 = vpop.f32.mrf.mxu1  ;;  %v2357_v31 = vadd.f32 %v2298_v1, %v2098_v15  ;;  %3051 = vmatmul.bf16.vlgmr.msra.gmra.mxu2 %v2912_v53  ;;  %v3228_v51 = vpack.c.bf16 %v2435_v8, %v2435_v8  ;;  %v2083_v53 = vpop.f32.mrf.mxu3 }
 0x1fa   :  { %3359 = vmatpush.bf16.msrb.mxu2 %v8507_v12  ;;  %v2358_v28 = vadd.f32 %v2339_v56, %v2099_v0  ;;  %3064 = vmatmul.bf16.vlgmr.msra.gmra.mxu3 %v2913_v22  ;;  %v3229_v58 = vpack.c.bf16 %v2436_v54, %v2436_v54  ;;  %v12766_v12 = vld [vmem:[#allocation4_spill] sm:$0xff]  ;;  %v2042_v0 = vpop.f32.mrf.mxu2  ;;  %v8535_v22 = vld [vmem:[%s12759_s23 + $0x398] sm:$0xff] }
 0x1fb   :  { %3372 = vmatpush.bf16.msrb.mxu3 %v8515_v34  ;;  %v2421_v62 = vadd.f32 %v2402_v40, %v2357_v31  ;;  %3523 = vmatpush.bf16.msrb.mxu0 %v8517_v10  ;;  %v1065_v34 = vadd.f32 %v12766_v12, %v806_v49  ;;  %v12770_v10 = vld [vmem:[#allocation7_spill] sm:$0xff]  ;;  %v7288_v49 = vld [vmem:[%s12706_s7 + $0x70] sm:$0xf]  ;;  %v8563_v12 = vld [vmem:[%s12706_s7 + $0x74] sm:$0xf0] }
 0x1fc   :  { %v2422_v39 = vadd.f32 %v2402_v40, %v2358_v28  ;;  %3536 = vmatpush.bf16.msrb.mxu1 %v8525_v9  ;;  %v8543_v40 = vld [vmem:[%s12759_s23 + $0x3d8] sm:$0xff]  ;;  %v2100_v9 = vadd.f32 %v2042_v0, %v12770_v10  ;;  %v8534_v28 = vld [vmem:[%s12759_s23 + $0x390] sm:$0xff]  ;;  %v7280_v0 = vld [vmem:[%s12706_s7 + $0x60] sm:$0xf] }
 0x1fd   :  { %v2437_v35 = vmax.f32 %v2421_v62, 0.0  ;;  %v1324_v61 = vadd.f32 %v12767_v44, %v1065_v34  ;;  %v8542_v62 = vld [vmem:[%s12759_s23 + $0x3d0] sm:$0xff]  ;;  %v7290_v44 = vld [vmem:[%s12706_s7 + $0x78] sm:$0xf0] }
 0x1fe   :  { %3360 = vmatpush.bf16.msrb.mxu2 %v8506_v3  ;;  %v2438_v45 = vmax.f32 %v2422_v39, 0.0  ;;  %v12769_v3 = vld [vmem:[#allocation8_spill] sm:$0xff] }
 0x1ff   :  { %3373 = vmatpush.bf16.msrb.mxu3 %v8514_v50  ;;  %v3386_v47 = vpack.c.bf16 %v2437_v35, %v2437_v35  ;;  %3524 = vmatpush.bf16.msrb.mxu0 %v8516_v18  ;;  %v1583_v15 = vadd.f32 %v12768_v14, %v1324_v61  ;;  %v8533_v18 = vld [vmem:[%s12759_s23 + $0x388] sm:$0xff]  ;;  %v8562_v34 = vld [vmem:[%s12706_s7 + $0x74] sm:$0xf] }
 0x200   :  { %v3387_v27 = vpack.c.bf16 %v2438_v45, %v2438_v45  ;;  %3537 = vmatpush.bf16.msrb.mxu1 %v8524_v63  ;;  %v2301_v1 = vpop.f32.mrf.mxu0  ;;  %v8541_v63 = vld [vmem:[%s12759_s23 + $0x3c8] sm:$0xff]  ;;  %v8532_v45 = vld [vmem:[%s12759_s23 + $0x380] sm:$0xff]  ;;  %v3722_v61 = vld [vmem:[%s12705_s5 + $0x70] sm:$0xff]  ;;  %v7293_v14 = vor.u32 %v8562_v34, %v7290_v44 }
 0x201   :  { %v1842_v50 = vadd.f32 %v12769_v3, %v1583_v15  ;;  %v2342_v56 = vpop.f32.mrf.mxu1  ;;  %v2359_v39 = vadd.f32 %v2301_v1, %v2100_v9  ;;  %v3721_v15 = vld [vmem:[%s12705_s5 + $0x68] sm:$0xff]  ;;  %v7272_v9 = vld [vmem:[%s12706_s7 + $0x50] sm:$0xf]  ;;  %v8548_v44 = vld [vmem:[%s12706_s7 + $0x4] sm:$0xf] }
 0x202   :  { %3361 = vmatpush.bf16.msrb.mxu2 %v8505_v6  ;;  %3525 = vmatmul.bf16.vlgmr.msrb.gmra.mxu0 %v3386_v47  ;;  %v8549_v34 = vld [vmem:[%s12706_s7 + $0x4] sm:$0xf0] }
 0x203   :  { %3374 = vmatpush.bf16.msrb.mxu3 %v8513_v23  ;;  %3538 = vmatmul.bf16.vlgmr.msrb.gmra.mxu1 %v3387_v27  ;;  %v2101_v31 = vadd.f32 %v2083_v53, %v1842_v50  ;;  %v2407_v23 = vpop.permute.xlu0 %2406  ;;  %v8561_v53 = vld [vmem:[%s12706_s7 + $0x64] sm:$0xf0]  ;;  %v3720_v50 = vld [vmem:[%s12705_s5 + $0x60] sm:$0xff] }
 0x204   :  { %v2423_v46 = vadd.f32 %v2407_v23, %v2359_v39  ;;  %v7281_v1 = vor.u32 %v8561_v53, %v7280_v0  ;;  %v7274_v39 = vld [vmem:[%s12706_s7 + $0x58] sm:$0xf0] }
 0x205   :  { %v2360_v6 = vadd.f32 %v2342_v56, %v2101_v31  ;;  %v7282_v56 = vld [vmem:[%s12706_s7 + $0x68] sm:$0xf0]  ;;  %v8559_v31 = vld [vmem:[%s12706_s7 + $0x54] sm:$0xf0] }
 0x206   :  { %3362 = vmatpush.bf16.msrb.mxu2 %v8504_v36  ;;  %v2439_v47 = vmax.f32 %v2423_v46, 0.0 }
 0x207   :  { %3375 = vmatpush.bf16.msrb.mxu3 %v8512_v4  ;;  %v2424_v35 = vadd.f32 %v2407_v23, %v2360_v6  ;;  %v7273_v6 = vor.u32 %v8559_v31, %v7272_v9  ;;  %v8576_v31 = vld [vmem:[%s12707_s9 + $0x64] sm:$0xf] }
 0x208   :  { %v3544_v36 = vpack.c.bf16 %v2439_v47, %v2439_v47  ;;  %v7266_v47 = vld [vmem:[%s12706_s7 + $0x48] sm:$0xf0] }
 0x209   :  { %v2440_v27 = vmax.f32 %v2424_v35, 0.0  ;;  %v7264_v35 = vld [vmem:[%s12706_s7 + $0x40] sm:$0xf] }
 0x20a   :  { %3363 = vmatpush.bf16.msrb.mxu2 %v8503_v19 }
 0x20b   :  { %3376 = vmatpush.bf16.msrb.mxu3 %v8511_v25  ;;  %v3545_v4 = vpack.c.bf16 %v2440_v27, %v2440_v27  ;;  %v3717_v27 = vld [vmem:[%s12705_s5 + $0x48] sm:$0xff] }
 0x20e   :  { %3364 = vmatpush.bf16.msrb.mxu2 %v8502_v41 }
 0x20f   :  { %3377 = vmatpush.bf16.msrb.mxu3 %v8510_v59 }
 0x212   :  { %3365 = vmatpush.bf16.msrb.mxu2 %v8501_v20 }
 0x213   :  { %3378 = vmatpush.bf16.msrb.mxu3 %v8509_v52 }
 0x216   :  { %3366 = vmatpush.bf16.msrb.mxu2 %v8500_v13 }
 0x217   :  { %3379 = vmatpush.bf16.msrb.mxu3 %v8508_v26 }
 0x219   :  { %3367 = vmatmul.bf16.vlgmr.msrb.gmra.mxu2 %v3228_v51 }
 0x21a   :  { %3675 = vmatpush.bf16.msra.mxu2 %v8539_v30  ;;  %3380 = vmatmul.bf16.vlgmr.msrb.gmra.mxu3 %v3229_v58 }
 0x21b   :  { %3688 = vmatpush.bf16.msra.mxu3 %v8547_v32 }
 0x21e   :  { %3676 = vmatpush.bf16.msra.mxu2 %v8538_v11 }
 0x21f   :  { %3689 = vmatpush.bf16.msra.mxu3 %v8546_v24 }
 0x222   :  { %3677 = vmatpush.bf16.msra.mxu2 %v8537_v29  ;;  %v3723_v29 = vld [vmem:[%s12705_s5 + $0x78] sm:$0xff] }
 0x223   :  { %3690 = vmatpush.bf16.msra.mxu3 %v8545_v17  ;;  %3728 = vmatpush.msra.mxu0 %v3723_v29  ;;  %v3710_v29 = vld [vmem:[%s12705_s5 + $0x10] sm:$0xff] }
 0x225   :  { %3729 = vmatpush.msra.mxu0 %v3722_v61  ;;  %v7234_v61 = vld [vmem:[%s12706_s7 + $0x8] sm:$0xf0] }
 0x226   :  { %3678 = vmatpush.bf16.msra.mxu2 %v8536_v5 }
 0x227   :  { %3691 = vmatpush.bf16.msra.mxu3 %v8544_v55  ;;  %v7289_v55 = vor.u32 %v8563_v12, %v7288_v49  ;;  %3730 = vmatpush.msra.mxu0 %v3721_v15  ;;  %v3709_v49 = vld [vmem:[%s12705_s5 + $0x8] sm:$0xff]  ;;  %v7232_v12 = vld [vmem:[%s12706_s7] sm:$0xf]  ;;  %v7237_v15 = vor.u32 %v8548_v44, %v7234_v61 }
 0x229   :  { %3929 = vmatpush.bf16.msra.mxu1 %v7289_v55  ;;  %3731 = vmatpush.msra.mxu0 %v3720_v50  ;;  %v7233_v55 = vor.u32 %v8549_v34, %v7232_v12 }
 0x22a   :  { %3679 = vmatpush.bf16.msra.mxu2 %v8535_v22  ;;  %v8560_v22 = vld [vmem:[%s12706_s7 + $0x64] sm:$0xf] }
 0x22b   :  { %3692 = vmatpush.bf16.msra.mxu3 %v8543_v40  ;;  %v7285_v10 = vor.u32 %v8560_v22, %v7282_v56  ;;  %v7352_v22 = vld [vmem:[%s12707_s9 + $0x70] sm:$0xf]  ;;  %v7344_v56 = vld [vmem:[%s12707_s9 + $0x60] sm:$0xf] }
 0x22d   :  { %3930 = vmatpush.bf16.msra.mxu1 %v7281_v1  ;;  %v7354_v1 = vld [vmem:[%s12707_s9 + $0x78] sm:$0xf0] }
 0x22e   :  { %3680 = vmatpush.bf16.msra.mxu2 %v8534_v28  ;;  %v8558_v28 = vld [vmem:[%s12706_s7 + $0x54] sm:$0xf] }
 0x22f   :  { %3693 = vmatpush.bf16.msra.mxu3 %v8542_v62  ;;  %v3719_v62 = vld [vmem:[%s12705_s5 + $0x58] sm:$0xff]  ;;  %v7277_v46 = vor.u32 %v8558_v28, %v7274_v39  ;;  %v7346_v28 = vld [vmem:[%s12707_s9 + $0x68] sm:$0xf0] }
 0x230   :  { %3732 = vmatpush.msra.mxu0 %v3719_v62  ;;  %v7416_v62 = vld [vmem:[%s12707_s9 + $0xf0] sm:$0xf] }
 0x231   :  { %3931 = vmatpush.bf16.msra.mxu1 %v7273_v6  ;;  %v8595_v6 = vld [vmem:[%s12707_s9 + $0xf4] sm:$0xf0] }
 0x232   :  { %3681 = vmatpush.bf16.msra.mxu2 %v8533_v18 }
 0x233   :  { %3694 = vmatpush.bf16.msra.mxu3 %v8541_v63  ;;  %v3718_v63 = vld [vmem:[%s12705_s5 + $0x50] sm:$0xff] }
 0x234   :  { %3733 = vmatpush.msra.mxu0 %v3718_v63  ;;  %v7349_v63 = vor.u32 %v8576_v31, %v7346_v28 }
 0x236   :  { %3682 = vmatpush.bf16.msra.mxu2 %v8532_v45  ;;  %v8557_v45 = vld [vmem:[%s12706_s7 + $0x44] sm:$0xf0]  ;;  %3734 = vmatpush.msra.mxu0 %v3717_v27  ;;  %v7338_v27 = vld [vmem:[%s12707_s9 + $0x58] sm:$0xf0] }
 0x237   :  { %3695 = vmatpush.bf16.msra.mxu3 %v8540_v2  ;;  %v8556_v2 = vld [vmem:[%s12706_s7 + $0x44] sm:$0xf] }
 0x239   :  { %3683 = vmatmul.bf16.vlgmr.msra.gmra.mxu2 %v3544_v36  ;;  %v7265_v36 = vor.u32 %v8557_v45, %v7264_v35  ;;  %v7336_v45 = vld [vmem:[%s12707_s9 + $0x50] sm:$0xf] }
 0x23a   :  { %3696 = vmatmul.bf16.vlgmr.msra.gmra.mxu3 %v3545_v4  ;;  %3942 = vmatpush.bf16.msrb.mxu2 %v7293_v14  ;;  %v3716_v4 = vld [vmem:[%s12705_s5 + $0x40] sm:$0xff] }
 0x23b   :  { %3735 = vmatpush.msra.mxu0 %v3716_v4  ;;  %3932 = vmatpush.bf16.msra.mxu1 %v7265_v36  ;;  %v3708_v14 = vld [vmem:[%s12705_s5] sm:$0xff]  ;;  %v8593_v4 = vld [vmem:[%s12707_s9 + $0xe4] sm:$0xf0] }
 0x23c   :  { %v7408_v36 = vld [vmem:[%s12707_s9 + $0xe0] sm:$0xf] }
 0x23e   :  { %3943 = vmatpush.bf16.msrb.mxu2 %v7285_v10  ;;  %v8577_v10 = vld [vmem:[%s12707_s9 + $0x64] sm:$0xf0] }
 0x23f   :  { %v7345_v39 = vor.u32 %v8577_v10, %v7344_v56  ;;  %v8818_v10 = vld [vmem:[%s12703_s4] ss:$0 sm:$0xff] }
 0x242   :  { %3944 = vmatpush.bf16.msrb.mxu2 %v7277_v46  ;;  %v7417_v46 = vor.u32 %v8595_v6, %v7416_v62  ;;  %v8586_v6 = vld [vmem:[%s12707_s9 + $0xb4] sm:$0xf] }
 0x25c   :  { %v2615_v38 = vpop.f32.mrf.mxu2 }
 0x25d   :  { %v2628_v7 = vpop.f32.mrf.mxu3 }
 0x25e   :  { %v2629_v19 = vadd.f32 %v2628_v7, %v2615_v38  ;;  %v2894_v25 = vpop.f32.mrf.mxu0  ;;  %v7269_v38 = vor.u32 %v8556_v2, %v7266_v47  ;;  %v7256_v7 = vld [vmem:[%s12706_s7 + $0x30] sm:$0xf]  ;;  %v8575_v2 = vld [vmem:[%s12707_s9 + $0x54] sm:$0xf0]  ;;  %v8574_v47 = vld [vmem:[%s12707_s9 + $0x54] sm:$0xf] }
 0x25f   :  { %v2907_v42 = vpop.f32.mrf.mxu1 }
 0x260   :  { %v2908_v48 = vadd.f32 %v2907_v42, %v2894_v25  ;;  %v8554_v25 = vld [vmem:[%s12706_s7 + $0x34] sm:$0xf]  ;;  %v7258_v42 = vld [vmem:[%s12706_s7 + $0x38] sm:$0xf0]  ;;  %3945 = vmatpush.bf16.msrb.mxu2 %v7269_v38  ;;  %v7409_v38 = vor.u32 %v8593_v4, %v7408_v36  ;;  %v7376_v36 = vld [vmem:[%s12707_s9 + $0xa0] sm:$0xf] }
 0x261   :  { %v8585_v4 = vld [vmem:[%s12707_s9 + $0xa4] sm:$0xf0] }
 0x264   :  { %v2617_v16 = vpop.f32.mrf.mxu2 }
 0x265   :  { %v2630_v41 = vpop.f32.mrf.mxu3 }
 0x266   :  { %v2896_v59 = vpop.f32.mrf.mxu0  ;;  %v3714_v41 = vld [vmem:[%s12705_s5 + $0x30] sm:$0xff] }
 0x267   :  { %v2909_v21 = vpop.f32.mrf.mxu1  ;;  %v7261_v59 = vor.u32 %v8554_v25, %v7258_v42  ;;  %v7337_v25 = vor.u32 %v8575_v2, %v7336_v45  ;;  %v8566_v45 = vld [vmem:[%s12707_s9 + $0x14] sm:$0xf] }
 0x268   :  { %v3713_v21 = vld [vmem:[%s12705_s5 + $0x28] sm:$0xff] }
 0x269   :  { %3946 = vmatpush.bf16.msrb.mxu2 %v7261_v59  ;;  %v7400_v59 = vld [vmem:[%s12707_s9 + $0xd0] sm:$0xf] }
 0x26c   :  { %v2737_v33 = vpop.f32.mrf.mxu2 }
 0x26d   :  { %v2750_v20 = vpop.f32.mrf.mxu3  ;;  %v2738_v52 = vadd.f32 %v2737_v33, %v2629_v19  ;;  %v8555_v19 = vld [vmem:[%s12706_s7 + $0x34] sm:$0xf0]  ;;  %v7248_v33 = vld [vmem:[%s12706_s7 + $0x20] sm:$0xf] }
 0x26e   :  { %v3210_v60 = vpop.f32.mrf.mxu0  ;;  %v7257_v16 = vor.u32 %v8555_v19, %v7256_v7  ;;  %v8592_v7 = vld [vmem:[%s12707_s9 + $0xe4] sm:$0xf]  ;;  %v7410_v19 = vld [vmem:[%s12707_s9 + $0xe8] sm:$0xf0] }
 0x26f   :  { %v3223_v43 = vpop.f32.mrf.mxu1  ;;  %v2751_v13 = vadd.f32 %v2750_v20, %v2738_v52  ;;  %v8553_v20 = vld [vmem:[%s12706_s7 + $0x24] sm:$0xf0]  ;;  %v8552_v52 = vld [vmem:[%s12706_s7 + $0x24] sm:$0xf]  ;;  %v7413_v42 = vor.u32 %v8592_v7, %v7410_v19  ;;  %v7378_v19 = vld [vmem:[%s12707_s9 + $0xa8] sm:$0xf0] }
 0x270   :  { %v3224_v26 = vadd.f32 %v3223_v43, %v3210_v60  ;;  %3933 = vmatpush.bf16.msra.mxu1 %v7257_v16  ;;  %v7249_v60 = vor.u32 %v8553_v20, %v7248_v33  ;;  %v7250_v43 = vld [vmem:[%s12706_s7 + $0x28] sm:$0xf0]  ;;  %v8573_v16 = vld [vmem:[%s12707_s9 + $0x44] sm:$0xf0]  ;;  %v8590_v33 = vld [vmem:[%s12707_s9 + $0xd4] sm:$0xf] }
 0x271   :  { %v2911_v8 = vadd.f32 %v2908_v48, %v2751_v13  ;;  %v3715_v48 = vld [vmem:[%s12705_s5 + $0x38] sm:$0xff]  ;;  %v3712_v13 = vld [vmem:[%s12705_s5 + $0x20] sm:$0xff] }
 0x272   :  { %3736 = vmatpush.msra.mxu0 %v3715_v48  ;;  %v7328_v48 = vld [vmem:[%s12707_s9 + $0x40] sm:$0xf]  ;;  %v8572_v20 = vld [vmem:[%s12707_s9 + $0x44] sm:$0xf] }
 0x273   :  { %v8584_v7 = vld [vmem:[%s12707_s9 + $0xa4] sm:$0xf] }
 0x274   :  { %v2739_v54 = vpop.f32.mrf.mxu2  ;;  %3737 = vmatpush.msra.mxu0 %v3714_v41  ;;  %3934 = vmatpush.bf16.msra.mxu1 %v7249_v60  ;;  %v7341_v41 = vor.u32 %v8574_v47, %v7338_v27  ;;  %v7402_v60 = vld [vmem:[%s12707_s9 + $0xd8] sm:$0xf0] }
 0x275   :  { %v2752_v30 = vpop.f32.mrf.mxu3  ;;  %v7240_v54 = vld [vmem:[%s12706_s7 + $0x10] sm:$0xf]  ;;  %v7306_v47 = vld [vmem:[%s12707_s9 + $0x18] sm:$0xf0] }
 0x276   :  { %v3212_v32 = vpop.f32.mrf.mxu0  ;;  %3738 = vmatpush.msra.mxu0 %v3713_v21  ;;  %v8551_v30 = vld [vmem:[%s12706_s7 + $0x14] sm:$0xf0]  ;;  %v7309_v27 = vor.u32 %v8566_v45, %v7306_v47 }
 0x277   :  { %v3225_v51 = vpop.f32.mrf.mxu1  ;;  %v7241_v32 = vor.u32 %v8551_v30, %v7240_v54  ;;  %v8591_v21 = vld [vmem:[%s12707_s9 + $0xd4] sm:$0xf0]  ;;  %v8589_v54 = vld [vmem:[%s12707_s9 + $0xc4] sm:$0xf0]  ;;  %v8588_v30 = vld [vmem:[%s12707_s9 + $0xc4] sm:$0xf] }
 0x278   :  { %3739 = vmatpush.msra.mxu0 %v3712_v13  ;;  %v8550_v51 = vld [vmem:[%s12706_s7 + $0x14] sm:$0xf]  ;;  %v7405_v13 = vor.u32 %v8590_v33, %v7402_v60 }
 0x279   :  { %3935 = vmatpush.bf16.msra.mxu1 %v7241_v32  ;;  %v7394_v32 = vld [vmem:[%s12707_s9 + $0xc8] sm:$0xf0]  ;;  %v8582_v60 = vld [vmem:[%s12707_s9 + $0x94] sm:$0xf] }
 0x27c   :  { %v3052_v58 = vpop.f32.mrf.mxu2 }
 0x27d   :  { %v3065_v11 = vpop.f32.mrf.mxu3  ;;  %3936 = vmatpush.bf16.msra.mxu1 %v7233_v55  ;;  %v7397_v55 = vor.u32 %v8588_v30, %v7394_v32  ;;  %v8580_v30 = vld [vmem:[%s12707_s9 + $0x84] sm:$0xf] }
 0x27e   :  { %v3066_v24 = vadd.f32 %v3065_v11, %v3052_v58  ;;  %v7242_v58 = vld [vmem:[%s12706_s7 + $0x18] sm:$0xf0] }
 0x27f   :  { %v11218_v37 = vpop.f32.mrf.mxu0 }
 0x280   :  { %v3069_v17 = vadd.f32 %v3066_v24, %v2911_v8  ;;  %v11220_v57 = vpop.f32.mrf.mxu1  ;;  %v3711_v8 = vld [vmem:[%s12705_s5 + $0x18] sm:$0xff] }
 0x281   :  { %3740 = vmatpush.msra.mxu0 %v3711_v8  ;;  %v7329_v8 = vor.u32 %v8573_v16, %v7328_v48  ;;  %v7296_v48 = vld [vmem:[%s12707_s9] sm:$0xf]  ;;  %v8565_v16 = vld [vmem:[%s12707_s9 + $0x4] sm:$0xf0] }
 0x282   :  { %v11231_v5 = vadd.f32 %v3224_v26, %v3069_v17  ;;  %v7253_v26 = vor.u32 %v8552_v52, %v7250_v43  ;;  %v7245_v17 = vor.u32 %v8550_v51, %v7242_v58  ;;  %v7330_v52 = vld [vmem:[%s12707_s9 + $0x48] sm:$0xf0]  ;;  %v7401_v43 = vor.u32 %v8591_v21, %v7400_v59  ;;  %v7320_v58 = vld [vmem:[%s12707_s9 + $0x30] sm:$0xf] }
 0x283   :  { %3741 = vmatpush.msra.mxu0 %v3710_v29  ;;  %v7333_v51 = vor.u32 %v8572_v20, %v7330_v52  ;;  %v8571_v29 = vld [vmem:[%s12707_s9 + $0x34] sm:$0xf0]  ;;  %v7297_v59 = vor.u32 %v8565_v16, %v7296_v48  ;;  %v7298_v21 = vld [vmem:[%s12707_s9 + $0x8] sm:$0xf0]  ;;  %v7368_v20 = vld [vmem:[%s12707_s9 + $0x90] sm:$0xf] }
 0x284   :  { %v3054_v40 = vpop.f32.mrf.mxu2  ;;  %3947 = vmatpush.bf16.msrb.mxu2 %v7253_v26  ;;  %v7392_v26 = vld [vmem:[%s12707_s9 + $0xc0] sm:$0xf]  ;;  %v7321_v44 = vor.u32 %v8571_v29, %v7320_v58  ;;  %v8583_v52 = vld [vmem:[%s12707_s9 + $0x94] sm:$0xf0] }
 0x285   :  { %v3067_v3 = vpop.f32.mrf.mxu3  ;;  %3742 = vmatpush.msra.mxu0 %v3709_v49  ;;  %v8579_v40 = vld [vmem:[%s12707_s9 + $0x74] sm:$0xf0]  ;;  %v7322_v49 = vld [vmem:[%s12707_s9 + $0x38] sm:$0xf0]  ;;  %v7393_v34 = vor.u32 %v8589_v54, %v7392_v26  ;;  %v8581_v54 = vld [vmem:[%s12707_s9 + $0x84] sm:$0xf0] }
 0x286   :  { %v8578_v3 = vld [vmem:[%s12707_s9 + $0x74] sm:$0xf]  ;;  %v7353_v50 = vor.u32 %v8579_v40, %v7352_v22  ;;  %v3540_v22 = vadd.f32 %v11220_v57, %v11218_v37  ;;  %v7384_v57 = vld [vmem:[%s12707_s9 + $0xb0] sm:$0xf]  ;;  %v8603_v29 = vld [vmem:[%s12709_s11 + $0x38] sm:$0xff] }
 0x287   :  { %v3528_v23 = vpop.f32.mrf.mxu0  ;;  %3743 = vmatpush.msra.mxu0 %v3708_v14  ;;  %v7357_v9 = vor.u32 %v8578_v3, %v7354_v1  ;;  %v7312_v14 = vld [vmem:[%s12707_s9 + $0x20] sm:$0xf] }
 0x288   :  { %v3541_v18 = vpop.f32.mrf.mxu1  ;;  %3948 = vmatpush.bf16.msrb.mxu2 %v7245_v17  ;;  %4124 = vmatpush.bf16.msrb.mxu3 %v7353_v50  ;;  %v8594_v23 = vld [vmem:[%s12707_s9 + $0xf4] sm:$0xf] }
 0x289   :  { %v7418_v18 = vld [vmem:[%s12707_s9 + $0xf8] sm:$0xf0]  ;;  %4150 = vmatpush.bf16.msrb.mxu1 %v7357_v9  ;;  %4137 = vmatpush.bf16.msrb.mxu0 %v7417_v46  ;;  %v8570_v17 = vld [vmem:[%s12707_s9 + $0x34] sm:$0xf]  ;;  %v7304_v46 = vld [vmem:[%s12707_s9 + $0x10] sm:$0xf] }
 0x28a   :  { %v7421_v35 = vor.u32 %v8594_v23, %v7418_v18  ;;  %v7325_v61 = vor.u32 %v8570_v17, %v7322_v49  ;;  %v7386_v18 = vld [vmem:[%s12707_s9 + $0xb8] sm:$0xf0]  ;;  %v3777_v17 = vld [vmem:[%s12710_s8] sm:$0x3] }
 0x28b   :  { %v8819_v49 = vld [vmem:[%s12704_s6] ss:$0 sm:$0xff]  ;;  %s8832_s6 = smov 8  }
 0x28c   :  { %3949 = vmatpush.bf16.msrb.mxu2 %v7237_v15  ;;  %4125 = vmatpush.bf16.msrb.mxu3 %v7345_v39  ;;  %v8569_v15 = vld [vmem:[%s12707_s9 + $0x24] sm:$0xf0]  ;;  %v8587_v39 = vld [vmem:[%s12707_s9 + $0xb4] sm:$0xf0] }
 0x28d   :  { %4151 = vmatpush.bf16.msrb.mxu1 %v7349_v63  ;;  %4138 = vmatpush.bf16.msrb.mxu0 %v7409_v38  ;;  %v7385_v23 = vor.u32 %v8587_v39, %v7384_v57  ;;  %v7389_v63 = vor.u32 %v8586_v6, %v7386_v18  ;;  %v7377_v38 = vor.u32 %v8585_v4, %v7376_v36  ;;  %v8598_v57 = vld [vmem:[%s12709_s11 + $0x10] sm:$0xff]  ;;  %v8607_v39 = vld [vmem:[%s12709_s11 + $0x58] sm:$0xff]  ;;  %v8597_v6 = vld [vmem:[%s12709_s11 + $0x8] sm:$0xff] }
 0x28e   :  { %v8596_v18 = vld [vmem:[%s12709_s11] sm:$0xff] }
 0x28f   :  { %v3810_v4 = vld [vmem:[%s12711_s10] sm:$0x3] }
 0x290   :  { %4163 = vmatpush.bf16.msra.mxu2 %v7421_v35  ;;  %4126 = vmatpush.bf16.msrb.mxu3 %v7337_v25  ;;  %v8567_v35 = vld [vmem:[%s12707_s9 + $0x14] sm:$0xf0]  ;;  %v8829_v25 = vmov 0.0  }
 0x291   :  { %4152 = vmatpush.bf16.msrb.mxu1 %v7341_v41  ;;  %4139 = vmatpush.bf16.msrb.mxu0 %v7401_v43  ;;  %v7305_v2 = vor.u32 %v8567_v35, %v7304_v46  ;;  %4305 = vst [vmem:[%s12708_s19] sm:$0xff] %v8829_v25  ;;  %v8564_v41 = vld [vmem:[%s12707_s9 + $0x4] sm:$0xf]  ;;  %v7369_v43 = vor.u32 %v8583_v52, %v7368_v20  ;;  %v3961_v25 = vperm.slane %v3810_v4, 1 }
 0x292   :  { %v7301_v33 = vor.u32 %v8564_v41, %v7298_v21  ;;  %v8604_v46 = vld [vmem:[%s12709_s11 + $0x40] sm:$0xff] }
 0x294   :  { %4164 = vmatpush.bf16.msra.mxu2 %v7413_v42  ;;  %4127 = vmatpush.bf16.msrb.mxu3 %v7329_v8  ;;  %v7381_v42 = vor.u32 %v8584_v7, %v7378_v19  ;;  %v7360_v8 = vld [vmem:[%s12707_s9 + $0x80] sm:$0xf] }
 0x295   :  { %4153 = vmatpush.bf16.msrb.mxu1 %v7333_v51  ;;  %4140 = vmatpush.bf16.msrb.mxu0 %v7393_v34  ;;  %v7361_v32 = vor.u32 %v8581_v54, %v7360_v8  ;;  %v7362_v51 = vld [vmem:[%s12707_s9 + $0x88] sm:$0xf0]  ;;  %v8830_v8 = vmov 2  }
 0x296   :  { %v7365_v58 = vor.u32 %v8580_v30, %v7362_v51  ;;  %8817 = vset.pattern.permute.xlu0 %v8830_v8  ;;  %v7544_v51 = vld [vmem:[%s12713_s13 + $0x70] sm:$0xf] }
 0x298   :  { %4165 = vmatpush.bf16.msra.mxu2 %v7405_v13  ;;  %4128 = vmatpush.bf16.msrb.mxu3 %v7321_v44  ;;  %v7370_v13 = vld [vmem:[%s12707_s9 + $0x98] sm:$0xf0] }
 0x299   :  { %4154 = vmatpush.bf16.msrb.mxu1 %v7325_v61  ;;  %4141 = vmatpush.bf16.msrb.mxu0 %v7385_v23  ;;  %v7373_v26 = vor.u32 %v8582_v60, %v7370_v13  ;;  %v8606_v23 = vld [vmem:[%s12709_s11 + $0x50] sm:$0xff] }
 0x29c   :  { %v11344_v11 = vpop.f32.mrf.mxu2  ;;  %4166 = vmatpush.bf16.msra.mxu2 %v7397_v55 }
 0x29d   :  { %v11346_v24 = vpop.f32.mrf.mxu3  ;;  %4142 = vmatpush.bf16.msrb.mxu0 %v7377_v38  ;;  %v3960_v38 = vperm.slane %v3810_v4, 0  ;;  %v7498_v4 = vld [vmem:[%s12713_s13 + $0x18] sm:$0xf0] }
 0x29e   :  { %v3382_v12 = vadd.f32 %v11346_v24, %v11344_v11  ;;  %v8568_v11 = vld [vmem:[%s12707_s9 + $0x24] sm:$0xf]  ;;  %v7314_v24 = vld [vmem:[%s12707_s9 + $0x28] sm:$0xf0] }
 0x29f   :  { %v7317_v40 = vor.u32 %v8568_v11, %v7314_v24  ;;  %v3846_v11 = vperm.slane %v3777_v17, 1 }
 0x2a0   :  { %4167 = vmatpush.bf16.msra.mxu2 %v7389_v63  ;;  %v8605_v63 = vld [vmem:[%s12709_s11 + $0x48] sm:$0xff] }
 0x2a1   :  { %4155 = vmatpush.bf16.msrb.mxu1 %v7317_v40  ;;  %4143 = vmatpush.bf16.msrb.mxu0 %v7369_v43 }
 0x2a4   :  { %v3370_v0 = vpop.f32.mrf.mxu2  ;;  %4168 = vmatpush.bf16.msra.mxu2 %v7381_v42 }
 0x2a5   :  { %v3383_v53 = vpop.f32.mrf.mxu3  ;;  %v3385_v0 = vadd.f32 %v3382_v12, %v11231_v5  ;;  %4156 = vmatpush.bf16.msrb.mxu1 %v7309_v27  ;;  %4144 = vmatpush.bf16.msrb.mxu0 %v7361_v32  ;;  %v3845_v12 = vperm.slane %v3777_v17, 0 }
 0x2a6   :  { %v7313_v53 = vor.u32 %v8569_v15, %v7312_v14 }
 0x2a7   :  { %v3543_v1 = vadd.f32 %v3540_v22, %v3385_v0 }
 0x2a8   :  { %4129 = vmatpush.bf16.msrb.mxu3 %v7313_v53  ;;  %4169 = vmatpush.bf16.msra.mxu2 %v7373_v26 }
 0x2a9   :  { %4157 = vmatpush.bf16.msrb.mxu1 %v7301_v33 }
 0x2ac   :  { %4130 = vmatpush.bf16.msrb.mxu3 %v7305_v2  ;;  %4170 = vmatpush.bf16.msra.mxu2 %v7365_v58  ;;  %v8627_v58 = vld [vmem:[%s12713_s13 + $0x74] sm:$0xf0] }
 0x2ad   :  { %v7545_v17 = vor.u32 %v8627_v58, %v7544_v51  ;;  %v8656_v58 = vld [vmem:[%s12714_s15 + $0xe4] sm:$0xf] }
 0x2b0   :  { %4131 = vmatpush.bf16.msrb.mxu3 %v7297_v59 }
 0x2b4   :  { %4279 = vmatpush.bf16.msra.mxu3 %v8603_v29  ;;  %v8626_v29 = vld [vmem:[%s12713_s13 + $0x74] sm:$0xf] }
 0x2bc   :  { %v3684_v3 = vpop.f32.mrf.mxu2 }
 0x2bd   :  { %v3697_v50 = vpop.f32.mrf.mxu3 }
 0x2be   :  { %v3698_v56 = vadd.f32 %v3697_v50, %v3684_v3 }
 0x2c0   :  { %v3701_v9 = vadd.f32 %v3698_v56, %v3543_v1  ;;  %v8602_v1 = vld [vmem:[%s12709_s11 + $0x30] sm:$0xff]  ;;  %v8611_v56 = vld [vmem:[%s12709_s11 + $0x78] sm:$0xff] }
 0x2c1   :  { %4280 = vmatpush.bf16.msra.mxu3 %v8602_v1  ;;  %v8831_v1 = vmov 1  }
 0x2c2   :  { %v3706_v5 = vadd.f32 %v8818_v10, %v3701_v9  ;;  %v8601_v10 = vld [vmem:[%s12709_s11 + $0x28] sm:$0xff]  ;;  %v8610_v9 = vld [vmem:[%s12709_s11 + $0x70] sm:$0xff] }
 0x2c4   :  { %v11497_v31 = vmax.f32 %v3706_v5, 0.0  ;;  %v3686_v28 = vpop.f32.mrf.mxu2  ;;  %v8600_v5 = vld [vmem:[%s12709_s11 + $0x20] sm:$0xff] }
 0x2c5   :  { %v3699_v62 = vpop.f32.mrf.mxu3  ;;  %4281 = vmatpush.bf16.msra.mxu3 %v8601_v10  ;;  %v8609_v28 = vld [vmem:[%s12709_s11 + $0x68] sm:$0xff] }
 0x2c6   :  { %3744 = vmatmul.f32.vlgmr.msra.gmra.mxu0 %v11497_v31  ;;  %v3760_v37 = vpack.c.bf16 %v11497_v31, %v11497_v31  ;;  %v8599_v62 = vld [vmem:[%s12709_s11 + $0x18] sm:$0xff]  ;;  %v7522_v10 = vld [vmem:[%s12713_s13 + $0x48] sm:$0xf0] }
 0x2c7   :  { %4292 = vmatpush.bf16.msra.mxu0 %v8611_v56  ;;  %v8620_v56 = vld [vmem:[%s12713_s13 + $0x44] sm:$0xf] }
 0x2c8   :  { %3937 = vmatmul.bf16.vlgmr.msra.gmra.mxu1 %v3760_v37  ;;  %3950 = vmatmul.bf16.vlgmr.msrb.gmra.mxu2 %v3760_v37  ;;  %v8608_v37 = vld [vmem:[%s12709_s11 + $0x60] sm:$0xff] }
 0x2c9   :  { %4282 = vmatpush.bf16.msra.mxu3 %v8600_v5  ;;  %4488 = vmatpush.bf16.msra.mxu1 %v7545_v17  ;;  %v7525_v5 = vor.u32 %v8620_v56, %v7522_v10  ;;  %v8636_v56 = vld [vmem:[%s12714_s15 + $0x44] sm:$0xf]  ;;  %v7586_v10 = vld [vmem:[%s12714_s15 + $0x48] sm:$0xf0] }
 0x2cb   :  { %4293 = vmatpush.bf16.msra.mxu0 %v8610_v9 }
 0x2cd   :  { %4283 = vmatpush.bf16.msra.mxu3 %v8599_v62  ;;  %v8619_v62 = vld [vmem:[%s12713_s13 + $0x34] sm:$0xf0] }
 0x2cf   :  { %4294 = vmatpush.bf16.msra.mxu0 %v8609_v28  ;;  %v7512_v28 = vld [vmem:[%s12713_s13 + $0x30] sm:$0xf] }
 0x2d1   :  { %4284 = vmatpush.bf16.msra.mxu3 %v8598_v57  ;;  %v7514_v57 = vld [vmem:[%s12713_s13 + $0x38] sm:$0xf0] }
 0x2d3   :  { %4295 = vmatpush.bf16.msra.mxu0 %v8608_v37  ;;  %v8618_v37 = vld [vmem:[%s12713_s13 + $0x34] sm:$0xf] }
 0x2d5   :  { %4285 = vmatpush.bf16.msra.mxu3 %v8597_v6  ;;  %v7517_v6 = vor.u32 %v8618_v37, %v7514_v57  ;;  %v8639_v37 = vld [vmem:[%s12714_s15 + $0x54] sm:$0xf0]  ;;  %v7650_v57 = vld [vmem:[%s12714_s15 + $0xc8] sm:$0xf0] }
 0x2d7   :  { %4296 = vmatpush.bf16.msra.mxu0 %v8607_v39  ;;  %v7513_v39 = vor.u32 %v8619_v62, %v7512_v28  ;;  %v8652_v62 = vld [vmem:[%s12714_s15 + $0xc4] sm:$0xf] }
 0x2d9   :  { %4286 = vmatpush.bf16.msra.mxu3 %v8596_v18  ;;  %v8617_v18 = vld [vmem:[%s12713_s13 + $0x24] sm:$0xf0] }
 0x2db   :  { %4297 = vmatpush.bf16.msra.mxu0 %v8606_v23  ;;  %v7504_v23 = vld [vmem:[%s12713_s13 + $0x20] sm:$0xf] }
 0x2df   :  { %4298 = vmatpush.bf16.msra.mxu0 %v8605_v63  ;;  %v8616_v63 = vld [vmem:[%s12713_s13 + $0x24] sm:$0xf] }
 0x2e3   :  { %4299 = vmatpush.bf16.msra.mxu0 %v8604_v46  ;;  %v7506_v46 = vld [vmem:[%s12713_s13 + $0x28] sm:$0xf0] }
 0x343   :  { %v3745_v34 = vpop.f32.mrf.mxu0 }
 0x344   :  { %v3746_v55 = vadd.f32 %v8819_v49, %v3745_v34  ;;  %v7546_v49 = vld [vmem:[%s12713_s13 + $0x78] sm:$0xf0]  ;;  %v8625_v34 = vld [vmem:[%s12713_s13 + $0x64] sm:$0xf0] }
 0x345   :  { %v3938_v44 = vpop.f32.mrf.mxu1 }
 0x346   :  { %v3939_v61 = vadd.f32 %v3938_v44, %v3845_v12  ;;  %v3749_v14 = vsel %vm3748_vm1, %v3746_v55, -inf  ;;  %4306 = vst.msk [vmem:[%s12708_s19] sm:$0xff] %vm3748_vm1, %v3746_v55  ;;  %v7536_v12 = vld [vmem:[%s12713_s13 + $0x60] sm:$0xf]  ;;  %v8624_v44 = vld [vmem:[%s12713_s13 + $0x64] sm:$0xf] }
 0x347   :  { %3750 = vmax.xlane.f32.xlu2 %v3749_v14  ;;  %v7537_v14 = vor.u32 %v8625_v34, %v7536_v12  ;;  %v7666_v12 = vld [vmem:[%s12714_s15 + $0xe8] sm:$0xf0] }
 0x348   :  { %v3955_v15 = vmax.f32 %v3939_v61, 0.0  ;;  %v7538_v61 = vld [vmem:[%s12713_s13 + $0x68] sm:$0xf0] }
 0x349   :  { %4489 = vmatpush.bf16.msra.mxu1 %v7537_v14  ;;  %v7669_v14 = vor.u32 %v8656_v58, %v7666_v12  ;;  %v8633_v58 = vld [vmem:[%s12714_s15 + $0x24] sm:$0xf0] }
 0x34a   :  { %v3957_v24 = vpack.c.bf16 %v3955_v15, %v3955_v15  ;;  %v7541_v15 = vor.u32 %v8624_v44, %v7538_v61  ;;  %v7608_v44 = vld [vmem:[%s12714_s15 + $0x70] sm:$0xf]  ;;  %v8643_v61 = vld [vmem:[%s12714_s15 + $0x74] sm:$0xf0] }
 0x34b   :  { %v3951_v0 = vpop.f32.mrf.mxu2 }
 0x34c   :  { %v3952_v53 = vadd.f32 %v3951_v0, %v3846_v11  ;;  %4132 = vmatmul.bf16.vlgmr.msrb.gmra.mxu3 %v3957_v24  ;;  %4158 = vmatmul.bf16.vlgmr.msrb.gmra.mxu1 %v3957_v24  ;;  %v7528_v11 = vld [vmem:[%s12713_s13 + $0x50] sm:$0xf]  ;;  %v8623_v24 = vld [vmem:[%s12713_s13 + $0x54] sm:$0xf0]  ;;  %v8622_v0 = vld [vmem:[%s12713_s13 + $0x54] sm:$0xf] }
 0x34d   :  { %v3940_v22 = vpop.f32.mrf.mxu1 }
 0x34e   :  { %v3956_v40 = vmax.f32 %v3952_v53, 0.0  ;;  %v7530_v53 = vld [vmem:[%s12713_s13 + $0x58] sm:$0xf0]  ;;  %v7529_v22 = vor.u32 %v8623_v24, %v7528_v11  ;;  %v8654_v11 = vld [vmem:[%s12714_s15 + $0xd4] sm:$0xf] }
 0x350   :  { %v3958_v3 = vpack.c.bf16 %v3956_v40, %v3956_v40  ;;  %v7533_v40 = vor.u32 %v8622_v0, %v7530_v53  ;;  %4490 = vmatpush.bf16.msra.mxu1 %v7529_v22  ;;  %v7658_v0 = vld [vmem:[%s12714_s15 + $0xd8] sm:$0xf0]  ;;  %v7600_v53 = vld [vmem:[%s12714_s15 + $0x60] sm:$0xf]  ;;  %v8641_v22 = vld [vmem:[%s12714_s15 + $0x64] sm:$0xf0] }
 0x351   :  { %v7661_v28 = vor.u32 %v8654_v11, %v7658_v0  ;;  %v8691_v11 = vld [vmem:[%s12713_s13 + $0xf4] sm:$0xf0]  ;;  %v8644_v0 = vld [vmem:[%s12714_s15 + $0x84] sm:$0xf] }
 0x352   :  { %4145 = vmatmul.bf16.vlgmr.msrb.gmra.mxu0 %v3958_v3  ;;  %4171 = vmatmul.bf16.vlgmr.msra.gmra.mxu2 %v3958_v3  ;;  %v7520_v3 = vld [vmem:[%s12713_s13 + $0x40] sm:$0xf] }
 0x353   :  { %v3953_v50 = vpop.f32.mrf.mxu2 }
 0x354   :  { %v8621_v50 = vld [vmem:[%s12713_s13 + $0x44] sm:$0xf0] }
 0x355   :  { %v7521_v9 = vor.u32 %v8621_v50, %v7520_v3  ;;  %v7601_v3 = vor.u32 %v8641_v22, %v7600_v53  ;;  %v7672_v50 = vld [vmem:[%s12714_s15 + $0xf0] sm:$0xf]  ;;  %v7618_v53 = vld [vmem:[%s12714_s15 + $0x88] sm:$0xf0] }
 0x357   :  { %4491 = vmatpush.bf16.msra.mxu1 %v7521_v9 }
 0x35b   :  { %4492 = vmatpush.bf16.msra.mxu1 %v7513_v39  ;;  %v7664_v39 = vld [vmem:[%s12714_s15 + $0xe0] sm:$0xf] }
 0x3ba   :  { %v3751_v35 = vpop.xlane.xlu2 %3750 }
 0x3bb   :  { %v3752_v45 = vsub.f32 %v3746_v55, %v3751_v35  ;;  %v7549_v55 = vor.u32 %v8626_v29, %v7546_v49  ;;  %v7505_v35 = vor.u32 %v8617_v18, %v7504_v23  ;;  %v8638_v49 = vld [vmem:[%s12714_s15 + $0x54] sm:$0xf]  ;;  %v7589_v23 = vor.u32 %v8636_v56, %v7586_v10  ;;  %v8689_v56 = vld [vmem:[%s12713_s13 + $0xe4] sm:$0xf0] }
 0x3bc   :  { %v8634_v18 = vld [vmem:[%s12714_s15 + $0x34] sm:$0xf]  ;;  %v7621_v10 = vor.u32 %v8644_v0, %v7618_v53 }
 0x3bd   :  { %v3753_v2 = vmul.f32 1.442695, %v3752_v45  ;;  %4501 = vmatpush.bf16.msrb.mxu2 %v7549_v55  ;;  %v7509_v45 = vor.u32 %v8616_v63, %v7506_v46  ;;  %4493 = vmatpush.bf16.msra.mxu1 %v7505_v35  ;;  %v7594_v55 = vld [vmem:[%s12714_s15 + $0x58] sm:$0xf0] }
 0x3be   :  { %v7578_v63 = vld [vmem:[%s12714_s15 + $0x38] sm:$0xf0] }
 0x3bf   :  { %8824 = vpow2.f32 %v3753_v2  ;;  %v7496_v2 = vld [vmem:[%s12713_s13 + $0x10] sm:$0xf] }
 0x3c1   :  { %4502 = vmatpush.bf16.msrb.mxu2 %v7541_v15  ;;  %v7609_v15 = vor.u32 %v8643_v61, %v7608_v44  ;;  %v8628_v61 = vld [vmem:[%s12714_s15 + $0x4] sm:$0xf] }
 0x3c3   :  { %4683 = vmatpush.bf16.msrb.mxu3 %v7609_v15  ;;  %v7883_v15 = vld [vmem:[%s12713_s13 + $0xf0] sm:$0xf] }
 0x3c5   :  { %v8825_v47 = vpop.eup %8824  ;;  %4503 = vmatpush.bf16.msrb.mxu2 %v7533_v40  ;;  %v7597_v40 = vor.u32 %v8638_v49, %v7594_v55  ;;  %v7626_v49 = vld [vmem:[%s12714_s15 + $0x98] sm:$0xf0] }
 0x3c6   :  { %v3755_v27 = vsel %vm3748_vm1, %v8825_v47, 0.0 }
 0x3c7   :  { %3756 = vadd.xlane.f32.xlu0 %v3755_v27  ;;  %v8820_v27 = vld [vmem:[%s12712_s12] ss:$0 sm:$0xff]  ;;  %4684 = vmatpush.bf16.msrb.mxu3 %v7601_v3  ;;  %v7885_v3 = vld [vmem:[%s12713_s13 + $0xf8] sm:$0xf0] }
 0x3c9   :  { %v4159_v36 = vpop.f32.mrf.mxu1  ;;  %4504 = vmatpush.bf16.msrb.mxu2 %v7525_v5  ;;  %v7592_v5 = vld [vmem:[%s12714_s15 + $0x50] sm:$0xf] }
 0x3ca   :  { %v4160_v41 = vadd.f32 %v4159_v36, %v3961_v25  ;;  %v8614_v36 = vld [vmem:[%s12713_s13 + $0x14] sm:$0xf]  ;;  %v7593_v46 = vor.u32 %v8639_v37, %v7592_v5  ;;  %v8631_v37 = vld [vmem:[%s12714_s15 + $0x14] sm:$0xf0] }
 0x3cb   :  { %v7501_v25 = vor.u32 %v8614_v36, %v7498_v4  ;;  %v7653_v36 = vor.u32 %v8652_v62, %v7650_v57  ;;  %v8655_v4 = vld [vmem:[%s12714_s15 + $0xd4] sm:$0xf0]  ;;  %v7560_v62 = vld [vmem:[%s12714_s15 + $0x10] sm:$0xf] }
 0x3cc   :  { %4685 = vmatpush.bf16.msrb.mxu3 %v7593_v46  ;;  %v7867_v57 = vld [vmem:[%s12713_s13 + $0xd0] sm:$0xf]  ;;  %v8688_v46 = vld [vmem:[%s12713_s13 + $0xe4] sm:$0xf] }
 0x3cd   :  { %4505 = vmatpush.bf16.msrb.mxu2 %v7517_v6  ;;  %v8657_v6 = vld [vmem:[%s12714_s15 + $0xe4] sm:$0xf0] }
 0x3ce   :  { %v7665_v35 = vor.u32 %v8657_v6, %v7664_v39  ;;  %v7561_v39 = vor.u32 %v8631_v37, %v7560_v62  ;;  %v8687_v6 = vld [vmem:[%s12713_s13 + $0xd4] sm:$0xf0]  ;;  %v8706_v37 = vld [vmem:[%s12714_s15 + $0x174] sm:$0xf] }
 0x3cf   :  { %v4133_v7 = vpop.f32.mrf.mxu3  ;;  %v4146_v19 = vpop.f32.mrf.mxu0 }
 0x3d0   :  { %v4134_v42 = vadd.f32 %v4133_v7, %v3960_v38 }
 0x3d1   :  { %v4161_v48 = vpop.f32.mrf.mxu1  ;;  %4506 = vmatpush.bf16.msrb.mxu2 %v7509_v45  ;;  %v7584_v45 = vld [vmem:[%s12714_s15 + $0x40] sm:$0xf] }
 0x3d2   :  { %v4147_v16 = vadd.f32 %v4146_v19, %v4134_v42 }
 0x3d4   :  { %v4176_v59 = vmax.f32 %v4147_v16, 0.0 }
 0x3d5   :  { %v4172_v21 = vpop.f32.mrf.mxu2  ;;  %4507 = vmatpush.bf16.msrb.mxu2 %v7501_v25  ;;  %v7581_v25 = vor.u32 %v8634_v18, %v7578_v63  ;;  %v7632_v18 = vld [vmem:[%s12714_s15 + $0xa0] sm:$0xf]  ;;  %v8649_v63 = vld [vmem:[%s12714_s15 + $0xa4] sm:$0xf0] }
 0x3d6   :  { %v4178_v33 = vpack.c.bf16 %v4176_v59, %v4176_v59  ;;  %v4173_v20 = vadd.f32 %v4172_v21, %v4160_v41  ;;  %v7488_v59 = vld [vmem:[%s12713_s13] sm:$0xf]  ;;  %v8613_v21 = vld [vmem:[%s12713_s13 + $0x4] sm:$0xf0] }
 0x3d7   :  { %v4135_v52 = vpop.f32.mrf.mxu3  ;;  %v4148_v60 = vpop.f32.mrf.mxu0 }
 0x3d8   :  { %v4177_v43 = vmax.f32 %v4173_v20, 0.0  ;;  %4287 = vmatmul.bf16.vlgmr.msra.gmra.mxu3 %v4178_v33  ;;  %v8612_v33 = vld [vmem:[%s12713_s13 + $0x4] sm:$0xf]  ;;  %v7489_v20 = vor.u32 %v8613_v21, %v7488_v59  ;;  %v7490_v52 = vld [vmem:[%s12713_s13 + $0x8] sm:$0xf0] }
 0x3d9   :  { %v7493_v60 = vor.u32 %v8612_v33, %v7490_v52  ;;  %v8635_v59 = vld [vmem:[%s12714_s15 + $0x34] sm:$0xf0]  ;;  %v7648_v21 = vld [vmem:[%s12714_s15 + $0xc0] sm:$0xf]  ;;  %v8653_v33 = vld [vmem:[%s12714_s15 + $0xc4] sm:$0xf0] }
 0x3da   :  { %v4179_v13 = vpack.c.bf16 %v4177_v43, %v4177_v43  ;;  %v8642_v43 = vld [vmem:[%s12714_s15 + $0x74] sm:$0xf]  ;;  %v8648_v52 = vld [vmem:[%s12714_s15 + $0xa4] sm:$0xf] }
 0x3db   :  { %4508 = vmatpush.bf16.msrb.mxu2 %v7493_v60  ;;  %v7634_v60 = vld [vmem:[%s12714_s15 + $0xa8] sm:$0xf0] }
 0x3dc   :  { %4300 = vmatmul.bf16.vlgmr.msra.gmra.mxu0 %v4179_v13  ;;  %v7610_v13 = vld [vmem:[%s12714_s15 + $0x78] sm:$0xf0] }
 0x3dd   :  { %v4174_v26 = vpop.f32.mrf.mxu2 }
 0x3de   :  { %v8640_v26 = vld [vmem:[%s12714_s15 + $0x64] sm:$0xf] }
 0x43a   :  { %v3757_v54 = vpop.xlane.xlu0 %3756 }
 0x43b   :  { %8826 = vrcp.f32 %v3757_v54  ;;  %v7602_v54 = vld [vmem:[%s12714_s15 + $0x68] sm:$0xf0] }
 0x43c   :  { %v7605_v17 = vor.u32 %v8640_v26, %v7602_v54  ;;  %v8630_v26 = vld [vmem:[%s12714_s15 + $0x14] sm:$0xf]  ;;  %v7640_v54 = vld [vmem:[%s12714_s15 + $0xb0] sm:$0xf] }
 0x441   :  { %v8827_v30 = vpop.eup %8826 }
 0x442   :  { %v3759_v32 = vmul.f32 %v8827_v30, %v8825_v47  ;;  %v8615_v47 = vld [vmem:[%s12713_s13 + $0x14] sm:$0xf0]  ;;  %v8658_v30 = vld [vmem:[%s12714_s15 + $0xf4] sm:$0xf] }
 0x443   :  { %v7497_v7 = vor.u32 %v8615_v47, %v7496_v2  ;;  %v8637_v2 = vld [vmem:[%s12714_s15 + $0x44] sm:$0xf0]  ;;  %v7656_v47 = vld [vmem:[%s12714_s15 + $0xd0] sm:$0xf] }
 0x444   :  { %4315 = vperm.xlu1 %8813, %v3759_v32  }
 0x445   :  { %4494 = vmatpush.bf16.msra.mxu1 %v7497_v7  ;;  %v7642_v7 = vld [vmem:[%s12714_s15 + $0xb8] sm:$0xf0] }
 0x449   :  { %4495 = vmatpush.bf16.msra.mxu1 %v7489_v20 }
 0x44c   :  { %8815 = vset.pattern.permute.xlu1 %v8831_v1  ;;  %v8659_v1 = vld [vmem:[%s12714_s15 + $0xf4] sm:$0xf0] }
 0x44d   :  { %4871 = vperm.xlu1 %8815, %v3759_v32   ;;  %v7673_v9 = vor.u32 %v8659_v1, %v7672_v50  ;;  %v7884_v50 = vor.u32 %v8691_v11, %v7883_v15  ;;  %v7875_v1 = vld [vmem:[%s12713_s13 + $0xe0] sm:$0xf]  ;;  %v8677_v15 = vld [vmem:[%s12713_s13 + $0x84] sm:$0xf0]  ;;  %v8678_v11 = vld [vmem:[%s12713_s13 + $0x94] sm:$0xf] }
 0x44f   :  { %4696 = vmatpush.bf16.msrb.mxu0 %v7673_v9 }
 0x453   :  { %4697 = vmatpush.bf16.msrb.mxu0 %v7665_v35  ;;  %v7633_v35 = vor.u32 %v8649_v63, %v7632_v18 }
 0x455   :  { %8816 = vset.pattern.permute.xlu1 %v8830_v8  ;;  %v7613_v8 = vor.u32 %v8642_v43, %v7610_v13  ;;  %v7649_v43 = vor.u32 %v8653_v33, %v7648_v21  ;;  %v7851_v21 = vld [vmem:[%s12713_s13 + $0xb0] sm:$0xf]  ;;  %v8683_v33 = vld [vmem:[%s12713_s13 + $0xb4] sm:$0xf0] }
 0x456   :  { %5433 = vperm.xlu1 %8816, %v3759_v32   ;;  %v7674_v32 = vld [vmem:[%s12714_s15 + $0xf8] sm:$0xf0] }
 0x457   :  { %v7677_v51 = vor.u32 %v8658_v30, %v7674_v32  ;;  %4709 = vmatpush.bf16.msrb.mxu1 %v7613_v8  ;;  %v8651_v30 = vld [vmem:[%s12714_s15 + $0xb4] sm:$0xf0]  ;;  %v7562_v32 = vld [vmem:[%s12714_s15 + $0x18] sm:$0xf0] }
 0x458   :  { %v7641_v12 = vor.u32 %v8651_v30, %v7640_v54  ;;  %v7565_v55 = vor.u32 %v8630_v26, %v7562_v32  ;;  %v7861_v26 = vld [vmem:[%s12713_s13 + $0xc8] sm:$0xf0]  ;;  %v7843_v54 = vld [vmem:[%s12713_s13 + $0xa0] sm:$0xf]  ;;  %v8681_v30 = vld [vmem:[%s12713_s13 + $0xa4] sm:$0xf0] }
 0x459   :  { %v4301_v38 = vpop.f32.mrf.mxu0  ;;  %4722 = vmatpush.bf16.msra.mxu2 %v7677_v51  ;;  %v7568_v51 = vld [vmem:[%s12714_s15 + $0x20] sm:$0xf]  ;;  %v7844_v32 = vor.u32 %v8681_v30, %v7843_v54  ;;  %v8718_v54 = vld [vmem:[%s12714_s15 + $0x1d4] sm:$0xf]  ;;  %v7997_v30 = vld [vmem:[%s12714_s15 + $0x1d8] sm:$0xf0] }
 0x45a   :  { %v7569_v44 = vor.u32 %v8633_v58, %v7568_v51  ;;  %v8682_v51 = vld [vmem:[%s12713_s13 + $0xb4] sm:$0xf]  ;;  %v7853_v58 = vld [vmem:[%s12713_s13 + $0xb8] sm:$0xf0] }
 0x45b   :  { %v4288_v19 = vpop.f32.mrf.mxu3  ;;  %4710 = vmatpush.bf16.msrb.mxu1 %v7605_v17  ;;  %v8646_v17 = vld [vmem:[%s12714_s15 + $0x94] sm:$0xf] }
 0x45c   :  { %v4289_v42 = vadd.f32 %v8820_v27, %v4288_v19  ;;  %v7657_v19 = vor.u32 %v8655_v4, %v7656_v47  ;;  %v7552_v47 = vld [vmem:[%s12714_s15] sm:$0xf] }
 0x45d   :  { %4723 = vmatpush.bf16.msra.mxu2 %v7669_v14  ;;  %v7554_v14 = vld [vmem:[%s12714_s15 + $0x8] sm:$0xf0]  ;;  %v7859_v4 = vld [vmem:[%s12713_s13 + $0xc0] sm:$0xf] }
 0x45e   :  { %v4302_v48 = vadd.f32 %v4301_v38, %v4289_v42  ;;  %v8650_v38 = vld [vmem:[%s12714_s15 + $0xb4] sm:$0xf]  ;;  %v8632_v42 = vld [vmem:[%s12714_s15 + $0x24] sm:$0xf]  ;;  %4698 = vmatpush.bf16.msrb.mxu0 %v7657_v19  ;;  %v7557_v22 = vor.u32 %v8628_v61, %v7554_v14  ;;  %v7827_v61 = vld [vmem:[%s12713_s13 + $0x80] sm:$0xf] }
 0x45f   :  { %4711 = vmatpush.bf16.msrb.mxu1 %v7597_v40  ;;  %v7645_v20 = vor.u32 %v8650_v38, %v7642_v7  ;;  %v8690_v40 = vld [vmem:[%s12713_s13 + $0xf4] sm:$0xf]  ;;  %v8685_v7 = vld [vmem:[%s12713_s13 + $0xc4] sm:$0xf0]  ;;  %v7828_v0 = vor.u32 %v8677_v15, %v7827_v61  ;;  %v8696_v61 = vld [vmem:[%s12714_s15 + $0x124] sm:$0xf] }
 0x460   :  { %4308 = vrot.lane.b32.xlu1 %v4302_v48, %s8832_s6  ;;  %v7570_v48 = vld [vmem:[%s12714_s15 + $0x28] sm:$0xf0]  ;;  %v7888_v9 = vor.u32 %v8690_v40, %v7885_v3  ;;  %v7860_v19 = vor.u32 %v8685_v7, %v7859_v4  ;;  %v8013_v4 = vld [vmem:[%s12714_s15 + $0x1f8] sm:$0xf0]  ;;  %v8664_v7 = vld [vmem:[%s12716_s17 + $0x20] sm:$0xff]  ;;  %s8834_s6 = smov 24  }
 0x461   :  { %v4303_v16 = vpop.f32.mrf.mxu0  ;;  %4724 = vmatpush.bf16.msra.mxu2 %v7661_v28  ;;  %v7573_v13 = vor.u32 %v8632_v42, %v7570_v48  ;;  %v7876_v28 = vor.u32 %v8689_v56, %v7875_v1  ;;  %v8647_v42 = vld [vmem:[%s12714_s15 + $0x94] sm:$0xf0]  ;;  %v8686_v48 = vld [vmem:[%s12713_s13 + $0xd4] sm:$0xf]  ;;  %v7829_v40 = vld [vmem:[%s12713_s13 + $0x88] sm:$0xf0] }
 0x462   :  { %v7585_v16 = vor.u32 %v8637_v2, %v7584_v45  ;;  %4699 = vmatpush.bf16.msrb.mxu0 %v7649_v43  ;;  %v7877_v45 = vld [vmem:[%s12713_s13 + $0xe8] sm:$0xf0]  ;;  %v8684_v43 = vld [vmem:[%s12713_s13 + $0xc4] sm:$0xf]  ;;  %v8667_v56 = vld [vmem:[%s12716_s17 + $0x38] sm:$0xff] }
 0x463   :  { %v4290_v41 = vpop.f32.mrf.mxu3  ;;  %4712 = vmatpush.bf16.msrb.mxu1 %v7589_v23  ;;  %v7868_v23 = vor.u32 %v8687_v6, %v7867_v57  ;;  %v7880_v2 = vor.u32 %v8688_v46, %v7877_v45  ;;  %v7949_v57 = vld [vmem:[%s12714_s15 + $0x178] sm:$0xf0]  ;;  %v8673_v46 = vld [vmem:[%s12716_s17 + $0x68] sm:$0xff] }
 0x464   :  { %v7576_v41 = vld [vmem:[%s12714_s15 + $0x30] sm:$0xf]  ;;  %4686 = vmatpush.bf16.msrb.mxu3 %v7585_v16  ;;  %v7952_v18 = vor.u32 %v8706_v37, %v7949_v57  ;;  %v7941_v45 = vld [vmem:[%s12714_s15 + $0x168] sm:$0xf0]  ;;  %v8723_v37 = vld [vmem:[%s12714_s15 + $0x1f4] sm:$0xf0] }
 0x465   :  { %4725 = vmatpush.bf16.msra.mxu2 %v7653_v36  ;;  %v7577_v8 = vor.u32 %v8635_v59, %v7576_v41  ;;  %v8629_v36 = vld [vmem:[%s12714_s15 + $0x4] sm:$0xf0]  ;;  %v7869_v41 = vld [vmem:[%s12713_s13 + $0xd8] sm:$0xf0] }
 0x466   :  { %4700 = vmatpush.bf16.msrb.mxu0 %v7641_v12  ;;  %v7553_v38 = vor.u32 %v8629_v36, %v7552_v47  ;;  %v7872_v59 = vor.u32 %v8686_v48, %v7869_v41  ;;  %v8722_v36 = vld [vmem:[%s12714_s15 + $0x1f4] sm:$0xf]  ;;  %v7933_v48 = vld [vmem:[%s12714_s15 + $0x158] sm:$0xf0]  ;;  %v8669_v15 = vld [vmem:[%s12716_s17 + $0x48] sm:$0xff] }
 0x467   :  { %4713 = vmatpush.bf16.msrb.mxu1 %v7581_v25  ;;  %v7624_v25 = vld [vmem:[%s12714_s15 + $0x90] sm:$0xf]  ;;  %v8016_v41 = vor.u32 %v8722_v36, %v8013_v4  ;;  %v8003_v36 = vld [vmem:[%s12714_s15 + $0x1e0] sm:$0xf]  ;;  %v8721_v4 = vld [vmem:[%s12714_s15 + $0x1e4] sm:$0xf0] }
 0x468   :  { %4687 = vmatpush.bf16.msrb.mxu3 %v7577_v8  ;;  %v7625_v16 = vor.u32 %v8647_v42, %v7624_v25  ;;  %v7864_v8 = vor.u32 %v8684_v43, %v7861_v26  ;;  %v8702_v42 = vld [vmem:[%s12714_s15 + $0x154] sm:$0xf]  ;;  %v7925_v43 = vld [vmem:[%s12714_s15 + $0x148] sm:$0xf0]  ;;  %v8671_v26 = vld [vmem:[%s12716_s17 + $0x58] sm:$0xff] }
 0x469   :  { %4726 = vmatpush.bf16.msra.mxu2 %v7645_v20  ;;  %v7852_v20 = vor.u32 %v8683_v33, %v7851_v21  ;;  %v8720_v21 = vld [vmem:[%s12714_s15 + $0x1e4] sm:$0xf]  ;;  %v8005_v33 = vld [vmem:[%s12714_s15 + $0x1e8] sm:$0xf0] }
 0x46a   :  { %4701 = vmatpush.bf16.msrb.mxu0 %v7633_v35  ;;  %v8704_v35 = vld [vmem:[%s12714_s15 + $0x164] sm:$0xf] }
 0x46b   :  { %4714 = vmatpush.bf16.msrb.mxu1 %v7573_v13 }
 0x46c   :  { %4688 = vmatpush.bf16.msrb.mxu3 %v7569_v44  ;;  %v7845_v44 = vld [vmem:[%s12713_s13 + $0xa8] sm:$0xf0] }
 0x46e   :  { %4702 = vmatpush.bf16.msrb.mxu0 %v7625_v16  ;;  %v8672_v16 = vld [vmem:[%s12716_s17 + $0x60] sm:$0xff] }
 0x46f   :  { %4715 = vmatpush.bf16.msrb.mxu1 %v7565_v55  ;;  %v8680_v55 = vld [vmem:[%s12713_s13 + $0xa4] sm:$0xf] }
 0x470   :  { %4689 = vmatpush.bf16.msrb.mxu3 %v7561_v39  ;;  %v7848_v14 = vor.u32 %v8680_v55, %v7845_v44 }
 0x473   :  { %4716 = vmatpush.bf16.msrb.mxu1 %v7557_v22  ;;  %v8676_v22 = vld [vmem:[%s12713_s13 + $0x84] sm:$0xf] }
 0x474   :  { %4690 = vmatpush.bf16.msrb.mxu3 %v7553_v38  ;;  %v7832_v3 = vor.u32 %v8676_v22, %v7829_v40  ;;  %v8694_v40 = vld [vmem:[%s12714_s15 + $0x114] sm:$0xf] }
 0x478   :  { %4838 = vmatpush.bf16.msra.mxu3 %v8667_v56 }
 0x4b6   :  { %v4316_v29 = vpop.permute.xlu1 %4315 }
 0x4b7   :  { %v4318_v34 = vmul.f32 %v4316_v29, %v11497_v31  ;;  %v7637_v29 = vor.u32 %v8648_v52, %v7634_v60  ;;  %v7616_v52 = vld [vmem:[%s12714_s15 + $0x80] sm:$0xf]  ;;  %v8645_v60 = vld [vmem:[%s12714_s15 + $0x84] sm:$0xf0] }
 0x4b8   :  { %v7617_v13 = vor.u32 %v8645_v60, %v7616_v52  ;;  %v7936_v52 = vor.u32 %v8702_v42, %v7933_v48  ;;  %v8700_v60 = vld [vmem:[%s12714_s15 + $0x144] sm:$0xf]  ;;  %v7973_v48 = vld [vmem:[%s12714_s15 + $0x1a8] sm:$0xf0] }
 0x4b9   :  { %v4319_v24 = vpack.c.bf16 %v4318_v34, %v4318_v34  ;;  %4727 = vmatpush.bf16.msra.mxu2 %v7637_v29  ;;  %v7856_v29 = vor.u32 %v8682_v51, %v7853_v58  ;;  %v7928_v51 = vor.u32 %v8700_v60, %v7925_v43  ;;  %v8712_v42 = vld [vmem:[%s12714_s15 + $0x1a4] sm:$0xf]  ;;  %v8753_v60 = vld [vmem:[%s12713_s13 + $0x164] sm:$0xf0] }
 0x4ba   :  { %4703 = vmatpush.bf16.msrb.mxu0 %v7617_v13 }
 0x4bb   :  { %4496 = vmatmul.bf16.vlgmr.msra.gmra.mxu1 %v4319_v24  ;;  %4509 = vmatmul.bf16.vlgmr.msrb.gmra.mxu2 %v4319_v24  ;;  %v7629_v24 = vor.u32 %v8646_v17, %v7626_v49  ;;  %v7835_v17 = vld [vmem:[%s12713_s13 + $0x90] sm:$0xf]  ;;  %v8679_v49 = vld [vmem:[%s12713_s13 + $0x94] sm:$0xf0] }
 0x4bc   :  { %5050 = vmatpush.bf16.msra.mxu1 %v7884_v50  ;;  %v7836_v12 = vor.u32 %v8679_v49, %v7835_v17  ;;  %v4336_v50 = vld [vmem:[%s12715_s14] sm:$0x3]  ;;  %v7917_v17 = vld [vmem:[%s12714_s15 + $0x138] sm:$0xf0]  ;;  %v8670_v49 = vld [vmem:[%s12716_s17 + $0x50] sm:$0xff] }
 0x4bd   :  { %4728 = vmatpush.bf16.msra.mxu2 %v7629_v24  ;;  %v7837_v24 = vld [vmem:[%s12713_s13 + $0x98] sm:$0xf0]  ;;  %v4404_v1 = vperm.slane %v4336_v50, 0  ;;  %v4405_v6 = vperm.slane %v4336_v50, 1  ;;  %v8716_v50 = vld [vmem:[%s12714_s15 + $0x1c4] sm:$0xf] }
 0x4be   :  { %v7840_v53 = vor.u32 %v8678_v11, %v7837_v24  ;;  %v8660_v11 = vld [vmem:[%s12716_s17] sm:$0xff] }
 0x4bf   :  { %v11833_v27 = vpop.permute.xlu1 %4871 }
 0x4c0   :  { %5051 = vmatpush.bf16.msra.mxu1 %v7876_v28  ;;  %v4874_v58 = vmul.f32 %v11833_v27, %v11497_v31  ;;  %v8661_v27 = vld [vmem:[%s12716_s17 + $0x8] sm:$0xff] }
 0x4c1   :  { %4729 = vmatpush.bf16.msra.mxu2 %v7621_v10  ;;  %v8675_v10 = vld [vmem:[%s12716_s17 + $0x78] sm:$0xff] }
 0x4c2   :  { %4851 = vmatpush.bf16.msra.mxu0 %v8675_v10  ;;  %v4875_v44 = vpack.c.bf16 %v4874_v58, %v4874_v58  ;;  %v7989_v10 = vld [vmem:[%s12714_s15 + $0x1c8] sm:$0xf0] }
 0x4c4   :  { %5052 = vmatpush.bf16.msra.mxu1 %v7868_v23  ;;  %v8665_v23 = vld [vmem:[%s12716_s17 + $0x28] sm:$0xff] }
 0x4c5   :  { %5063 = vmatpush.bf16.msrb.mxu2 %v7888_v9  ;;  %v8666_v9 = vld [vmem:[%s12716_s17 + $0x30] sm:$0xff] }
 0x4c6   :  { %4839 = vmatpush.bf16.msra.mxu3 %v8666_v9  ;;  %v7939_v9 = vld [vmem:[%s12714_s15 + $0x160] sm:$0xf] }
 0x4c8   :  { %v11892_v34 = vpop.permute.xlu1 %5433  ;;  %5053 = vmatpush.bf16.msra.mxu1 %v7860_v19  ;;  %v7944_v19 = vor.u32 %v8704_v35, %v7941_v45  ;;  %v7931_v35 = vld [vmem:[%s12714_s15 + $0x150] sm:$0xf]  ;;  %v8703_v45 = vld [vmem:[%s12714_s15 + $0x154] sm:$0xf0] }
 0x4c9   :  { %5064 = vmatpush.bf16.msrb.mxu2 %v7880_v2 }
 0x4ca   :  { %4840 = vmatpush.bf16.msra.mxu3 %v8665_v23  ;;  %v7893_v23 = vld [vmem:[%s12714_s15 + $0x108] sm:$0xf0] }
 0x4cc   :  { %5054 = vmatpush.bf16.msra.mxu1 %v7852_v20  ;;  %v8663_v20 = vld [vmem:[%s12716_s17 + $0x18] sm:$0xff] }
 0x4cd   :  { %5065 = vmatpush.bf16.msrb.mxu2 %v7872_v59 }
 0x4ce   :  { %4841 = vmatpush.bf16.msra.mxu3 %v8664_v7  ;;  %v8004_v7 = vor.u32 %v8721_v4, %v8003_v36  ;;  %v8182_v36 = vld [vmem:[%s12713_s13 + $0x120] sm:$0xf]  ;;  %v8745_v4 = vld [vmem:[%s12713_s13 + $0x124] sm:$0xf0] }
 0x4d0   :  { %5055 = vmatpush.bf16.msra.mxu1 %v7844_v32  ;;  %v8662_v32 = vld [vmem:[%s12716_s17 + $0x10] sm:$0xff] }
 0x4d1   :  { %5066 = vmatpush.bf16.msrb.mxu2 %v7864_v8  ;;  %v8008_v8 = vor.u32 %v8720_v21, %v8005_v33  ;;  %v7995_v21 = vld [vmem:[%s12714_s15 + $0x1d0] sm:$0xf] }
 0x4d2   :  { %v4309_v5 = vpop.permute.xlu1 %4308  ;;  %4842 = vmatpush.bf16.msra.mxu3 %v8663_v20  ;;  %v8719_v20 = vld [vmem:[%s12714_s15 + $0x1d4] sm:$0xf0] }
 0x4d3   :  { %4312 = vst.msk [vmem:[%s12708_s19] sm:$0xff] %vm4311_vm2, %v4309_v5  ;;  %v8674_v5 = vld [vmem:[%s12716_s17 + $0x70] sm:$0xff]  ;;  %v7996_v43 = vor.u32 %v8719_v20, %v7995_v21  ;;  %v8743_v21 = vld [vmem:[%s12713_s13 + $0x114] sm:$0xf0]  ;;  %v8200_v20 = vld [vmem:[%s12713_s13 + $0x148] sm:$0xf0] }
 0x4d4   :  { %5056 = vmatpush.bf16.msra.mxu1 %v7836_v12  ;;  %4852 = vmatpush.bf16.msra.mxu0 %v8674_v5  ;;  %v8000_v12 = vor.u32 %v8718_v54, %v7997_v30  ;;  %v7992_v5 = vor.u32 %v8716_v50, %v7989_v10  ;;  %v7915_v30 = vld [vmem:[%s12714_s15 + $0x130] sm:$0xf]  ;;  %v8754_v50 = vld [vmem:[%s12713_s13 + $0x174] sm:$0xf] }
 0x4d5   :  { %5067 = vmatpush.bf16.msrb.mxu2 %v7856_v29  ;;  %v8698_v29 = vld [vmem:[%s12714_s15 + $0x134] sm:$0xf]  ;;  %v7899_v10 = vld [vmem:[%s12714_s15 + $0x110] sm:$0xf] }
 0x4d6   :  { %4843 = vmatpush.bf16.msra.mxu3 %v8662_v32  ;;  %v7920_v55 = vor.u32 %v8698_v29, %v7917_v17  ;;  %v8699_v32 = vld [vmem:[%s12714_s15 + $0x134] sm:$0xf0]  ;;  %v8717_v29 = vld [vmem:[%s12714_s15 + $0x1c4] sm:$0xf0]  ;;  %v8206_v17 = vld [vmem:[%s12713_s13 + $0x150] sm:$0xf] }
 0x4d7   :  { %v7916_v58 = vor.u32 %v8699_v32, %v7915_v30  ;;  %v8192_v32 = vld [vmem:[%s12713_s13 + $0x138] sm:$0xf0] }
 0x4d8   :  { %5057 = vmatpush.bf16.msra.mxu1 %v7828_v0  ;;  %4853 = vmatpush.bf16.msra.mxu0 %v8673_v46  ;;  %v7947_v0 = vld [vmem:[%s12714_s15 + $0x170] sm:$0xf]  ;;  %v7981_v46 = vld [vmem:[%s12714_s15 + $0x1b8] sm:$0xf0] }
 0x4d9   :  { %5068 = vmatpush.bf16.msrb.mxu2 %v7848_v14  ;;  %v7909_v14 = vld [vmem:[%s12714_s15 + $0x128] sm:$0xf0] }
 0x4da   :  { %4844 = vmatpush.bf16.msra.mxu3 %v8661_v27  ;;  %v7912_v24 = vor.u32 %v8696_v61, %v7909_v14  ;;  %v7907_v14 = vld [vmem:[%s12714_s15 + $0x120] sm:$0xf] }
 0x4dc   :  { %4854 = vmatpush.bf16.msra.mxu0 %v8672_v16  ;;  %v7976_v16 = vor.u32 %v8712_v42, %v7973_v48  ;;  %v7955_v48 = vld [vmem:[%s12714_s15 + $0x180] sm:$0xf] }
 0x4dd   :  { %5069 = vmatpush.bf16.msrb.mxu2 %v7840_v53  ;;  %v8707_v53 = vld [vmem:[%s12714_s15 + $0x174] sm:$0xf0] }
 0x4de   :  { %4845 = vmatpush.bf16.msra.mxu3 %v8660_v11  ;;  %v7948_v22 = vor.u32 %v8707_v53, %v7947_v0  ;;  %v7979_v11 = vld [vmem:[%s12714_s15 + $0x1b0] sm:$0xf]  ;;  %v8715_v0 = vld [vmem:[%s12714_s15 + $0x1b4] sm:$0xf0]  ;;  %v8198_v53 = vld [vmem:[%s12713_s13 + $0x140] sm:$0xf] }
 0x4e0   :  { %4855 = vmatpush.bf16.msra.mxu0 %v8671_v26  ;;  %v8710_v26 = vld [vmem:[%s12714_s15 + $0x194] sm:$0xf] }
 0x4e1   :  { %5070 = vmatpush.bf16.msrb.mxu2 %v7832_v3  ;;  %v7901_v3 = vld [vmem:[%s12714_s15 + $0x118] sm:$0xf0] }
 0x4e2   :  { %v7904_v56 = vor.u32 %v8694_v40, %v7901_v3  ;;  %v7980_v40 = vor.u32 %v8715_v0, %v7979_v11 }
 0x4e4   :  { %4856 = vmatpush.bf16.msra.mxu0 %v8670_v49 }
 0x4e8   :  { %4857 = vmatpush.bf16.msra.mxu0 %v8669_v15  ;;  %v8697_v15 = vld [vmem:[%s12714_s15 + $0x124] sm:$0xf0] }
 0x538   :  { %v4497_v28 = vpop.f32.mrf.mxu1 }
 0x539   :  { %v4498_v62 = vadd.f32 %v4497_v28, %v4404_v1  ;;  %v8668_v1 = vld [vmem:[%s12716_s17 + $0x40] sm:$0xff]  ;;  %v8705_v28 = vld [vmem:[%s12714_s15 + $0x164] sm:$0xf0] }
 0x53a   :  { %4858 = vmatpush.bf16.msra.mxu0 %v8668_v1  ;;  %v7940_v57 = vor.u32 %v8705_v28, %v7939_v9  ;;  %v8224_v1 = vld [vmem:[%s12713_s13 + $0x178] sm:$0xf0]  ;;  %v8695_v9 = vld [vmem:[%s12714_s15 + $0x114] sm:$0xf0] }
 0x53b   :  { %v4514_v39 = vmax.f32 %v4498_v62, 0.0  ;;  %v8011_v62 = vld [vmem:[%s12714_s15 + $0x1f0] sm:$0xf]  ;;  %v7900_v28 = vor.u32 %v8695_v9, %v7899_v10 }
 0x53d   :  { %v4516_v63 = vpack.c.bf16 %v4514_v39, %v4514_v39  ;;  %v8012_v39 = vor.u32 %v8723_v37, %v8011_v62  ;;  %v8713_v62 = vld [vmem:[%s12714_s15 + $0x1a4] sm:$0xf0]  ;;  %v8190_v37 = vld [vmem:[%s12713_s13 + $0x130] sm:$0xf] }
 0x53e   :  { %v4510_v2 = vpop.f32.mrf.mxu2 }
 0x53f   :  { %v4511_v47 = vadd.f32 %v4510_v2, %v4405_v6  ;;  %4691 = vmatmul.bf16.vlgmr.msrb.gmra.mxu3 %v4516_v63  ;;  %4717 = vmatmul.bf16.vlgmr.msrb.gmra.mxu1 %v4516_v63  ;;  %v8692_v6 = vld [vmem:[%s12714_s15 + $0x104] sm:$0xf] }
 0x540   :  { %v4499_v38 = vpop.f32.mrf.mxu1  ;;  %5271 = vmatpush.bf16.msrb.mxu1 %v7952_v18  ;;  %5245 = vmatpush.bf16.msrb.mxu3 %v7948_v22  ;;  %v8714_v18 = vld [vmem:[%s12714_s15 + $0x1b4] sm:$0xf]  ;;  %v7896_v63 = vor.u32 %v8692_v6, %v7893_v23  ;;  %v8749_v22 = vld [vmem:[%s12713_s13 + $0x144] sm:$0xf0]  ;;  %v8752_v23 = vld [vmem:[%s12713_s13 + $0x164] sm:$0xf] }
 0x541   :  { %v4515_v25 = vmax.f32 %v4511_v47, 0.0  ;;  %v7984_v2 = vor.u32 %v8714_v18, %v7981_v46  ;;  %v7932_v47 = vor.u32 %v8703_v45, %v7931_v35  ;;  %v8222_v38 = vld [vmem:[%s12713_s13 + $0x170] sm:$0xf]  ;;  %v8199_v3 = vor.u32 %v8749_v22, %v8198_v53  ;;  %v8216_v18 = vld [vmem:[%s12713_s13 + $0x168] sm:$0xf0] }
 0x542   :  { %v7891_v46 = vld [vmem:[%s12714_s15 + $0x100] sm:$0xf]  ;;  %v8693_v35 = vld [vmem:[%s12714_s15 + $0x104] sm:$0xf0]  ;;  %v7963_v45 = vld [vmem:[%s12714_s15 + $0x190] sm:$0xf] }
 0x543   :  { %v4517_v59 = vpack.c.bf16 %v4515_v25, %v4515_v25 }
 0x544   :  { %5272 = vmatpush.bf16.msrb.mxu1 %v7944_v19  ;;  %5246 = vmatpush.bf16.msrb.mxu3 %v7940_v57  ;;  %v8755_v19 = vld [vmem:[%s12713_s13 + $0x174] sm:$0xf0] }
 0x545   :  { %4704 = vmatmul.bf16.vlgmr.msrb.gmra.mxu0 %v4517_v59  ;;  %4730 = vmatmul.bf16.vlgmr.msra.gmra.mxu2 %v4517_v59  ;;  %v8223_v25 = vor.u32 %v8755_v19, %v8222_v38  ;;  %v8701_v59 = vld [vmem:[%s12714_s15 + $0x144] sm:$0xf0]  ;;  %v8747_v57 = vld [vmem:[%s12713_s13 + $0x134] sm:$0xf0]  ;;  %v8750_v19 = vld [vmem:[%s12713_s13 + $0x154] sm:$0xf] }
 0x546   :  { %v4512_v13 = vpop.f32.mrf.mxu2  ;;  %5284 = vmatpush.bf16.msra.mxu2 %v8016_v41  ;;  %5258 = vmatpush.bf16.msrb.mxu0 %v8012_v39  ;;  %v7923_v41 = vld [vmem:[%s12714_s15 + $0x140] sm:$0xf]  ;;  %v8191_v6 = vor.u32 %v8747_v57, %v8190_v37 }
 0x547   :  { %v7924_v33 = vor.u32 %v8701_v59, %v7923_v41  ;;  %v8174_v41 = vld [vmem:[%s12713_s13 + $0x110] sm:$0xf] }
 0x548   :  { %5273 = vmatpush.bf16.msrb.mxu1 %v7936_v52  ;;  %5247 = vmatpush.bf16.msrb.mxu3 %v7932_v47  ;;  %v8214_v52 = vld [vmem:[%s12713_s13 + $0x160] sm:$0xf]  ;;  %v8711_v47 = vld [vmem:[%s12714_s15 + $0x194] sm:$0xf0] }
 0x549   :  { %v8215_v13 = vor.u32 %v8753_v60, %v8214_v52  ;;  %v7964_v38 = vor.u32 %v8711_v47, %v7963_v45  ;;  %v8175_v52 = vor.u32 %v8743_v21, %v8174_v41  ;;  %v8738_v45 = vld [vmem:[%s12716_s17 + $0xf0] sm:$0xff]  ;;  %v8288_v47 = vld [vmem:[%s12714_s15 + $0x278] sm:$0xf0] }
 0x54a   :  { %5285 = vmatpush.bf16.msra.mxu2 %v8008_v8  ;;  %5259 = vmatpush.bf16.msrb.mxu0 %v8004_v7  ;;  %v7965_v8 = vld [vmem:[%s12714_s15 + $0x198] sm:$0xf0]  ;;  %v8183_v7 = vor.u32 %v8745_v4, %v8182_v36 }
 0x54b   :  { %v7968_v54 = vor.u32 %v8710_v26, %v7965_v8  ;;  %v8741_v26 = vld [vmem:[%s12713_s13 + $0x104] sm:$0xf0]  ;;  %v8746_v8 = vld [vmem:[%s12713_s13 + $0x134] sm:$0xf] }
 0x54c   :  { %5274 = vmatpush.bf16.msrb.mxu1 %v7928_v51  ;;  %5248 = vmatpush.bf16.msrb.mxu3 %v7924_v33  ;;  %v7987_v51 = vld [vmem:[%s12714_s15 + $0x1c0] sm:$0xf]  ;;  %v8748_v33 = vld [vmem:[%s12713_s13 + $0x144] sm:$0xf] }
 0x54d   :  { %v7988_v49 = vor.u32 %v8717_v29, %v7987_v51  ;;  %v8203_v60 = vor.u32 %v8748_v33, %v8200_v20  ;;  %v8744_v29 = vld [vmem:[%s12713_s13 + $0x124] sm:$0xf]  ;;  %v8727_v33 = vld [vmem:[%s12716_s17 + $0x98] sm:$0xff] }
 0x54e   :  { %5286 = vmatpush.bf16.msra.mxu2 %v8000_v12  ;;  %5260 = vmatpush.bf16.msrb.mxu0 %v7996_v43  ;;  %v8751_v12 = vld [vmem:[%s12713_s13 + $0x154] sm:$0xf0] }
 0x54f   :  { %5058 = vmatmul.bf16.vlgmr.msra.gmra.mxu1 %v4875_v44  ;;  %v8207_v27 = vor.u32 %v8751_v12, %v8206_v17  ;;  %v8184_v17 = vld [vmem:[%s12713_s13 + $0x128] sm:$0xf0] }
 0x550   :  { %5275 = vmatpush.bf16.msrb.mxu1 %v7920_v55  ;;  %v8708_v55 = vld [vmem:[%s12714_s15 + $0x184] sm:$0xf]  ;;  %5249 = vmatpush.bf16.msrb.mxu3 %v7916_v58  ;;  %v8195_v58 = vor.u32 %v8746_v8, %v8192_v32  ;;  %v8272_v8 = vld [vmem:[%s12714_s15 + $0x258] sm:$0xf0]  ;;  %v8725_v32 = vld [vmem:[%s12716_s17 + $0x88] sm:$0xff] }
 0x552   :  { %5287 = vmatpush.bf16.msra.mxu2 %v7992_v5  ;;  %5261 = vmatpush.bf16.msrb.mxu0 %v7988_v49  ;;  %v7971_v5 = vld [vmem:[%s12714_s15 + $0x1a0] sm:$0xf] }
 0x553   :  { %v7972_v39 = vor.u32 %v8713_v62, %v7971_v5 }
 0x554   :  { %5276 = vmatpush.bf16.msrb.mxu1 %v7912_v24  ;;  %v7908_v24 = vor.u32 %v8697_v15, %v7907_v14  ;;  %v8176_v14 = vld [vmem:[%s12713_s13 + $0x118] sm:$0xf0] }
 0x555   :  { %5071 = vmatmul.bf16.vlgmr.msrb.gmra.mxu2 %v4875_v44  ;;  %v7957_v44 = vld [vmem:[%s12714_s15 + $0x188] sm:$0xf0] }
 0x556   :  { %5288 = vmatpush.bf16.msra.mxu2 %v7984_v2  ;;  %v7960_v61 = vor.u32 %v8708_v55, %v7957_v44  ;;  %5250 = vmatpush.bf16.msrb.mxu3 %v7908_v24  ;;  %v7892_v2 = vor.u32 %v8693_v35, %v7891_v46  ;;  %v7758_v24 = vld [vmem:[%s12715_s14 + $0x2] sm:$0x3]  ;;  %v8730_v46 = vld [vmem:[%s12716_s17 + $0xb0] sm:$0xff] }
 0x557   :  { %5262 = vmatpush.bf16.msrb.mxu0 %v7980_v40  ;;  %v8740_v40 = vld [vmem:[%s12713_s13 + $0x104] sm:$0xf]  ;;  %v4966_v10 = vperm.slane %v7758_v24, 0 }
 0x558   :  { %5277 = vmatpush.bf16.msrb.mxu1 %v7904_v56  ;;  %v8227_v56 = vor.u32 %v8754_v50, %v8224_v1 }
 0x55a   :  { %5289 = vmatpush.bf16.msra.mxu2 %v7976_v16  ;;  %5251 = vmatpush.bf16.msrb.mxu3 %v7900_v28  ;;  %v8709_v16 = vld [vmem:[%s12714_s15 + $0x184] sm:$0xf0] }
 0x55b   :  { %5263 = vmatpush.bf16.msrb.mxu0 %v7972_v39  ;;  %v7956_v59 = vor.u32 %v8709_v16, %v7955_v48  ;;  %v8728_v48 = vld [vmem:[%s12716_s17 + $0xa0] sm:$0xff] }
 0x55c   :  { %5278 = vmatpush.bf16.msrb.mxu1 %v7896_v63  ;;  %v8219_v63 = vor.u32 %v8752_v23, %v8216_v18  ;;  %v8731_v23 = vld [vmem:[%s12716_s17 + $0xb8] sm:$0xff]  ;;  %v8736_v16 = vld [vmem:[%s12716_s17 + $0xe0] sm:$0xff] }
 0x55d   :  { %v8739_v18 = vld [vmem:[%s12716_s17 + $0xf8] sm:$0xff] }
 0x55e   :  { %5290 = vmatpush.bf16.msra.mxu2 %v7968_v54  ;;  %5252 = vmatpush.bf16.msrb.mxu3 %v7892_v2  ;;  %v4369_v54 = vld [vmem:[%s12717_s16] sm:$0x3]  ;;  %v8770_v2 = vld [vmem:[%s12714_s15 + $0x274] sm:$0xf] }
 0x55f   :  { %5264 = vmatpush.bf16.msrb.mxu0 %v7964_v38  ;;  %v4519_v51 = vperm.slane %v4369_v54, 0  ;;  %v4520_v55 = vperm.slane %v4369_v54, 1  ;;  %v8291_v36 = vor.u32 %v8770_v2, %v8288_v47  ;;  %v4967_v38 = vperm.slane %v7758_v24, 1  ;;  %v8787_v24 = vld [vmem:[%s12714_s15 + $0x2f4] sm:$0xf0] }
 0x560   :  { %5612 = vmatpush.bf16.msra.mxu1 %v8223_v25  ;;  %v8208_v25 = vld [vmem:[%s12713_s13 + $0x158] sm:$0xf0]  ;;  %v8783_v2 = vld [vmem:[%s12714_s15 + $0x2d4] sm:$0xf0] }
 0x561   :  { %v8211_v42 = vor.u32 %v8750_v19, %v8208_v25  ;;  %v8737_v19 = vld [vmem:[%s12716_s17 + $0xe8] sm:$0xff] }
 0x562   :  { %5291 = vmatpush.bf16.msra.mxu2 %v7960_v61  ;;  %v8742_v61 = vld [vmem:[%s12713_s13 + $0x114] sm:$0xf] }
 0x563   :  { %5265 = vmatpush.bf16.msrb.mxu0 %v7956_v59  ;;  %v8179_v0 = vor.u32 %v8742_v61, %v8176_v14  ;;  %v5436_v59 = vmul.f32 %v11892_v34, %v11497_v31  ;;  %v8280_v31 = vld [vmem:[%s12714_s15 + $0x268] sm:$0xf0]  ;;  %v8256_v61 = vld [vmem:[%s12714_s15 + $0x238] sm:$0xf0] }
 0x564   :  { %5613 = vmatpush.bf16.msra.mxu1 %v8215_v13  ;;  %v8166_v13 = vld [vmem:[%s12713_s13 + $0x100] sm:$0xf] }
 0x565   :  { %v8167_v30 = vor.u32 %v8741_v26, %v8166_v13  ;;  %v8726_v13 = vld [vmem:[%s12716_s17 + $0x90] sm:$0xff] }
 0x566   :  { %5625 = vmatpush.bf16.msrb.mxu2 %v8227_v56  ;;  %v8766_v26 = vld [vmem:[%s12714_s15 + $0x254] sm:$0xf] }
 0x567   :  { %v8275_v54 = vor.u32 %v8766_v26, %v8272_v8  ;;  %v8778_v26 = vld [vmem:[%s12714_s15 + $0x2b4] sm:$0xf] }
 0x568   :  { %5614 = vmatpush.bf16.msra.mxu1 %v8207_v27  ;;  %v8187_v27 = vor.u32 %v8744_v29, %v8184_v17  ;;  %v8733_v17 = vld [vmem:[%s12716_s17 + $0xc8] sm:$0xff] }
 0x56a   :  { %5626 = vmatpush.bf16.msrb.mxu2 %v8219_v63 }
 0x56c   :  { %5615 = vmatpush.bf16.msra.mxu1 %v8199_v3  ;;  %v8168_v3 = vld [vmem:[%s12713_s13 + $0x108] sm:$0xf0] }
 0x56d   :  { %v8171_v28 = vor.u32 %v8740_v40, %v8168_v3  ;;  %v8278_v3 = vld [vmem:[%s12714_s15 + $0x260] sm:$0xf] }
 0x56e   :  { %5627 = vmatpush.bf16.msrb.mxu2 %v8211_v42 }
 0x570   :  { %5616 = vmatpush.bf16.msra.mxu1 %v8191_v6 }
 0x572   :  { %5628 = vmatpush.bf16.msrb.mxu2 %v8203_v60  ;;  %v8768_v60 = vld [vmem:[%s12714_s15 + $0x264] sm:$0xf] }
 0x573   :  { %v8283_v34 = vor.u32 %v8768_v60, %v8280_v31  ;;  %v8254_v60 = vld [vmem:[%s12714_s15 + $0x230] sm:$0xf]  ;;  %v8763_v31 = vld [vmem:[%s12714_s15 + $0x234] sm:$0xf0] }
 0x574   :  { %5617 = vmatpush.bf16.msra.mxu1 %v8183_v7  ;;  %v8729_v7 = vld [vmem:[%s12716_s17 + $0xa8] sm:$0xff] }
 0x576   :  { %5629 = vmatpush.bf16.msrb.mxu2 %v8195_v58  ;;  %v8264_v58 = vld [vmem:[%s12714_s15 + $0x248] sm:$0xf0] }
 0x578   :  { %5618 = vmatpush.bf16.msra.mxu1 %v8175_v52  ;;  %v5437_v52 = vpack.c.bf16 %v5436_v59, %v5436_v59  ;;  %v8781_v59 = vld [vmem:[%s12714_s15 + $0x2c4] sm:$0xf0] }
 0x57a   :  { %5630 = vmatpush.bf16.msrb.mxu2 %v8187_v27  ;;  %v8771_v27 = vld [vmem:[%s12714_s15 + $0x274] sm:$0xf0] }
 0x57c   :  { %5619 = vmatpush.bf16.msra.mxu1 %v8167_v30  ;;  %v8734_v30 = vld [vmem:[%s12716_s17 + $0xd0] sm:$0xff] }
 0x57e   :  { %5631 = vmatpush.bf16.msrb.mxu2 %v8179_v0 }
 0x582   :  { %5632 = vmatpush.bf16.msrb.mxu2 %v8171_v28  ;;  %v8785_v28 = vld [vmem:[%s12714_s15 + $0x2e4] sm:$0xf0] }
 0x5bc   :  { %v4718_v43 = vpop.f32.mrf.mxu1 }
 0x5bd   :  { %v4719_v53 = vadd.f32 %v4718_v43, %v4520_v55  ;;  %v8735_v43 = vld [vmem:[%s12716_s17 + $0xd8] sm:$0xff] }
 0x5c2   :  { %v4692_v49 = vpop.f32.mrf.mxu3  ;;  %v4705_v12 = vpop.f32.mrf.mxu0 }
 0x5c3   :  { %v4693_v44 = vadd.f32 %v4692_v49, %v4519_v51  ;;  %v8764_v51 = vld [vmem:[%s12714_s15 + $0x244] sm:$0xf] }
 0x5c4   :  { %v4720_v15 = vpop.f32.mrf.mxu1  ;;  %v8267_v29 = vor.u32 %v8764_v51, %v8264_v58  ;;  %v8724_v49 = vld [vmem:[%s12716_s17 + $0x80] sm:$0xff]  ;;  %v8761_v58 = vld [vmem:[%s12714_s15 + $0x224] sm:$0xf0] }
 0x5c5   :  { %v4706_v11 = vadd.f32 %v4705_v12, %v4693_v44  ;;  %v8286_v12 = vld [vmem:[%s12714_s15 + $0x270] sm:$0xf]  ;;  %v8762_v44 = vld [vmem:[%s12714_s15 + $0x234] sm:$0xf]  ;;  %v8732_v15 = vld [vmem:[%s12716_s17 + $0xc0] sm:$0xff] }
 0x5c6   :  { %v8287_v55 = vor.u32 %v8771_v27, %v8286_v12  ;;  %v8259_v14 = vor.u32 %v8762_v44, %v8256_v61  ;;  %v8246_v51 = vld [vmem:[%s12714_s15 + $0x220] sm:$0xf]  ;;  %v8776_v12 = vld [vmem:[%s12714_s15 + $0x2a4] sm:$0xf]  ;;  %v8238_v44 = vld [vmem:[%s12714_s15 + $0x210] sm:$0xf] }
 0x5c7   :  { %v4735_v22 = vmax.f32 %v4706_v11, 0.0  ;;  %v8350_v11 = vld [vmem:[%s12714_s15 + $0x2f0] sm:$0xf]  ;;  %v8759_v61 = vld [vmem:[%s12714_s15 + $0x214] sm:$0xf0] }
 0x5c8   :  { %v4731_v50 = vpop.f32.mrf.mxu2  ;;  %v8351_v0 = vor.u32 %v8787_v24, %v8350_v11  ;;  %v8239_v11 = vor.u32 %v8759_v61, %v8238_v44  ;;  %v8792_v44 = vld [vmem:[%s12716_s17 + $0x120] sm:$0xff] }
 0x5c9   :  { %v4737_v1 = vpack.c.bf16 %v4735_v22, %v4735_v22  ;;  %v4732_v56 = vadd.f32 %v4731_v50, %v4719_v53  ;;  %v8786_v53 = vld [vmem:[%s12714_s15 + $0x2f4] sm:$0xf]  ;;  %v8352_v22 = vld [vmem:[%s12714_s15 + $0x2f8] sm:$0xf0]  ;;  %v8769_v50 = vld [vmem:[%s12714_s15 + $0x264] sm:$0xf0] }
 0x5ca   :  { %v4694_v9 = vpop.f32.mrf.mxu3  ;;  %v4707_v5 = vpop.f32.mrf.mxu0  ;;  %v8355_v40 = vor.u32 %v8786_v53, %v8352_v22  ;;  %v8302_v53 = vld [vmem:[%s12714_s15 + $0x290] sm:$0xf]  ;;  %v8775_v22 = vld [vmem:[%s12714_s15 + $0x294] sm:$0xf0]  ;;  %v8800_v61 = vld [vmem:[%s12716_s17 + $0x160] sm:$0xff] }
 0x5cb   :  { %v4736_v62 = vmax.f32 %v4732_v56, 0.0  ;;  %4846 = vmatmul.bf16.vlgmr.msra.gmra.mxu3 %v4737_v1  ;;  %v8760_v1 = vld [vmem:[%s12714_s15 + $0x224] sm:$0xf]  ;;  %v8279_v56 = vor.u32 %v8769_v50, %v8278_v3  ;;  %v8342_v5 = vld [vmem:[%s12714_s15 + $0x2e0] sm:$0xf]  ;;  %v8303_v50 = vor.u32 %v8775_v22, %v8302_v53  ;;  %v8797_v53 = vld [vmem:[%s12716_s17 + $0x148] sm:$0xff] }
 0x5cc   :  { %v5059_v37 = vpop.f32.mrf.mxu1  ;;  %5400 = vmatpush.bf16.msra.mxu3 %v8731_v23  ;;  %v8767_v23 = vld [vmem:[%s12714_s15 + $0x254] sm:$0xf0]  ;;  %v8788_v22 = vld [vmem:[%s12716_s17 + $0x100] sm:$0xff] }
 0x5cd   :  { %v4738_v57 = vpack.c.bf16 %v4736_v62, %v4736_v62  ;;  %v5060_v39 = vadd.f32 %v5059_v37, %v4966_v10  ;;  %v8248_v10 = vld [vmem:[%s12714_s15 + $0x228] sm:$0xf0]  ;;  %v8784_v62 = vld [vmem:[%s12714_s15 + $0x2e4] sm:$0xf]  ;;  %v8343_v37 = vor.u32 %v8785_v28, %v8342_v5  ;;  %v8757_v5 = vld [vmem:[%s12714_s15 + $0x204] sm:$0xf0] }
 0x5ce   :  { %v8251_v9 = vor.u32 %v8760_v1, %v8248_v10  ;;  %v8304_v1 = vld [vmem:[%s12714_s15 + $0x298] sm:$0xf0] }
 0x5cf   :  { %v5076_v6 = vmax.f32 %v5060_v39, 0.0  ;;  %4859 = vmatmul.bf16.vlgmr.msra.gmra.mxu0 %v4738_v57  ;;  %v8344_v57 = vld [vmem:[%s12714_s15 + $0x2e8] sm:$0xf0] }
 0x5d0   :  { %v4733_v63 = vpop.f32.mrf.mxu2  ;;  %5413 = vmatpush.bf16.msra.mxu0 %v8739_v18  ;;  %5401 = vmatpush.bf16.msra.mxu3 %v8730_v46  ;;  %v8347_v39 = vor.u32 %v8784_v62, %v8344_v57  ;;  %v8758_v18 = vld [vmem:[%s12714_s15 + $0x214] sm:$0xf]  ;;  %v8240_v46 = vld [vmem:[%s12714_s15 + $0x218] sm:$0xf0]  ;;  %v8294_v62 = vld [vmem:[%s12714_s15 + $0x280] sm:$0xf] }
 0x5d1   :  { %v5078_v35 = vpack.c.bf16 %v5076_v6, %v5076_v6  ;;  %v8270_v6 = vld [vmem:[%s12714_s15 + $0x250] sm:$0xf]  ;;  %v8772_v57 = vld [vmem:[%s12714_s15 + $0x284] sm:$0xf] }
 0x5d2   :  { %v8271_v63 = vor.u32 %v8767_v23, %v8270_v6  ;;  %v8296_v23 = vld [vmem:[%s12714_s15 + $0x288] sm:$0xf0] }
 0x5d3   :  { %5279 = vmatmul.bf16.vlgmr.msrb.gmra.mxu1 %v5078_v35 }
 0x5d4   :  { %v5061_v4 = vpop.f32.mrf.mxu1  ;;  %5833 = vmatpush.bf16.msrb.mxu1 %v8291_v36  ;;  %5414 = vmatpush.bf16.msra.mxu0 %v8738_v45  ;;  %v8334_v45 = vld [vmem:[%s12714_s15 + $0x2d0] sm:$0xf]  ;;  %v8782_v36 = vld [vmem:[%s12714_s15 + $0x2d4] sm:$0xf] }
 0x5d5   :  { %5402 = vmatpush.bf16.msra.mxu3 %v8729_v7  ;;  %v8335_v47 = vor.u32 %v8783_v2, %v8334_v45  ;;  %v8336_v4 = vld [vmem:[%s12714_s15 + $0x2d8] sm:$0xf0]  ;;  %v8262_v7 = vld [vmem:[%s12714_s15 + $0x240] sm:$0xf]  ;;  %v8097_v45 = vld [vmem:[%s12715_s14 + $0x4] sm:$0x3] }
 0x5d8   :  { %v5072_v25 = vpop.f32.mrf.mxu2  ;;  %5415 = vmatpush.bf16.msra.mxu0 %v8737_v19  ;;  %5834 = vmatpush.bf16.msrb.mxu1 %v8283_v34  ;;  %v8765_v19 = vld [vmem:[%s12714_s15 + $0x244] sm:$0xf0]  ;;  %v8255_v34 = vor.u32 %v8763_v31, %v8254_v60 }
 0x5d9   :  { %v5073_v42 = vadd.f32 %v5072_v25, %v4967_v38  ;;  %5403 = vmatpush.bf16.msra.mxu3 %v8728_v48  ;;  %v8339_v38 = vor.u32 %v8782_v36, %v8336_v4  ;;  %v8756_v25 = vld [vmem:[%s12714_s15 + $0x204] sm:$0xf]  ;;  %v8232_v48 = vld [vmem:[%s12714_s15 + $0x208] sm:$0xf0]  ;;  %v5528_v4 = vperm.slane %v8097_v45, 0 }
 0x5db   :  { %v5077_v41 = vmax.f32 %v5073_v42, 0.0  ;;  %5253 = vmatmul.bf16.vlgmr.msrb.gmra.mxu3 %v5078_v35  ;;  %v8243_v35 = vor.u32 %v8758_v18, %v8240_v46  ;;  %v8263_v42 = vor.u32 %v8765_v19, %v8262_v7  ;;  %v8299_v18 = vor.u32 %v8772_v57, %v8296_v23 }
 0x5dc   :  { %5416 = vmatpush.bf16.msra.mxu0 %v8736_v16  ;;  %5835 = vmatpush.bf16.msrb.mxu1 %v8275_v54  ;;  %v8235_v16 = vor.u32 %v8756_v25, %v8232_v48  ;;  %v8320_v54 = vld [vmem:[%s12714_s15 + $0x2b8] sm:$0xf0] }
 0x5dd   :  { %v5079_v21 = vpack.c.bf16 %v5077_v41, %v5077_v41  ;;  %5404 = vmatpush.bf16.msra.mxu3 %v8727_v33  ;;  %v8326_v41 = vld [vmem:[%s12714_s15 + $0x2c0] sm:$0xf] }
 0x5de   :  { %v8327_v33 = vor.u32 %v8781_v59, %v8326_v41 }
 0x5df   :  { %5266 = vmatmul.bf16.vlgmr.msrb.gmra.mxu0 %v5079_v21  ;;  %5292 = vmatmul.bf16.vlgmr.msra.gmra.mxu2 %v5079_v21  ;;  %v8780_v21 = vld [vmem:[%s12714_s15 + $0x2c4] sm:$0xf] }
 0x5e0   :  { %v5074_v20 = vpop.f32.mrf.mxu2  ;;  %5417 = vmatpush.bf16.msra.mxu0 %v8735_v43  ;;  %5836 = vmatpush.bf16.msrb.mxu1 %v8267_v29  ;;  %v8318_v43 = vld [vmem:[%s12714_s15 + $0x2b0] sm:$0xf]  ;;  %v8247_v29 = vor.u32 %v8761_v58, %v8246_v51  ;;  %v8795_v58 = vld [vmem:[%s12716_s17 + $0x138] sm:$0xff] }
 0x5e1   :  { %5405 = vmatpush.bf16.msra.mxu3 %v8726_v13  ;;  %5846 = vmatpush.bf16.msra.mxu2 %v8355_v40  ;;  %v8328_v20 = vld [vmem:[%s12714_s15 + $0x2c8] sm:$0xf0]  ;;  %v8779_v13 = vld [vmem:[%s12714_s15 + $0x2b4] sm:$0xf0]  ;;  %v8774_v40 = vld [vmem:[%s12714_s15 + $0x294] sm:$0xf] }
 0x5e2   :  { %v8319_v8 = vor.u32 %v8779_v13, %v8318_v43  ;;  %v8307_v10 = vor.u32 %v8774_v40, %v8304_v1  ;;  %v8796_v40 = vld [vmem:[%s12716_s17 + $0x140] sm:$0xff] }
 0x5e3   :  { %5620 = vmatmul.bf16.vlgmr.msra.gmra.mxu1 %v5437_v52  ;;  %v8822_v1 = vld [vmem:[%s12718_s18 + $0x1] ss:$0 sm:$0xff] }
 0x5e4   :  { %5418 = vmatpush.bf16.msra.mxu0 %v8734_v30  ;;  %5837 = vmatpush.bf16.msrb.mxu1 %v8259_v14  ;;  %v8821_v30 = vld [vmem:[%s12718_s18] ss:$0 sm:$0xff] }
 0x5e5   :  { %5406 = vmatpush.bf16.msra.mxu3 %v8725_v32  ;;  %5847 = vmatpush.bf16.msra.mxu2 %v8347_v39  ;;  %v8323_v32 = vor.u32 %v8778_v26, %v8320_v54  ;;  %v5529_v26 = vperm.slane %v8097_v45, 1 }
 0x5e8   :  { %5419 = vmatpush.bf16.msra.mxu0 %v8733_v17  ;;  %5838 = vmatpush.bf16.msrb.mxu1 %v8251_v9  ;;  %v8310_v17 = vld [vmem:[%s12714_s15 + $0x2a0] sm:$0xf] }
 0x5e9   :  { %5407 = vmatpush.bf16.msra.mxu3 %v8724_v49  ;;  %5848 = vmatpush.bf16.msra.mxu2 %v8339_v38  ;;  %v8777_v49 = vld [vmem:[%s12714_s15 + $0x2a4] sm:$0xf0]  ;;  %v8230_v9 = vld [vmem:[%s12714_s15 + $0x200] sm:$0xf] }
 0x5ea   :  { %v8311_v27 = vor.u32 %v8777_v49, %v8310_v17  ;;  %v8231_v28 = vor.u32 %v8757_v5, %v8230_v9  ;;  %v8794_v49 = vld [vmem:[%s12716_s17 + $0x130] sm:$0xff] }
 0x5ec   :  { %5420 = vmatpush.bf16.msra.mxu0 %v8732_v15  ;;  %5839 = vmatpush.bf16.msrb.mxu1 %v8243_v35  ;;  %v7791_v35 = vld [vmem:[%s12717_s16 + $0x2] sm:$0x3] }
 0x5ed   :  { %5807 = vmatpush.bf16.msrb.mxu3 %v8287_v55  ;;  %v8312_v55 = vld [vmem:[%s12714_s15 + $0x2a8] sm:$0xf0]  ;;  %v5081_v2 = vperm.slane %v7791_v35, 0  ;;  %v5082_v36 = vperm.slane %v7791_v35, 1 }
 0x5ee   :  { %v8315_v15 = vor.u32 %v8776_v12, %v8312_v55  ;;  %v8802_v12 = vld [vmem:[%s12716_s17 + $0x170] sm:$0xff]  ;;  %v8801_v55 = vld [vmem:[%s12716_s17 + $0x168] sm:$0xff] }
 0x5ef   :  { %5633 = vmatmul.bf16.vlgmr.msrb.gmra.mxu2 %v5437_v52  ;;  %v8331_v52 = vor.u32 %v8780_v21, %v8328_v20 }
 0x5f0   :  { %5820 = vmatpush.bf16.msrb.mxu0 %v8351_v0  ;;  %5840 = vmatpush.bf16.msrb.mxu1 %v8235_v16 }
 0x5f1   :  { %5808 = vmatpush.bf16.msrb.mxu3 %v8279_v56  ;;  %5849 = vmatpush.bf16.msra.mxu2 %v8331_v52 }
 0x5f4   :  { %5821 = vmatpush.bf16.msrb.mxu0 %v8343_v37  ;;  %v8773_v37 = vld [vmem:[%s12714_s15 + $0x284] sm:$0xf0] }
 0x5f5   :  { %5809 = vmatpush.bf16.msrb.mxu3 %v8271_v63  ;;  %5850 = vmatpush.bf16.msra.mxu2 %v8323_v32  ;;  %v8295_v6 = vor.u32 %v8773_v37, %v8294_v62  ;;  %v8130_v37 = vld [vmem:[%s12717_s16 + $0x4] sm:$0x3] }
 0x5f8   :  { %5822 = vmatpush.bf16.msrb.mxu0 %v8335_v47 }
 0x5f9   :  { %5810 = vmatpush.bf16.msrb.mxu3 %v8263_v42  ;;  %5851 = vmatpush.bf16.msra.mxu2 %v8315_v15  ;;  %v8799_v15 = vld [vmem:[%s12716_s17 + $0x158] sm:$0xff] }
 0x5fc   :  { %5823 = vmatpush.bf16.msrb.mxu0 %v8327_v33 }
 0x5fd   :  { %5811 = vmatpush.bf16.msrb.mxu3 %v8255_v34  ;;  %5852 = vmatpush.bf16.msra.mxu2 %v8307_v10 }
 0x600   :  { %5824 = vmatpush.bf16.msrb.mxu0 %v8319_v8 }
 0x601   :  { %5812 = vmatpush.bf16.msrb.mxu3 %v8247_v29  ;;  %5853 = vmatpush.bf16.msra.mxu2 %v8299_v18  ;;  %v8803_v29 = vld [vmem:[%s12716_s17 + $0x178] sm:$0xff] }
 0x604   :  { %5825 = vmatpush.bf16.msrb.mxu0 %v8311_v27  ;;  %v8793_v27 = vld [vmem:[%s12716_s17 + $0x128] sm:$0xff] }
 0x605   :  { %5813 = vmatpush.bf16.msrb.mxu3 %v8239_v11  ;;  %v8790_v11 = vld [vmem:[%s12716_s17 + $0x110] sm:$0xff] }
 0x608   :  { %5826 = vmatpush.bf16.msrb.mxu0 %v8303_v50 }
 0x609   :  { %5814 = vmatpush.bf16.msrb.mxu3 %v8231_v28 }
 0x60c   :  { %5827 = vmatpush.bf16.msrb.mxu0 %v8295_v6  ;;  %v5643_v6 = vperm.slane %v8130_v37, 0 }
 0x64c   :  { %v4860_v14 = vpop.f32.mrf.mxu0 }
 0x64e   :  { %v4847_v24 = vpop.f32.mrf.mxu3 }
 0x64f   :  { %v4848_v0 = vadd.f32 %v8821_v30, %v4847_v24  ;;  %v8798_v24 = vld [vmem:[%s12716_s17 + $0x150] sm:$0xff] }
 0x650   :  { %v5280_v3 = vpop.f32.mrf.mxu1 }
 0x651   :  { %v4861_v56 = vadd.f32 %v4860_v14, %v4848_v0  ;;  %v5281_v25 = vadd.f32 %v5280_v3, %v5082_v36  ;;  %v8791_v14 = vld [vmem:[%s12716_s17 + $0x118] sm:$0xff]  ;;  %v8789_v0 = vld [vmem:[%s12716_s17 + $0x108] sm:$0xff] }
 0x653   :  { %4865 = vrot.lane.b32.xlu1 %v4861_v56, %s8833_s21  ;;  %s8835_s21 = smov 32  }
 0x654   :  { %v4862_v39 = vpop.f32.mrf.mxu0 }
 0x655   :  { %v5644_v39 = vperm.slane %v8130_v37, 1 }
 0x656   :  { %v4849_v63 = vpop.f32.mrf.mxu3 }
 0x658   :  { %v5282_v46 = vpop.f32.mrf.mxu1 }
 0x65c   :  { %v5267_v47 = vpop.f32.mrf.mxu0 }
 0x65e   :  { %v5254_v38 = vpop.f32.mrf.mxu3 }
 0x65f   :  { %v5255_v7 = vadd.f32 %v5254_v38, %v5081_v2 }
 0x660   :  { %v5621_v19 = vpop.f32.mrf.mxu1 }
 0x661   :  { %v5268_v42 = vadd.f32 %v5267_v47, %v5255_v7  ;;  %v5622_v48 = vadd.f32 %v5621_v19, %v5528_v4 }
 0x662   :  { %v5293_v16 = vpop.f32.mrf.mxu2 }
 0x663   :  { %v5297_v41 = vmax.f32 %v5268_v42, 0.0  ;;  %v5638_v59 = vmax.f32 %v5622_v48, 0.0  ;;  %v5294_v21 = vadd.f32 %v5293_v16, %v5281_v25  ;;  %v8823_v48 = vld [vmem:[%s12718_s18 + $0x2] ss:$0 sm:$0xff] }
 0x664   :  { %v5269_v33 = vpop.f32.mrf.mxu0 }
 0x665   :  { %v5299_v20 = vpack.c.bf16 %v5297_v41, %v5297_v41  ;;  %v5640_v52 = vpack.c.bf16 %v5638_v59, %v5638_v59  ;;  %v5298_v60 = vmax.f32 %v5294_v21, 0.0 }
 0x666   :  { %v5256_v31 = vpop.f32.mrf.mxu3 }
 0x667   :  { %v5300_v34 = vpack.c.bf16 %v5298_v60, %v5298_v60  ;;  %5408 = vmatmul.bf16.vlgmr.msra.gmra.mxu3 %v5299_v20  ;;  %5841 = vmatmul.bf16.vlgmr.msrb.gmra.mxu1 %v5640_v52 }
 0x668   :  { %v5623_v43 = vpop.f32.mrf.mxu1  ;;  %5962 = vmatpush.bf16.msra.mxu3 %v8795_v58 }
 0x669   :  { %5421 = vmatmul.bf16.vlgmr.msra.gmra.mxu0 %v5300_v34 }
 0x66a   :  { %v5295_v13 = vpop.f32.mrf.mxu2  ;;  %5975 = vmatpush.bf16.msra.mxu0 %v8803_v29 }
 0x66c   :  { %5963 = vmatpush.bf16.msra.mxu3 %v8794_v49 }
 0x66e   :  { %5976 = vmatpush.bf16.msra.mxu0 %v8802_v12 }
 0x670   :  { %5964 = vmatpush.bf16.msra.mxu3 %v8793_v27 }
 0x672   :  { %v5634_v8 = vpop.f32.mrf.mxu2  ;;  %5977 = vmatpush.bf16.msra.mxu0 %v8801_v55 }
 0x673   :  { %v5635_v54 = vadd.f32 %v5634_v8, %v5529_v26 }
 0x674   :  { %5965 = vmatpush.bf16.msra.mxu3 %v8792_v44 }
 0x675   :  { %v5639_v30 = vmax.f32 %v5635_v54, 0.0 }
 0x676   :  { %5978 = vmatpush.bf16.msra.mxu0 %v8800_v61 }
 0x677   :  { %v5641_v32 = vpack.c.bf16 %v5639_v30, %v5639_v30  ;;  %5815 = vmatmul.bf16.vlgmr.msrb.gmra.mxu3 %v5640_v52 }
 0x678   :  { %5966 = vmatpush.bf16.msra.mxu3 %v8791_v14 }
 0x679   :  { %5828 = vmatmul.bf16.vlgmr.msrb.gmra.mxu0 %v5641_v32  ;;  %5854 = vmatmul.bf16.vlgmr.msra.gmra.mxu2 %v5641_v32 }
 0x67a   :  { %v5636_v51 = vpop.f32.mrf.mxu2  ;;  %5979 = vmatpush.bf16.msra.mxu0 %v8799_v15 }
 0x67c   :  { %5967 = vmatpush.bf16.msra.mxu3 %v8790_v11 }
 0x67e   :  { %5980 = vmatpush.bf16.msra.mxu0 %v8798_v24 }
 0x680   :  { %5968 = vmatpush.bf16.msra.mxu3 %v8789_v0 }
 0x682   :  { %5981 = vmatpush.bf16.msra.mxu0 %v8797_v53 }
 0x684   :  { %5969 = vmatpush.bf16.msra.mxu3 %v8788_v22 }
 0x686   :  { %5982 = vmatpush.bf16.msra.mxu0 %v8796_v40 }
 0x6c5   :  { %v4866_v17 = vpop.permute.xlu1 %4865 }
 0x6c6   :  { %4869 = vst.msk [vmem:[%s12708_s19] sm:$0xff] %vm4868_vm3, %v4866_v17 }
 0x6e4   :  { %v5842_v3 = vpop.f32.mrf.mxu1 }
 0x6e5   :  { %v5843_v18 = vadd.f32 %v5842_v3, %v5644_v39 }
 0x6e6   :  { %v5422_v50 = vpop.f32.mrf.mxu0 }
 0x6ea   :  { %v5409_v56 = vpop.f32.mrf.mxu3 }
 0x6eb   :  { %v5410_v10 = vadd.f32 %v8822_v1, %v5409_v56 }
 0x6ec   :  { %v5844_v9 = vpop.f32.mrf.mxu1 }
 0x6ed   :  { %v5423_v5 = vadd.f32 %v5422_v50, %v5410_v10 }
 0x6ee   :  { %v5424_v28 = vpop.f32.mrf.mxu0 }
 0x6ef   :  { %5427 = vrot.lane.b32.xlu2 %v5423_v5, %s8834_s6 }
 0x6f2   :  { %v5411_v62 = vpop.f32.mrf.mxu3 }
 0x6f6   :  { %v5829_v57 = vpop.f32.mrf.mxu0 }
 0x6fa   :  { %v5816_v23 = vpop.f32.mrf.mxu3 }
 0x6fb   :  { %v5817_v63 = vadd.f32 %v5816_v23, %v5643_v6 }
 0x6fc   :  { %v5855_v46 = vpop.f32.mrf.mxu2 }
 0x6fd   :  { %v5830_v35 = vadd.f32 %v5829_v57, %v5817_v63  ;;  %v5856_v45 = vadd.f32 %v5855_v46, %v5843_v18 }
 0x6fe   :  { %v5831_v2 = vpop.f32.mrf.mxu0 }
 0x6ff   :  { %v5859_v47 = vmax.f32 %v5830_v35, 0.0  ;;  %v5860_v36 = vmax.f32 %v5856_v45, 0.0 }
 0x701   :  { %v5861_v4 = vpack.c.bf16 %v5859_v47, %v5859_v47  ;;  %v5862_v38 = vpack.c.bf16 %v5860_v36, %v5860_v36 }
 0x702   :  { %v5818_v7 = vpop.f32.mrf.mxu3 }
 0x703   :  { %5970 = vmatmul.bf16.vlgmr.msra.gmra.mxu3 %v5861_v4  ;;  %5983 = vmatmul.bf16.vlgmr.msra.gmra.mxu0 %v5862_v38 }
 0x704   :  { %v5857_v19 = vpop.f32.mrf.mxu2 }
 0x749   :  { %v5428_v25 = vpop.permute.xlu2 %5427 }
 0x74a   :  { %5431 = vst.msk [vmem:[%s12708_s19] sm:$0xff] %vm5430_vm4, %v5428_v25 }
 0x780   :  { %v5984_v42 = vpop.f32.mrf.mxu0 }
 0x786   :  { %v5971_v16 = vpop.f32.mrf.mxu3 }
 0x787   :  { %v5972_v41 = vadd.f32 %v8823_v48, %v5971_v16 }
 0x788   :  { %v5986_v59 = vpop.f32.mrf.mxu0 }
 0x789   :  { %v5985_v21 = vadd.f32 %v5984_v42, %v5972_v41 }
 0x78b   :  { %5989 = vrot.lane.b32.xlu1 %v5985_v21, %s8835_s21 }
 0x78e   :  { %v5973_v33 = vpop.f32.mrf.mxu3 }
 0x7fd   :  { %v5990_v20 = vpop.permute.xlu1 %5989 }
 0x7fe   :  { %5993 = vst.msk [vmem:[%s12708_s19] sm:$0xff] %vm5992_vm5, %v5990_v20 }

</bundles_post_ra>
